<compile_context>
chip_gen: v5e
topology: v5e:2x2
jax: 0.10.0
libtpu: 0.0.40
codegen_flags: <defaults>
</compile_context>

<pallas_src>
import functools

import jax
import jax.numpy as jnp
from jax.experimental import pallas as pl
from jax.experimental.pallas import tpu as pltpu

_EPS = 1e-5


def _round_up(x, m):
    return ((x + m - 1) // m) * m


def _device_kind():
    try:
        return jax.devices()[0].device_kind.lower()
    except Exception:
        return ""


_KIND = _device_kind()
# v6e / v7x MXUs are 256 deep -> prefer 256-wide contraction tiles there.
_MXU_DEPTH = 256 if ("v6" in _KIND or "v7" in _KIND) else 128
# v7x has 64 MiB VMEM per core; v5e/v6e have 128 MiB.
if "v7" in _KIND:
    _VMEM_LIMIT = 48 * 1024 * 1024
elif "v5" in _KIND or "v6" in _KIND:
    _VMEM_LIMIT = 96 * 1024 * 1024
else:
    _VMEM_LIMIT = 64 * 1024 * 1024


def _round_channels(c):
    if _MXU_DEPTH == 256 and c > 128:
        return _round_up(c, 256)
    return _round_up(c, 128)


def _channel_tile(cp):
    return min(cp, _MXU_DEPTH)


# ----------------------- pltpu.roll capability probe ------------------------

_ROLL_SIGN = "unset"


def _probe_roll_sign():
    """Detect sublane pltpu.roll support + direction (run once, outside jit).

    Returns sign in {+1, -1} such that
        pltpu.roll(x, shift=(sign * off) % n, axis=0)[k] == x[(k + off) % n]
    or None if sublane roll is unavailable (-> padded fallback path).
    """
    global _ROLL_SIGN
    if _ROLL_SIGN != "unset":
        return _ROLL_SIGN

    def kern(x_ref, o_ref):
        o_ref[...] = pltpu.roll(x_ref[...], shift=17, axis=0)

    sign = None
    try:
        n = 256
        x = jnp.broadcast_to(jnp.arange(n, dtype=jnp.float32)[:, None], (n, 128))
        y = pl.pallas_call(
            kern, out_shape=jax.ShapeDtypeStruct((n, 128), jnp.float32))(x)
        v = int(jax.block_until_ready(y)[0, 0])
        if v == (0 - 17) % n:        # jnp.roll convention: out[k] = x[(k-s) % n]
            sign = -1
        elif v == 17:                # out[k] = x[(k+s) % n]
            sign = +1
    except Exception:
        sign = None
    _ROLL_SIGN = sign
    return sign


# ------------------------------ Pallas kernels -------------------------------

def _stats_kernel(x_ref, sum_ref, sq_ref):
    # One partial (sum, sum_sq) row per grid step; padded tail rows are exact
    # zeros so no masking is required.
    x = x_ref[...]
    sum_ref[...] = jnp.sum(x, axis=0, keepdims=True)
    sq_ref[...] = jnp.sum(x * x, axis=0, keepdims=True)


def _conv3x3_kernel(x_ref, scale_ref, shift_ref, mask_ref, w_ref, *rest,
                    mode, stride, H, W, Ho, Wo, Nb, has_residual, emit_stats,
                    roll_sign):
    rest = list(rest)
    acc_ref = rest.pop()                       # scratch is last
    pos = 0
    res_ref = None
    if has_residual:
        res_ref = rest[pos]
        pos += 1
    o_ref = rest[pos]
    pos += 1
    sum_ref = sq_ref = None
    if emit_stats:
        sum_ref = rest[pos]
        sq_ref = rest[pos + 1]

    ci = pl.program_id(1)
    tci = scale_ref.shape[-1]
    Cop = acc_ref.shape[-1]
    M = Nb * Ho * Wo

    @pl.when(ci == 0)
    def _init():
        acc_ref[...] = jnp.zeros_like(acc_ref)

    scale = scale_ref[...]                     # (1, tci)
    shift = shift_ref[...]

    if mode == "roll":
        # Raw (un-padded) input (Nb, H, W, tci), stride == 1 (H == Ho, W == Wo).
        # The 3x3 spatial taps are circular rolls of the flattened activation;
        # the precomputed 0/1 mask kills out-of-bounds rows/cols and any
        # cross-sample wraparound of the roll.
        x2 = x_ref[...].reshape(M, tci)
        a2 = jnp.maximum(x2 * scale + shift, 0.0)
        for dy in range(3):
            for dx in range(3):
                off = (dy - 1) * W + (dx - 1)
                if off == 0:
                    patch = a2
                else:
                    patch = pltpu.roll(a2, shift=(roll_sign * off) % M, axis=0)
                    patch = patch * mask_ref[dy * 3 + dx]
                acc_ref[...] += jnp.dot(patch.astype(jnp.bfloat16),
                                        w_ref[dy * 3 + dx],
                                        preferred_element_type=jnp.float32)
    else:
        # Spatially padded, stride-phase-split input:
        # x_ref: (s*s, Nb, Hs, Ws, tci), mask_ref: (s*s, Hs, Ws, 1).
        s = stride
        scale4 = scale.reshape(1, 1, 1, tci)
        shift4 = shift.reshape(1, 1, 1, tci)
        acts = []
        for ph in range(s * s):
            a = jnp.maximum(x_ref[ph] * scale4 + shift4, 0.0) * mask_ref[ph]
            acts.append(a)
        for dy in range(3):
            for dx in range(3):
                ph = (dy % s) * s + (dx % s)
                oy, ox = dy // s, dx // s
                patch = acts[ph][:, oy:oy + Ho, ox:ox + Wo, :].reshape(M, tci)
                acc_ref[...] += jnp.dot(patch.astype(jnp.bfloat16),
                                        w_ref[dy * 3 + dx],
                                        preferred_element_type=jnp.float32)

    @pl.when(ci == pl.num_programs(1) - 1)
    def _finalize():
        acc = acc_ref[...]
        if emit_stats:
            # Fused bn2 batch statistics (per-sample channel sum / sum-of-sq);
            # the tiny cross-batch reduction is finished in JAX.
            for nb in range(Nb):
                blk = acc[nb * Ho * Wo:(nb + 1) * Ho * Wo, :]
                sum_ref[nb] = jnp.sum(blk, axis=0, keepdims=True)
                sq_ref[nb] = jnp.sum(blk * blk, axis=0, keepdims=True)
        r = acc.reshape(Nb, Ho, Wo, Cop)
        if has_residual:
            r = r + res_ref[...]
        o_ref[...] = r.astype(o_ref.dtype)


def _bn_matmul_kernel(a_ref, scale_ref, shift_ref, b_ref, o_ref, acc_ref):
    # out = ReLU(A*scale + shift) @ B   (1x1 shortcut conv), full-width N.
    k = pl.program_id(1)

    @pl.when(k == 0)
    def _init():
        acc_ref[...] = jnp.zeros_like(acc_ref)

    a = jnp.maximum(a_ref[...] * scale_ref[...] + shift_ref[...], 0.0)
    acc_ref[...] += jnp.dot(a.astype(jnp.bfloat16), b_ref[...],
                            preferred_element_type=jnp.float32)

    @pl.when(k == pl.num_programs(1) - 1)
    def _finalize():
        o_ref[...] = acc_ref[...].astype(o_ref.dtype)


# --------------------------------- wrappers ----------------------------------

def batch_stats(x2d, tm=2048):
    """Per-channel (sum, sum_sq) over rows of x2d: (M, C) -> 2 x (1, C)."""
    M, C = x2d.shape
    tm = min(tm, _round_up(M, 8))
    Mp = _round_up(M, tm)
    if Mp != M:
        x2d = jnp.pad(x2d, ((0, Mp - M), (0, 0)))
    n = Mp // tm
    s, q = pl.pallas_call(
        _stats_kernel,
        grid=(n,),
        in_specs=[pl.BlockSpec((tm, C), lambda i: (i, 0))],
        out_specs=[pl.BlockSpec((1, C), lambda i: (i, 0)),
                   pl.BlockSpec((1, C), lambda i: (i, 0))],
        out_shape=[jax.ShapeDtypeStruct((n, C), jnp.float32),
                   jax.ShapeDtypeStruct((n, C), jnp.float32)],
        compiler_params=pltpu.CompilerParams(
            dimension_semantics=("parallel",),
            vmem_limit_bytes=_VMEM_LIMIT),
    )(x2d)
    return jnp.sum(s, axis=0, keepdims=True), jnp.sum(q, axis=0, keepdims=True)


def _affine_from_stats(s, q, count, gamma_p, beta_p, eps=_EPS):
    # Training-mode BN (batch stats, biased variance) folded into scale/shift.
    # TODO(synk): E[x^2]-E[x]^2 can cancel for large means; fine at these tols.
    mean = s / count
    var = jnp.maximum(q / count - mean * mean, 0.0)
    scale = gamma_p * jax.lax.rsqrt(var + eps)
    shift = beta_p - mean * scale
    return scale, shift


def _pick_nb(N, Ho, Wo, Cop, tci, Hin, Win, ss, has_res):
    """Largest batch fold (<=8) whose VMEM working set fits the budget."""
    fixed = 9 * tci * Cop * 2 * 2                      # double-buffered bf16 w
    per = (ss * Hin * Win * tci * 4 * 2                # input block (dbuf)
           + Ho * Wo * Cop * 4 * 2                     # output block (dbuf)
           + Ho * Wo * Cop * 4                         # f32 accumulator
           + (Ho * Wo * Cop * 4 * 2 if has_res else 0))
    budget = int(_VMEM_LIMIT * 0.6)
    for d in (8, 4, 2, 1):
        if N % d == 0 and fixed + d * per <= budget:
            return d
    return 1


def _roll_masks(H, W, Nb):
    row = jnp.arange(H)
    col = jnp.arange(W)
    ms = []
    for dy in range(3):
        rok = (row + dy - 1 >= 0) & (row + dy - 1 < H)
        for dx in range(3):
            cok = (col + dx - 1 >= 0) & (col + dx - 1 < W)
            m = (rok[:, None] & cok[None, :]).astype(jnp.float32)
            ms.append(jnp.tile(m.reshape(1, H * W), (Nb, 1)).reshape(Nb * H * W, 1))
    return jnp.stack(ms, axis=0)                       # (9, Nb*H*W, 1)


def _phase_masks(s, H, W, Hs, Ws):
    i = jnp.arange(Hs)
    j = jnp.arange(Ws)
    ms = []
    for r in range(s):
        for c in range(s):
            rows = i * s + r
            cols = j * s + c
            rok = (rows >= 1) & (rows <= H)
            cok = (cols >= 1) & (cols <= W)
            ms.append((rok[:, None] & cok[None, :]).astype(jnp.float32)[..., None])
    return jnp.stack(ms, axis=0)                       # (s*s, Hs, Ws, 1)


def _phase_split(x_cpad, s, Ho, Wo):
    """Spatially pad (p=1) and split into s*s stride phases: (s*s,N,Hs,Ws,C)."""
    xp = jnp.pad(x_cpad, ((0, 0), (1, 1), (1, 1), (0, 0)))
    ks = (3 + s - 1) // s
    Hs, Ws = Ho + ks - 1, Wo + ks - 1
    phases = []
    for r in range(s):
        for c in range(s):
            phases.append(xp[:, r:r + s * (Hs - 1) + 1:s,
                                c:c + s * (Ws - 1) + 1:s, :])
    return jnp.stack(phases, axis=0), Hs, Ws


def conv3x3_bn_relu(x_in, scale, shift, masks, w9, residual, *, mode, stride,
                    H, W, Ho, Wo, Nb, emit_stats, roll_sign):
    """3x3 conv (pad=1) of ReLU(BN(x)) with BN folded to scale/shift."""
    Cop = w9.shape[2]
    if mode == "roll":
        N = x_in.shape[0]
        Cip = x_in.shape[-1]
        tci = _channel_tile(Cip)
        x_spec = pl.BlockSpec((Nb, H, W, tci), lambda b, ci: (b, 0, 0, ci))
        mask_spec = pl.BlockSpec(masks.shape, lambda b, ci: (0, 0, 0))
    else:
        ss, N = x_in.shape[0], x_in.shape[1]
        Hs, Ws = x_in.shape[2], x_in.shape[3]
        Cip = x_in.shape[-1]
        tci = _channel_tile(Cip)
        x_spec = pl.BlockSpec((ss, Nb, Hs, Ws, tci),
                              lambda b, ci: (0, b, 0, 0, ci))
        mask_spec = pl.BlockSpec(masks.shape, lambda b, ci: (0, 0, 0, 0))
    assert N % Nb == 0 and Cip % tci == 0
    n_ci = Cip // tci
    has_residual = residual is not None

    kernel = functools.partial(
        _conv3x3_kernel, mode=mode, stride=stride, H=H, W=W, Ho=Ho, Wo=Wo,
        Nb=Nb, has_residual=has_residual, emit_stats=emit_stats,
        roll_sign=roll_sign)

    in_specs = [
        x_spec,
        pl.BlockSpec((1, tci), lambda b, ci: (0, ci)),
        pl.BlockSpec((1, tci), lambda b, ci: (0, ci)),
        mask_spec,
        pl.BlockSpec((9, tci, Cop), lambda b, ci: (0, ci, 0)),
    ]
    args = [x_in, scale, shift, masks, w9]
    if has_residual:
        in_specs.append(pl.BlockSpec((Nb, Ho, Wo, Cop),
                                     lambda b, ci: (b, 0, 0, 0)))
        args.append(residual)

    out_shape = [jax.ShapeDtypeStruct((N, Ho, Wo, Cop), jnp.float32)]
    out_specs = [pl.BlockSpec((Nb, Ho, Wo, Cop), lambda b, ci: (b, 0, 0, 0))]
    if emit_stats:
        out_shape += [jax.ShapeDtypeStruct((N, 1, Cop), jnp.float32)] * 2
        out_specs += [pl.BlockSpec((Nb, 1, Cop), lambda b, ci: (b, 0, 0))] * 2

    flops = 2 * N * Ho * Wo * 9 * Cip * Cop
    bytes_acc = (4 * (x_in.size + N * Ho * Wo * Cop + masks.size
                      + (residual.size if has_residual else 0))
                 + 2 * w9.size * (N // Nb))

    outs = pl.pallas_call(
        kernel,
        grid=(N // Nb, n_ci),
        in_specs=in_specs,
        out_specs=out_specs,
        out_shape=out_shape,
        scratch_shapes=[pltpu.VMEM((Nb * Ho * Wo, Cop), jnp.float32)],
        compiler_params=pltpu.CompilerParams(
            dimension_semantics=("parallel", "arbitrary"),
            vmem_limit_bytes=_VMEM_LIMIT),
        cost_estimate=pl.CostEstimate(flops=flops, transcendentals=0,
                                      bytes_accessed=bytes_acc),
    )(*args)
    if emit_stats:
        return outs[0], outs[1], outs[2]
    return outs[0]


def bn_relu_matmul(a2d, scale, shift, b_mat, *, tm=512):
    """ReLU(a2d*scale + shift) @ b_mat, K tiled, full-width output columns."""
    M, K = a2d.shape
    K2, Nc = b_mat.shape
    assert K == K2
    Mp = _round_up(M, 8)
    tm = min(tm, Mp)
    Mp = _round_up(Mp, tm)
    if Mp != M:
        a2d = jnp.pad(a2d, ((0, Mp - M), (0, 0)))
    tk = _channel_tile(K)
    grid = (Mp // tm, K // tk)
    out = pl.pallas_call(
        _bn_matmul_kernel,
        grid=grid,
        in_specs=[
            pl.BlockSpec((tm, tk), lambda i, k: (i, k)),
            pl.BlockSpec((1, tk), lambda i, k: (0, k)),
            pl.BlockSpec((1, tk), lambda i, k: (0, k)),
            pl.BlockSpec((tk, Nc), lambda i, k: (k, 0)),
        ],
        out_specs=pl.BlockSpec((tm, Nc), lambda i, k: (i, 0)),
        out_shape=jax.ShapeDtypeStruct((Mp, Nc), jnp.float32),
        scratch_shapes=[pltpu.VMEM((tm, Nc), jnp.float32)],
        compiler_params=pltpu.CompilerParams(
            dimension_semantics=("parallel", "arbitrary"),
            vmem_limit_bytes=_VMEM_LIMIT),
        cost_estimate=pl.CostEstimate(
            flops=2 * Mp * K * Nc, transcendentals=0,
            bytes_accessed=4 * (Mp * K + Mp * Nc) + 2 * K * Nc * (Mp // tm)),
    )(a2d, scale, shift, b_mat)
    return out[:M]


# ---------------------------- parameter packing ------------------------------

def _pack_w3x3(w_oihw, cip, cop):
    cout, cin = w_oihw.shape[0], w_oihw.shape[1]
    wt = jnp.transpose(w_oihw, (2, 3, 1, 0))            # (3,3,Cin,Cout)
    wt = jnp.pad(wt, ((0, 0), (0, 0), (0, cip - cin), (0, cop - cout)))
    return wt.reshape(9, cip, cop).astype(jnp.bfloat16)


def _pack_w1x1(w_oihw, cip, cop):
    cout, cin = w_oihw.shape[0], w_oihw.shape[1]
    wt = jnp.transpose(w_oihw[:, :, 0, 0], (1, 0))      # (Cin, Cout)
    return jnp.pad(wt, ((0, cip - cin), (0, cop - cout))).astype(jnp.bfloat16)


def _pad_vec(v, c):
    return jnp.pad(v, (0, c - v.shape[0])).reshape(1, c)


# -------------------------------- BasicBlock ---------------------------------

class BasicBlockPallas:
    """Pallas version of the WideResNet BasicBlock (training-mode BN)."""

    def __init__(self, key, in_planes, out_planes, stride, dropRate=0.0):
        self.in_planes = in_planes
        self.out_planes = out_planes
        self.stride = stride
        self.droprate = dropRate
        self.equalInOut = in_planes == out_planes
        # Identity shortcut only type-checks when spatial size is preserved.
        assert (not self.equalInOut) or stride == 1

        k = jax.random.split(key, 8)

        def kaiming(kk, shape):
            fan_in = shape[1] * shape[2] * shape[3]
            return (2.0 / fan_in) ** 0.5 * jax.random.normal(kk, shape, jnp.float32)

        self.conv1_w = kaiming(k[0], (out_planes, in_planes, 3, 3))
        self.conv2_w = kaiming(k[1], (out_planes, out_planes, 3, 3))
        self.bn1_gamma = 1.0 + 0.1 * jax.random.normal(k[2], (in_planes,), jnp.float32)
        self.bn1_beta = 0.1 * jax.random.normal(k[3], (in_planes,), jnp.float32)
        self.bn2_gamma = 1.0 + 0.1 * jax.random.normal(k[4], (out_planes,), jnp.float32)
        self.bn2_beta = 0.1 * jax.random.normal(k[5], (out_planes,), jnp.float32)
        self.convShortcut_w = (None if self.equalInOut
                               else kaiming(k[6], (out_planes, in_planes, 1, 1)))

        # Packed / lane-padded parameters (bf16 weights), done once.
        self.cip = _round_channels(in_planes)
        self.cop = _round_channels(out_planes)
        self.w1_9 = _pack_w3x3(self.conv1_w, self.cip, self.cop)
        self.w2_9 = _pack_w3x3(self.conv2_w, self.cop, self.cop)
        self.wsc_mat = (None if self.equalInOut
                        else _pack_w1x1(self.convShortcut_w, self.cip, self.cop))
        self.bn1_gamma_p = _pad_vec(self.bn1_gamma, self.cip)
        self.bn1_beta_p = _pad_vec(self.bn1_beta, self.cip)
        self.bn2_gamma_p = _pad_vec(self.bn2_gamma, self.cop)
        self.bn2_beta_p = _pad_vec(self.bn2_beta, self.cop)

        # pltpu.roll availability / direction (decided once, outside jit).
        self.roll_sign = _probe_roll_sign()

    def __call__(self, x_nchw):
        x = jnp.transpose(x_nchw, (0, 2, 3, 1)).astype(jnp.float32)   # NHWC
        N, H, W, Cin = x.shape
        cip, cop, cout, s = self.cip, self.cop, self.out_planes, self.stride
        Ho = (H + 2 - 3) // s + 1
        Wo = (W + 2 - 3) // s + 1
        use_roll = self.roll_sign is not None

        x_cp = x if cip == Cin else jnp.pad(
            x, ((0, 0), (0, 0), (0, 0), (0, cip - Cin)))

        # bn1 batch statistics -> folded per-channel affine.
        s1, q1 = batch_stats(x_cp.reshape(-1, cip))
        scale1, shift1 = _affine_from_stats(s1, q1, N * H * W,
                                            self.bn1_gamma_p, self.bn1_beta_p)

        tci1 = _channel_tile(cip)
        tci2 = _channel_tile(cop)

        # conv1: BN1+ReLU fused in the prologue; bn2 statistics fused into the
        # epilogue (no separate HBM sweep over conv1's output).
        if s == 1 and use_roll:
            nb1 = _pick_nb(N, Ho, Wo, cop, tci1, H, W, 1, False)
            y1, s2p, q2p = conv3x3_bn_relu(
                x_cp, scale1, shift1, _roll_masks(H, W, nb1), self.w1_9, None,
                mode="roll", stride=1, H=H, W=W, Ho=Ho, Wo=Wo, Nb=nb1,
                emit_stats=True, roll_sign=self.roll_sign)
        else:
            xph, Hs, Ws = _phase_split(x_cp, s, Ho, Wo)
            nb1 = _pick_nb(N, Ho, Wo, cop, tci1, Hs, Ws, s * s, False)
            y1, s2p, q2p = conv3x3_bn_relu(
                xph, scale1, shift1, _phase_masks(s, H, W, Hs, Ws), self.w1_9,
                None, mode="padded", stride=s, H=H, W=W, Ho=Ho, Wo=Wo, Nb=nb1,
                emit_stats=True, roll_sign=self.roll_sign)

        s2 = jnp.sum(s2p, axis=(0, 1)).reshape(1, cop)
        q2 = jnp.sum(q2p, axis=(0, 1)).reshape(1, cop)
        scale2, shift2 = _affine_from_stats(s2, q2, N * Ho * Wo,
                                            self.bn2_gamma_p, self.bn2_beta_p)

        # Shortcut branch.
        if self.equalInOut:
            skip = x_cp
        else:
            a_sub = x_cp[:, ::s, ::s, :].reshape(-1, cip)
            skip = bn_relu_matmul(a_sub, scale1, shift1,
                                  self.wsc_mat).reshape(N, Ho, Wo, cop)

        # TODO(synk): dropout path (droprate > 0, training) not implemented;
        # the module's default (and this test) uses dropRate=0.0.

        # conv2: BN2+ReLU fused in the prologue, residual add fused in epilogue.
        nb2 = _pick_nb(N, Ho, Wo, cop, tci2, Ho, Wo, 1, True)
        if use_roll:
            out = conv3x3_bn_relu(
                y1, scale2, shift2, _roll_masks(Ho, Wo, nb2), self.w2_9, skip,
                mode="roll", stride=1, H=Ho, W=Wo, Ho=Ho, Wo=Wo, Nb=nb2,
                emit_stats=False, roll_sign=self.roll_sign)
        else:
            yph, Hs2, Ws2 = _phase_split(y1, 1, Ho, Wo)
            out = conv3x3_bn_relu(
                yph, scale2, shift2, _phase_masks(1, Ho, Wo, Hs2, Ws2),
                self.w2_9, skip, mode="padded", stride=1, H=Ho, W=Wo, Ho=Ho,
                Wo=Wo, Nb=nb2, emit_stats=False, roll_sign=self.roll_sign)

        out = out[..., :cout]
        return jnp.transpose(out, (0, 3, 1, 2))


# ----------------------------- pure-JAX reference ----------------------------

def reference_forward(blk, x):
    def bn_train(t, gamma, beta):
        mean = jnp.mean(t, axis=(0, 2, 3), keepdims=True)
        var = jnp.var(t, axis=(0, 2, 3), keepdims=True)
        return ((t - mean) * jax.lax.rsqrt(var + _EPS)
                * gamma.reshape(1, -1, 1, 1) + beta.reshape(1, -1, 1, 1))

    def conv(t, w, stride, pad):
        return jax.lax.conv_general_dilated(
            t, w, (stride, stride), [(pad, pad), (pad, pad)],
            dimension_numbers=("NCHW", "OIHW", "NCHW"))

    a = jax.nn.relu(bn_train(x, blk.bn1_gamma, blk.bn1_beta))
    out = conv(a, blk.conv1_w, blk.stride, 1)
    out = jax.nn.relu(bn_train(out, blk.bn2_gamma, blk.bn2_beta))
    out = conv(out, blk.conv2_w, 1, 1)
    skip = x if blk.equalInOut else conv(a, blk.convShortcut_w, blk.stride, 0)
    return skip + out


# ------------------------------------ main -----------------------------------

if __name__ == "__main__":
    root = jax.random.PRNGKey(0)
    k_x1, k_x2, k_b1, k_b2 = jax.random.split(root, 4)

    # Case 1: channel-changing, strided block (1x1 conv shortcut, stride 2).
    x1 = jax.random.normal(k_x1, (2, 4, 16, 16), jnp.float32)
    blk1 = BasicBlockPallas(k_b1, in_planes=4, out_planes=8, stride=2, dropRate=0.0)
    y1 = jax.block_until_ready(jax.jit(blk1.__call__)(x1))
    r1 = reference_forward(blk1, x1)
    assert y1.shape == (2, 8, 8, 8), y1.shape

    # Case 2: equal in/out channels, stride 1 (identity shortcut).
    x2 = jax.random.normal(k_x2, (2, 8, 16, 16), jnp.float32)
    blk2 = BasicBlockPallas(k_b2, in_planes=8, out_planes=8, stride=1, dropRate=0.0)
    y2 = jax.block_until_ready(jax.jit(blk2.__call__)(x2))
    r2 = reference_forward(blk2, x2)
    assert y2.shape == (2, 8, 16, 16), y2.shape

    err1 = float(jnp.max(jnp.abs(y1 - r1)))
    err2 = float(jnp.max(jnp.abs(y2 - r2)))
    assert jnp.allclose(y1, r1, atol=6e-2, rtol=6e-2), err1
    assert jnp.allclose(y2, r2, atol=6e-2, rtol=6e-2), err2

    print("KERNEL_OK")
</pallas_src>

<mosaic_0001>
module attributes {stable_mosaic.version = 11 : i64} {
  func.func @kern(%arg0: memref<256x128xf32, #tpu.memory_space<vmem>>, %arg1: memref<256x128xf32, #tpu.memory_space<vmem>>) attributes {dimension_semantics = [], scalar_prefetch = 0 : i64, scratch_operands = 0 : i64, tpu.core_type = #tpu.core_type<tc>} {
    %c0 = arith.constant 0 : index
    %c0_0 = arith.constant 0 : index
    %0 = vector.load %arg0[%c0, %c0_0] : memref<256x128xf32, #tpu.memory_space<vmem>>, vector<256x128xf32>
    %c17_i32 = arith.constant 17 : i32
    %1 = tpu.dynamic_rotate %0 by %c17_i32 dim 0 : vector<256x128xf32>, i32 -> vector<256x128xf32>
    %c0_1 = arith.constant 0 : index
    %c0_2 = arith.constant 0 : index
    %2 = vector.load %arg1[%c0_1, %c0_2] : memref<256x128xf32, #tpu.memory_space<vmem>>, vector<256x128xf32>
    tpu.vector_store %arg1[%c0_1, %c0_2], %1 {strides = array<i32>} : memref<256x128xf32, #tpu.memory_space<vmem>>, vector<256x128xf32>,
    return
  }
}

module attributes {stable_mosaic.version = 11 : i64} {
  func.func @_stats_kernel(%arg0: i32, %arg1: memref<512x128xf32, #tpu.memory_space<vmem>>, %arg2: memref<1x128xf32, #tpu.memory_space<vmem>>, %arg3: memref<1x128xf32, #tpu.memory_space<vmem>>) attributes {dimension_semantics = [#tpu.dimension_semantics<parallel>], iteration_bounds = array<i64: 1>, scalar_prefetch = 0 : i64, scratch_operands = 0 : i64, tpu.core_type = #tpu.core_type<tc>, window_params = [{transform_indices = @transform_0, window_bounds = array<i64: 512, 128>}, {transform_indices = @transform_1, window_bounds = array<i64: 1, 128>}, {transform_indices = @transform_2, window_bounds = array<i64: 1, 128>}]} {
    %c0 = arith.constant 0 : index
    %c0_0 = arith.constant 0 : index
    %0 = vector.load %arg1[%c0, %c0_0] : memref<512x128xf32, #tpu.memory_space<vmem>>, vector<512x128xf32>
    %cst = arith.constant dense<0.000000e+00> : vector<128xf32>
    %1 = vector.multi_reduction <add>, %0, %cst [0] : vector<512x128xf32> to vector<128xf32>
    %2 = vector.shape_cast %1 : vector<128xf32> to vector<1x128xf32>
    %c0_1 = arith.constant 0 : index
    %c0_2 = arith.constant 0 : index
    %3 = vector.load %arg2[%c0_1, %c0_2] : memref<1x128xf32, #tpu.memory_space<vmem>>, vector<1x128xf32>
    tpu.vector_store %arg2[%c0_1, %c0_2], %2 {strides = array<i32>} : memref<1x128xf32, #tpu.memory_space<vmem>>, vector<1x128xf32>,
    %4 = arith.mulf %0, %0 : vector<512x128xf32>
    %cst_3 = arith.constant dense<0.000000e+00> : vector<128xf32>
    %5 = vector.multi_reduction <add>, %4, %cst_3 [0] : vector<512x128xf32> to vector<128xf32>
    %6 = vector.shape_cast %5 : vector<128xf32> to vector<1x128xf32>
    %c0_4 = arith.constant 0 : index
    %c0_5 = arith.constant 0 : index
    %7 = vector.load %arg3[%c0_4, %c0_5] : memref<1x128xf32, #tpu.memory_space<vmem>>, vector<1x128xf32>
    tpu.vector_store %arg3[%c0_4, %c0_5], %6 {strides = array<i32>} : memref<1x128xf32, #tpu.memory_space<vmem>>, vector<1x128xf32>,
    return
  }
  func.func @transform_0(%arg0: i32) -> (i32, i32) {
    %c0_i32 = arith.constant 0 : i32
    %c0_i32_0 = arith.constant 0 : i32
    return %arg0, %c0_i32 : i32, i32
  }
  func.func @transform_1(%arg0: i32) -> (i32, i32) {
    %c0_i32 = arith.constant 0 : i32
    %c0_i32_0 = arith.constant 0 : i32
    return %arg0, %c0_i32 : i32, i32
  }
  func.func @transform_2(%arg0: i32) -> (i32, i32) {
    %c0_i32 = arith.constant 0 : i32
    %c0_i32_0 = arith.constant 0 : i32
    return %arg0, %c0_i32 : i32, i32
  }
}

module attributes {stable_mosaic.version = 11 : i64} {
  func.func @_bn_matmul_kernel(%arg0: i32, %arg1: i32, %arg2: memref<128x128xf32, #tpu.memory_space<vmem>>, %arg3: memref<1x128xf32, #tpu.memory_space<vmem>>, %arg4: memref<1x128xf32, #tpu.memory_space<vmem>>, %arg5: memref<128x128xbf16, #tpu.memory_space<vmem>>, %arg6: memref<128x128xf32, #tpu.memory_space<vmem>>, %arg7: memref<128x128xf32, #tpu.memory_space<vmem>>) attributes {dimension_semantics = [#tpu.dimension_semantics<parallel>, #tpu.dimension_semantics<arbitrary>], iteration_bounds = array<i64: 1, 1>, scalar_prefetch = 0 : i64, scratch_operands = 1 : i64, tpu.core_type = #tpu.core_type<tc>, window_params = [{transform_indices = @transform_0, window_bounds = array<i64: 128, 128>}, {transform_indices = @transform_1, window_bounds = array<i64: 1, 128>}, {transform_indices = @transform_2, window_bounds = array<i64: 1, 128>}, {transform_indices = @transform_3, window_bounds = array<i64: 128, 128>}, {transform_indices = @transform_4, window_bounds = array<i64: 128, 128>}]} {
    %c0_i32 = arith.constant 0 : i32
    %0 = arith.cmpi eq, %arg1, %c0_i32 : i32
    %1 = arith.extui %0 : i1 to i32
    %c0_i32_0 = arith.constant 0 : i32
    %2 = arith.cmpi ne, %1, %c0_i32_0 : i32
    scf.if %2 {
      %cst_15 = arith.constant 0.000000e+00 : f32
      %21 = vector.broadcast %cst_15 : f32 to vector<128x128xf32>
      %c0_16 = arith.constant 0 : index
      %c0_17 = arith.constant 0 : index
      %22 = vector.load %arg7[%c0_16, %c0_17] : memref<128x128xf32, #tpu.memory_space<vmem>>, vector<128x128xf32>
      tpu.vector_store %arg7[%c0_16, %c0_17], %21 {strides = array<i32>} : memref<128x128xf32, #tpu.memory_space<vmem>>, vector<128x128xf32>,
    } else {
    }
    %c0 = arith.constant 0 : index
    %c0_1 = arith.constant 0 : index
    %3 = vector.load %arg2[%c0, %c0_1] : memref<128x128xf32, #tpu.memory_space<vmem>>, vector<128x128xf32>
    %c0_2 = arith.constant 0 : index
    %c0_3 = arith.constant 0 : index
    %4 = vector.load %arg3[%c0_2, %c0_3] : memref<1x128xf32, #tpu.memory_space<vmem>>, vector<1x128xf32>
    %5 = vector.broadcast %4 : vector<1x128xf32> to vector<128x128xf32>
    %6 = arith.mulf %3, %5 : vector<128x128xf32>
    %c0_4 = arith.constant 0 : index
    %c0_5 = arith.constant 0 : index
    %7 = vector.load %arg4[%c0_4, %c0_5] : memref<1x128xf32, #tpu.memory_space<vmem>>, vector<1x128xf32>
    %8 = vector.broadcast %7 : vector<1x128xf32> to vector<128x128xf32>
    %9 = arith.addf %6, %8 : vector<128x128xf32>
    %cst = arith.constant 0.000000e+00 : f32
    %10 = vector.broadcast %cst : f32 to vector<128x128xf32>
    %11 = arith.maximumf %9, %10 : vector<128x128xf32>
    %c0_6 = arith.constant 0 : index
    %c0_7 = arith.constant 0 : index
    %12 = vector.load %arg7[%c0_6, %c0_7] : memref<128x128xf32, #tpu.memory_space<vmem>>, vector<128x128xf32>
    %13 = arith.truncf %11 : vector<128x128xf32> to vector<128x128xbf16>
    %c0_8 = arith.constant 0 : index
    %c0_9 = arith.constant 0 : index
    %14 = vector.load %arg5[%c0_8, %c0_9] : memref<128x128xbf16, #tpu.memory_space<vmem>>, vector<128x128xbf16>
    %cst_10 = arith.constant dense<0.000000e+00> : vector<128x128xf32>
    %15 = tpu.matmul %13, %14, %cst_10 {dimension_numbers = #tpu.dot_dimension_numbers<[1], [0], [0], [1], [0, 0, 1, 1], [], []>} : vector<128x128xbf16>, vector<128x128xbf16>, vector<128x128xf32> -> vector<128x128xf32>
    %16 = arith.addf %12, %15 : vector<128x128xf32>
    %c0_11 = arith.constant 0 : index
    %c0_12 = arith.constant 0 : index
    %17 = vector.load %arg7[%c0_11, %c0_12] : memref<128x128xf32, #tpu.memory_space<vmem>>, vector<128x128xf32>
    tpu.vector_store %arg7[%c0_11, %c0_12], %16 {strides = array<i32>} : memref<128x128xf32, #tpu.memory_space<vmem>>, vector<128x128xf32>,
    %c0_i32_13 = arith.constant 0 : i32
    %18 = arith.cmpi eq, %arg1, %c0_i32_13 : i32
    %19 = arith.extui %18 : i1 to i32
    %c0_i32_14 = arith.constant 0 : i32
    %20 = arith.cmpi ne, %19, %c0_i32_14 : i32
    scf.if %20 {
      %c0_15 = arith.constant 0 : index
      %c0_16 = arith.constant 0 : index
      %21 = vector.load %arg7[%c0_15, %c0_16] : memref<128x128xf32, #tpu.memory_space<vmem>>, vector<128x128xf32>
      %c0_17 = arith.constant 0 : index
      %c0_18 = arith.constant 0 : index
      %22 = vector.load %arg6[%c0_17, %c0_18] : memref<128x128xf32, #tpu.memory_space<vmem>>, vector<128x128xf32>
      tpu.vector_store %arg6[%c0_17, %c0_18], %21 {strides = array<i32>} : memref<128x128xf32, #tpu.memory_space<vmem>>, vector<128x128xf32>,
    } else {
    }
    return
  }
  func.func @transform_0(%arg0: i32, %arg1: i32) -> (i32, i32) {
    %c0_i32 = arith.constant 0 : i32
    return %arg0, %arg1 : i32, i32
  }
  func.func @transform_1(%arg0: i32, %arg1: i32) -> (i32, i32) {
    %c0_i32 = arith.constant 0 : i32
    %c0_i32_0 = arith.constant 0 : i32
    return %c0_i32, %arg1 : i32, i32
  }
  func.func @transform_2(%arg0: i32, %arg1: i32) -> (i32, i32) {
    %c0_i32 = arith.constant 0 : i32
    %c0_i32_0 = arith.constant 0 : i32
    return %c0_i32, %arg1 : i32, i32
  }
  func.func @transform_3(%arg0: i32, %arg1: i32) -> (i32, i32) {
    %c0_i32 = arith.constant 0 : i32
    %c0_i32_0 = arith.constant 0 : i32
    return %arg1, %c0_i32 : i32, i32
  }
  func.func @transform_4(%arg0: i32, %arg1: i32) -> (i32, i32) {
    %c0_i32 = arith.constant 0 : i32
    %c0_i32_0 = arith.constant 0 : i32
    return %arg0, %c0_i32 : i32, i32
  }
}

module attributes {stable_mosaic.version = 11 : i64} {
  func.func @_conv3x3_kernel(%arg0: i32, %arg1: i32, %arg2: memref<4x2x9x9x128xf32, #tpu.memory_space<vmem>>, %arg3: memref<1x128xf32, #tpu.memory_space<vmem>>, %arg4: memref<1x128xf32, #tpu.memory_space<vmem>>, %arg5: memref<4x9x9x1xf32, #tpu.memory_space<vmem>>, %arg6: memref<9x128x128xbf16, #tpu.memory_space<vmem>>, %arg7: memref<2x8x8x128xf32, #tpu.memory_space<vmem>>, %arg8: memref<2x1x128xf32, #tpu.memory_space<vmem>>, %arg9: memref<2x1x128xf32, #tpu.memory_space<vmem>>, %arg10: memref<128x128xf32, #tpu.memory_space<vmem>>) attributes {dimension_semantics = [#tpu.dimension_semantics<parallel>, #tpu.dimension_semantics<arbitrary>], iteration_bounds = array<i64: 1, 1>, scalar_prefetch = 0 : i64, scratch_operands = 1 : i64, tpu.core_type = #tpu.core_type<tc>, window_params = [{transform_indices = @transform_0, window_bounds = array<i64: 4, 2, 9, 9, 128>}, {transform_indices = @transform_1, window_bounds = array<i64: 1, 128>}, {transform_indices = @transform_2, window_bounds = array<i64: 1, 128>}, {pipeline_mode = #tpu.pipeline_mode<synchronous>, transform_indices = @transform_3, window_bounds = array<i64: 4, 9, 9, 1>}, {transform_indices = @transform_4, window_bounds = array<i64: 9, 128, 128>}, {transform_indices = @transform_5, window_bounds = array<i64: 2, 8, 8, 128>}, {transform_indices = @transform_6, window_bounds = array<i64: 2, 1, 128>}, {transform_indices = @transform_7, window_bounds = array<i64: 2, 1, 128>}]} {
    %c0_i32 = arith.constant 0 : i32
    %0 = arith.cmpi eq, %arg1, %c0_i32 : i32
    %1 = arith.extui %0 : i1 to i32
    %c0_i32_0 = arith.constant 0 : i32
    %2 = arith.cmpi ne, %1, %c0_i32_0 : i32
    scf.if %2 {
      %cst_109 = arith.constant 0.000000e+00 : f32
      %143 = vector.broadcast %cst_109 : f32 to vector<128x128xf32>
      %c0_110 = arith.constant 0 : index
      %c0_111 = arith.constant 0 : index
      %144 = vector.load %arg10[%c0_110, %c0_111] : memref<128x128xf32, #tpu.memory_space<vmem>>, vector<128x128xf32>
      tpu.vector_store %arg10[%c0_110, %c0_111], %143 {strides = array<i32>} : memref<128x128xf32, #tpu.memory_space<vmem>>, vector<128x128xf32>,
    } else {
    }
    %c0 = arith.constant 0 : index
    %c0_1 = arith.constant 0 : index
    %3 = vector.load %arg3[%c0, %c0_1] : memref<1x128xf32, #tpu.memory_space<vmem>>, vector<1x128xf32>
    %c0_2 = arith.constant 0 : index
    %c0_3 = arith.constant 0 : index
    %4 = vector.load %arg4[%c0_2, %c0_3] : memref<1x128xf32, #tpu.memory_space<vmem>>, vector<1x128xf32>
    %5 = vector.shape_cast %3 : vector<1x128xf32> to vector<1x1x1x128xf32>
    %6 = vector.shape_cast %4 : vector<1x128xf32> to vector<1x1x1x128xf32>
    %c0_4 = arith.constant 0 : index
    %c0_5 = arith.constant 0 : index
    %c0_6 = arith.constant 0 : index
    %c0_7 = arith.constant 0 : index
    %c0_8 = arith.constant 0 : index
    %7 = vector.load %arg2[%c0_4, %c0_5, %c0_6, %c0_7, %c0_8] : memref<4x2x9x9x128xf32, #tpu.memory_space<vmem>>, vector<1x2x9x9x128xf32>
    %8 = vector.shape_cast %7 : vector<1x2x9x9x128xf32> to vector<2x9x9x128xf32>
    %9 = vector.broadcast %5 : vector<1x1x1x128xf32> to vector<2x9x9x128xf32>
    %10 = arith.mulf %8, %9 : vector<2x9x9x128xf32>
    %11 = vector.broadcast %6 : vector<1x1x1x128xf32> to vector<2x9x9x128xf32>
    %12 = arith.addf %10, %11 : vector<2x9x9x128xf32>
    %cst = arith.constant 0.000000e+00 : f32
    %13 = vector.broadcast %cst : f32 to vector<2x9x9x128xf32>
    %14 = arith.maximumf %12, %13 : vector<2x9x9x128xf32>
    %c0_9 = arith.constant 0 : index
    %c0_10 = arith.constant 0 : index
    %c0_11 = arith.constant 0 : index
    %c0_12 = arith.constant 0 : index
    %15 = vector.load %arg5[%c0_9, %c0_10, %c0_11, %c0_12] : memref<4x9x9x1xf32, #tpu.memory_space<vmem>>, vector<1x9x9x1xf32>
    %16 = vector.shape_cast %15 : vector<1x9x9x1xf32> to vector<9x9x1xf32>
    %17 = vector.shape_cast %16 : vector<9x9x1xf32> to vector<1x9x9x1xf32>
    %18 = vector.broadcast %17 : vector<1x9x9x1xf32> to vector<2x9x9x128xf32>
    %19 = arith.mulf %14, %18 : vector<2x9x9x128xf32>
    %c1 = arith.constant 1 : index
    %c0_13 = arith.constant 0 : index
    %c0_14 = arith.constant 0 : index
    %c0_15 = arith.constant 0 : index
    %c0_16 = arith.constant 0 : index
    %20 = vector.load %arg2[%c1, %c0_13, %c0_14, %c0_15, %c0_16] : memref<4x2x9x9x128xf32, #tpu.memory_space<vmem>>, vector<1x2x9x9x128xf32>
    %21 = vector.shape_cast %20 : vector<1x2x9x9x128xf32> to vector<2x9x9x128xf32>
    %22 = vector.broadcast %5 : vector<1x1x1x128xf32> to vector<2x9x9x128xf32>
    %23 = arith.mulf %21, %22 : vector<2x9x9x128xf32>
    %24 = vector.broadcast %6 : vector<1x1x1x128xf32> to vector<2x9x9x128xf32>
    %25 = arith.addf %23, %24 : vector<2x9x9x128xf32>
    %cst_17 = arith.constant 0.000000e+00 : f32
    %26 = vector.broadcast %cst_17 : f32 to vector<2x9x9x128xf32>
    %27 = arith.maximumf %25, %26 : vector<2x9x9x128xf32>
    %c1_18 = arith.constant 1 : index
    %c0_19 = arith.constant 0 : index
    %c0_20 = arith.constant 0 : index
    %c0_21 = arith.constant 0 : index
    %28 = vector.load %arg5[%c1_18, %c0_19, %c0_20, %c0_21] : memref<4x9x9x1xf32, #tpu.memory_space<vmem>>, vector<1x9x9x1xf32>
    %29 = vector.shape_cast %28 : vector<1x9x9x1xf32> to vector<9x9x1xf32>
    %30 = vector.shape_cast %29 : vector<9x9x1xf32> to vector<1x9x9x1xf32>
    %31 = vector.broadcast %30 : vector<1x9x9x1xf32> to vector<2x9x9x128xf32>
    %32 = arith.mulf %27, %31 : vector<2x9x9x128xf32>
    %c2 = arith.constant 2 : index
    %c0_22 = arith.constant 0 : index
    %c0_23 = arith.constant 0 : index
    %c0_24 = arith.constant 0 : index
    %c0_25 = arith.constant 0 : index
    %33 = vector.load %arg2[%c2, %c0_22, %c0_23, %c0_24, %c0_25] : memref<4x2x9x9x128xf32, #tpu.memory_space<vmem>>, vector<1x2x9x9x128xf32>
    %34 = vector.shape_cast %33 : vector<1x2x9x9x128xf32> to vector<2x9x9x128xf32>
    %35 = vector.broadcast %5 : vector<1x1x1x128xf32> to vector<2x9x9x128xf32>
    %36 = arith.mulf %34, %35 : vector<2x9x9x128xf32>
    %37 = vector.broadcast %6 : vector<1x1x1x128xf32> to vector<2x9x9x128xf32>
    %38 = arith.addf %36, %37 : vector<2x9x9x128xf32>
    %cst_26 = arith.constant 0.000000e+00 : f32
    %39 = vector.broadcast %cst_26 : f32 to vector<2x9x9x128xf32>
    %40 = arith.maximumf %38, %39 : vector<2x9x9x128xf32>
    %c2_27 = arith.constant 2 : index
    %c0_28 = arith.constant 0 : index
    %c0_29 = arith.constant 0 : index
    %c0_30 = arith.constant 0 : index
    %41 = vector.load %arg5[%c2_27, %c0_28, %c0_29, %c0_30] : memref<4x9x9x1xf32, #tpu.memory_space<vmem>>, vector<1x9x9x1xf32>
    %42 = vector.shape_cast %41 : vector<1x9x9x1xf32> to vector<9x9x1xf32>
    %43 = vector.shape_cast %42 : vector<9x9x1xf32> to vector<1x9x9x1xf32>
    %44 = vector.broadcast %43 : vector<1x9x9x1xf32> to vector<2x9x9x128xf32>
    %45 = arith.mulf %40, %44 : vector<2x9x9x128xf32>
    %c3 = arith.constant 3 : index
    %c0_31 = arith.constant 0 : index
    %c0_32 = arith.constant 0 : index
    %c0_33 = arith.constant 0 : index
    %c0_34 = arith.constant 0 : index
    %46 = vector.load %arg2[%c3, %c0_31, %c0_32, %c0_33, %c0_34] : memref<4x2x9x9x128xf32, #tpu.memory_space<vmem>>, vector<1x2x9x9x128xf32>
    %47 = vector.shape_cast %46 : vector<1x2x9x9x128xf32> to vector<2x9x9x128xf32>
    %48 = vector.broadcast %5 : vector<1x1x1x128xf32> to vector<2x9x9x128xf32>
    %49 = arith.mulf %47, %48 : vector<2x9x9x128xf32>
    %50 = vector.broadcast %6 : vector<1x1x1x128xf32> to vector<2x9x9x128xf32>
    %51 = arith.addf %49, %50 : vector<2x9x9x128xf32>
    %cst_35 = arith.constant 0.000000e+00 : f32
    %52 = vector.broadcast %cst_35 : f32 to vector<2x9x9x128xf32>
    %53 = arith.maximumf %51, %52 : vector<2x9x9x128xf32>
    %c3_36 = arith.constant 3 : index
    %c0_37 = arith.constant 0 : index
    %c0_38 = arith.constant 0 : index
    %c0_39 = arith.constant 0 : index
    %54 = vector.load %arg5[%c3_36, %c0_37, %c0_38, %c0_39] : memref<4x9x9x1xf32, #tpu.memory_space<vmem>>, vector<1x9x9x1xf32>
    %55 = vector.shape_cast %54 : vector<1x9x9x1xf32> to vector<9x9x1xf32>
    %56 = vector.shape_cast %55 : vector<9x9x1xf32> to vector<1x9x9x1xf32>
    %57 = vector.broadcast %56 : vector<1x9x9x1xf32> to vector<2x9x9x128xf32>
    %58 = arith.mulf %53, %57 : vector<2x9x9x128xf32>
    %59 = vector.extract_strided_slice %19 {offsets = [0, 0, 0, 0], sizes = [2, 8, 8, 128], strides = [1, 1, 1, 1]} : vector<2x9x9x128xf32> to vector<2x8x8x128xf32>
    %60 = vector.shape_cast %59 : vector<2x8x8x128xf32> to vector<128x128xf32>
    %c0_40 = arith.constant 0 : index
    %c0_41 = arith.constant 0 : index
    %61 = vector.load %arg10[%c0_40, %c0_41] : memref<128x128xf32, #tpu.memory_space<vmem>>, vector<128x128xf32>
    %62 = arith.truncf %60 : vector<128x128xf32> to vector<128x128xbf16>
    %c0_42 = arith.constant 0 : index
    %c0_43 = arith.constant 0 : index
    %c0_44 = arith.constant 0 : index
    %63 = vector.load %arg6[%c0_42, %c0_43, %c0_44] : memref<9x128x128xbf16, #tpu.memory_space<vmem>>, vector<1x128x128xbf16>
    %64 = vector.shape_cast %63 : vector<1x128x128xbf16> to vector<128x128xbf16>
    %cst_45 = arith.constant dense<0.000000e+00> : vector<128x128xf32>
    %65 = tpu.matmul %62, %64, %cst_45 {dimension_numbers = #tpu.dot_dimension_numbers<[1], [0], [0], [1], [0, 0, 1, 1], [], []>} : vector<128x128xbf16>, vector<128x128xbf16>, vector<128x128xf32> -> vector<128x128xf32>
    %66 = arith.addf %61, %65 : vector<128x128xf32>
    %c0_46 = arith.constant 0 : index
    %c0_47 = arith.constant 0 : index
    %67 = vector.load %arg10[%c0_46, %c0_47] : memref<128x128xf32, #tpu.memory_space<vmem>>, vector<128x128xf32>
    tpu.vector_store %arg10[%c0_46, %c0_47], %66 {strides = array<i32>} : memref<128x128xf32, #tpu.memory_space<vmem>>, vector<128x128xf32>,
    %68 = vector.extract_strided_slice %32 {offsets = [0, 0, 0, 0], sizes = [2, 8, 8, 128], strides = [1, 1, 1, 1]} : vector<2x9x9x128xf32> to vector<2x8x8x128xf32>
    %69 = vector.shape_cast %68 : vector<2x8x8x128xf32> to vector<128x128xf32>
    %c0_48 = arith.constant 0 : index
    %c0_49 = arith.constant 0 : index
    %70 = vector.load %arg10[%c0_48, %c0_49] : memref<128x128xf32, #tpu.memory_space<vmem>>, vector<128x128xf32>
    %71 = arith.truncf %69 : vector<128x128xf32> to vector<128x128xbf16>
    %c1_50 = arith.constant 1 : index
    %c0_51 = arith.constant 0 : index
    %c0_52 = arith.constant 0 : index
    %72 = vector.load %arg6[%c1_50, %c0_51, %c0_52] : memref<9x128x128xbf16, #tpu.memory_space<vmem>>, vector<1x128x128xbf16>
    %73 = vector.shape_cast %72 : vector<1x128x128xbf16> to vector<128x128xbf16>
    %cst_53 = arith.constant dense<0.000000e+00> : vector<128x128xf32>
    %74 = tpu.matmul %71, %73, %cst_53 {dimension_numbers = #tpu.dot_dimension_numbers<[1], [0], [0], [1], [0, 0, 1, 1], [], []>} : vector<128x128xbf16>, vector<128x128xbf16>, vector<128x128xf32> -> vector<128x128xf32>
    %75 = arith.addf %70, %74 : vector<128x128xf32>
    %c0_54 = arith.constant 0 : index
    %c0_55 = arith.constant 0 : index
    %76 = vector.load %arg10[%c0_54, %c0_55] : memref<128x128xf32, #tpu.memory_space<vmem>>, vector<128x128xf32>
    tpu.vector_store %arg10[%c0_54, %c0_55], %75 {strides = array<i32>} : memref<128x128xf32, #tpu.memory_space<vmem>>, vector<128x128xf32>,
    %77 = vector.extract_strided_slice %19 {offsets = [0, 0, 1, 0], sizes = [2, 8, 8, 128], strides = [1, 1, 1, 1]} : vector<2x9x9x128xf32> to vector<2x8x8x128xf32>
    %78 = vector.shape_cast %77 : vector<2x8x8x128xf32> to vector<128x128xf32>
    %c0_56 = arith.constant 0 : index
    %c0_57 = arith.constant 0 : index
    %79 = vector.load %arg10[%c0_56, %c0_57] : memref<128x128xf32, #tpu.memory_space<vmem>>, vector<128x128xf32>
    %80 = arith.truncf %78 : vector<128x128xf32> to vector<128x128xbf16>
    %c2_58 = arith.constant 2 : index
    %c0_59 = arith.constant 0 : index
    %c0_60 = arith.constant 0 : index
    %81 = vector.load %arg6[%c2_58, %c0_59, %c0_60] : memref<9x128x128xbf16, #tpu.memory_space<vmem>>, vector<1x128x128xbf16>
    %82 = vector.shape_cast %81 : vector<1x128x128xbf16> to vector<128x128xbf16>
    %cst_61 = arith.constant dense<0.000000e+00> : vector<128x128xf32>
    %83 = tpu.matmul %80, %82, %cst_61 {dimension_numbers = #tpu.dot_dimension_numbers<[1], [0], [0], [1], [0, 0, 1, 1], [], []>} : vector<128x128xbf16>, vector<128x128xbf16>, vector<128x128xf32> -> vector<128x128xf32>
    %84 = arith.addf %79, %83 : vector<128x128xf32>
    %c0_62 = arith.constant 0 : index
    %c0_63 = arith.constant 0 : index
    %85 = vector.load %arg10[%c0_62, %c0_63] : memref<128x128xf32, #tpu.memory_space<vmem>>, vector<128x128xf32>
    tpu.vector_store %arg10[%c0_62, %c0_63], %84 {strides = array<i32>} : memref<128x128xf32, #tpu.memory_space<vmem>>, vector<128x128xf32>,
    %86 = vector.extract_strided_slice %45 {offsets = [0, 0, 0, 0], sizes = [2, 8, 8, 128], strides = [1, 1, 1, 1]} : vector<2x9x9x128xf32> to vector<2x8x8x128xf32>
    %87 = vector.shape_cast %86 : vector<2x8x8x128xf32> to vector<128x128xf32>
    %c0_64 = arith.constant 0 : index
    %c0_65 = arith.constant 0 : index
    %88 = vector.load %arg10[%c0_64, %c0_65] : memref<128x128xf32, #tpu.memory_space<vmem>>, vector<128x128xf32>
    %89 = arith.truncf %87 : vector<128x128xf32> to vector<128x128xbf16>
    %c3_66 = arith.constant 3 : index
    %c0_67 = arith.constant 0 : index
    %c0_68 = arith.constant 0 : index
    %90 = vector.load %arg6[%c3_66, %c0_67, %c0_68] : memref<9x128x128xbf16, #tpu.memory_space<vmem>>, vector<1x128x128xbf16>
    %91 = vector.shape_cast %90 : vector<1x128x128xbf16> to vector<128x128xbf16>
    %cst_69 = arith.constant dense<0.000000e+00> : vector<128x128xf32>
    %92 = tpu.matmul %89, %91, %cst_69 {dimension_numbers = #tpu.dot_dimension_numbers<[1], [0], [0], [1], [0, 0, 1, 1], [], []>} : vector<128x128xbf16>, vector<128x128xbf16>, vector<128x128xf32> -> vector<128x128xf32>
    %93 = arith.addf %88, %92 : vector<128x128xf32>
    %c0_70 = arith.constant 0 : index
    %c0_71 = arith.constant 0 : index
    %94 = vector.load %arg10[%c0_70, %c0_71] : memref<128x128xf32, #tpu.memory_space<vmem>>, vector<128x128xf32>
    tpu.vector_store %arg10[%c0_70, %c0_71], %93 {strides = array<i32>} : memref<128x128xf32, #tpu.memory_space<vmem>>, vector<128x128xf32>,
    %95 = vector.extract_strided_slice %58 {offsets = [0, 0, 0, 0], sizes = [2, 8, 8, 128], strides = [1, 1, 1, 1]} : vector<2x9x9x128xf32> to vector<2x8x8x128xf32>
    %96 = vector.shape_cast %95 : vector<2x8x8x128xf32> to vector<128x128xf32>
    %c0_72 = arith.constant 0 : index
    %c0_73 = arith.constant 0 : index
    %97 = vector.load %arg10[%c0_72, %c0_73] : memref<128x128xf32, #tpu.memory_space<vmem>>, vector<128x128xf32>
    %98 = arith.truncf %96 : vector<128x128xf32> to vector<128x128xbf16>
    %c4 = arith.constant 4 : index
    %c0_74 = arith.constant 0 : index
    %c0_75 = arith.constant 0 : index
    %99 = vector.load %arg6[%c4, %c0_74, %c0_75] : memref<9x128x128xbf16, #tpu.memory_space<vmem>>, vector<1x128x128xbf16>
    %100 = vector.shape_cast %99 : vector<1x128x128xbf16> to vector<128x128xbf16>
    %cst_76 = arith.constant dense<0.000000e+00> : vector<128x128xf32>
    %101 = tpu.matmul %98, %100, %cst_76 {dimension_numbers = #tpu.dot_dimension_numbers<[1], [0], [0], [1], [0, 0, 1, 1], [], []>} : vector<128x128xbf16>, vector<128x128xbf16>, vector<128x128xf32> -> vector<128x128xf32>
    %102 = arith.addf %97, %101 : vector<128x128xf32>
    %c0_77 = arith.constant 0 : index
    %c0_78 = arith.constant 0 : index
    %103 = vector.load %arg10[%c0_77, %c0_78] : memref<128x128xf32, #tpu.memory_space<vmem>>, vector<128x128xf32>
    tpu.vector_store %arg10[%c0_77, %c0_78], %102 {strides = array<i32>} : memref<128x128xf32, #tpu.memory_space<vmem>>, vector<128x128xf32>,
    %104 = vector.extract_strided_slice %45 {offsets = [0, 0, 1, 0], sizes = [2, 8, 8, 128], strides = [1, 1, 1, 1]} : vector<2x9x9x128xf32> to vector<2x8x8x128xf32>
    %105 = vector.shape_cast %104 : vector<2x8x8x128xf32> to vector<128x128xf32>
    %c0_79 = arith.constant 0 : index
    %c0_80 = arith.constant 0 : index
    %106 = vector.load %arg10[%c0_79, %c0_80] : memref<128x128xf32, #tpu.memory_space<vmem>>, vector<128x128xf32>
    %107 = arith.truncf %105 : vector<128x128xf32> to vector<128x128xbf16>
    %c5 = arith.constant 5 : index
    %c0_81 = arith.constant 0 : index
    %c0_82 = arith.constant 0 : index
    %108 = vector.load %arg6[%c5, %c0_81, %c0_82] : memref<9x128x128xbf16, #tpu.memory_space<vmem>>, vector<1x128x128xbf16>
    %109 = vector.shape_cast %108 : vector<1x128x128xbf16> to vector<128x128xbf16>
    %cst_83 = arith.constant dense<0.000000e+00> : vector<128x128xf32>
    %110 = tpu.matmul %107, %109, %cst_83 {dimension_numbers = #tpu.dot_dimension_numbers<[1], [0], [0], [1], [0, 0, 1, 1], [], []>} : vector<128x128xbf16>, vector<128x128xbf16>, vector<128x128xf32> -> vector<128x128xf32>
    %111 = arith.addf %106, %110 : vector<128x128xf32>
    %c0_84 = arith.constant 0 : index
    %c0_85 = arith.constant 0 : index
    %112 = vector.load %arg10[%c0_84, %c0_85] : memref<128x128xf32, #tpu.memory_space<vmem>>, vector<128x128xf32>
    tpu.vector_store %arg10[%c0_84, %c0_85], %111 {strides = array<i32>} : memref<128x128xf32, #tpu.memory_space<vmem>>, vector<128x128xf32>,
    %113 = vector.extract_strided_slice %19 {offsets = [0, 1, 0, 0], sizes = [2, 8, 8, 128], strides = [1, 1, 1, 1]} : vector<2x9x9x128xf32> to vector<2x8x8x128xf32>
    %114 = vector.shape_cast %113 : vector<2x8x8x128xf32> to vector<128x128xf32>
    %c0_86 = arith.constant 0 : index
    %c0_87 = arith.constant 0 : index
    %115 = vector.load %arg10[%c0_86, %c0_87] : memref<128x128xf32, #tpu.memory_space<vmem>>, vector<128x128xf32>
    %116 = arith.truncf %114 : vector<128x128xf32> to vector<128x128xbf16>
    %c6 = arith.constant 6 : index
    %c0_88 = arith.constant 0 : index
    %c0_89 = arith.constant 0 : index
    %117 = vector.load %arg6[%c6, %c0_88, %c0_89] : memref<9x128x128xbf16, #tpu.memory_space<vmem>>, vector<1x128x128xbf16>
    %118 = vector.shape_cast %117 : vector<1x128x128xbf16> to vector<128x128xbf16>
    %cst_90 = arith.constant dense<0.000000e+00> : vector<128x128xf32>
    %119 = tpu.matmul %116, %118, %cst_90 {dimension_numbers = #tpu.dot_dimension_numbers<[1], [0], [0], [1], [0, 0, 1, 1], [], []>} : vector<128x128xbf16>, vector<128x128xbf16>, vector<128x128xf32> -> vector<128x128xf32>
    %120 = arith.addf %115, %119 : vector<128x128xf32>
    %c0_91 = arith.constant 0 : index
    %c0_92 = arith.constant 0 : index
    %121 = vector.load %arg10[%c0_91, %c0_92] : memref<128x128xf32, #tpu.memory_space<vmem>>, vector<128x128xf32>
    tpu.vector_store %arg10[%c0_91, %c0_92], %120 {strides = array<i32>} : memref<128x128xf32, #tpu.memory_space<vmem>>, vector<128x128xf32>,
    %122 = vector.extract_strided_slice %32 {offsets = [0, 1, 0, 0], sizes = [2, 8, 8, 128], strides = [1, 1, 1, 1]} : vector<2x9x9x128xf32> to vector<2x8x8x128xf32>
    %123 = vector.shape_cast %122 : vector<2x8x8x128xf32> to vector<128x128xf32>
    %c0_93 = arith.constant 0 : index
    %c0_94 = arith.constant 0 : index
    %124 = vector.load %arg10[%c0_93, %c0_94] : memref<128x128xf32, #tpu.memory_space<vmem>>, vector<128x128xf32>
    %125 = arith.truncf %123 : vector<128x128xf32> to vector<128x128xbf16>
    %c7 = arith.constant 7 : index
    %c0_95 = arith.constant 0 : index
    %c0_96 = arith.constant 0 : index
    %126 = vector.load %arg6[%c7, %c0_95, %c0_96] : memref<9x128x128xbf16, #tpu.memory_space<vmem>>, vector<1x128x128xbf16>
    %127 = vector.shape_cast %126 : vector<1x128x128xbf16> to vector<128x128xbf16>
    %cst_97 = arith.constant dense<0.000000e+00> : vector<128x128xf32>
    %128 = tpu.matmul %125, %127, %cst_97 {dimension_numbers = #tpu.dot_dimension_numbers<[1], [0], [0], [1], [0, 0, 1, 1], [], []>} : vector<128x128xbf16>, vector<128x128xbf16>, vector<128x128xf32> -> vector<128x128xf32>
    %129 = arith.addf %124, %128 : vector<128x128xf32>
    %c0_98 = arith.constant 0 : index
    %c0_99 = arith.constant 0 : index
    %130 = vector.load %arg10[%c0_98, %c0_99] : memref<128x128xf32, #tpu.memory_space<vmem>>, vector<128x128xf32>
    tpu.vector_store %arg10[%c0_98, %c0_99], %129 {strides = array<i32>} : memref<128x128xf32, #tpu.memory_space<vmem>>, vector<128x128xf32>,
    %131 = vector.extract_strided_slice %19 {offsets = [0, 1, 1, 0], sizes = [2, 8, 8, 128], strides = [1, 1, 1, 1]} : vector<2x9x9x128xf32> to vector<2x8x8x128xf32>
    %132 = vector.shape_cast %131 : vector<2x8x8x128xf32> to vector<128x128xf32>
    %c0_100 = arith.constant 0 : index
    %c0_101 = arith.constant 0 : index
    %133 = vector.load %arg10[%c0_100, %c0_101] : memref<128x128xf32, #tpu.memory_space<vmem>>, vector<128x128xf32>
    %134 = arith.truncf %132 : vector<128x128xf32> to vector<128x128xbf16>
    %c8 = arith.constant 8 : index
    %c0_102 = arith.constant 0 : index
    %c0_103 = arith.constant 0 : index
    %135 = vector.load %arg6[%c8, %c0_102, %c0_103] : memref<9x128x128xbf16, #tpu.memory_space<vmem>>, vector<1x128x128xbf16>
    %136 = vector.shape_cast %135 : vector<1x128x128xbf16> to vector<128x128xbf16>
    %cst_104 = arith.constant dense<0.000000e+00> : vector<128x128xf32>
    %137 = tpu.matmul %134, %136, %cst_104 {dimension_numbers = #tpu.dot_dimension_numbers<[1], [0], [0], [1], [0, 0, 1, 1], [], []>} : vector<128x128xbf16>, vector<128x128xbf16>, vector<128x128xf32> -> vector<128x128xf32>
    %138 = arith.addf %133, %137 : vector<128x128xf32>
    %c0_105 = arith.constant 0 : index
    %c0_106 = arith.constant 0 : index
    %139 = vector.load %arg10[%c0_105, %c0_106] : memref<128x128xf32, #tpu.memory_space<vmem>>, vector<128x128xf32>
    tpu.vector_store %arg10[%c0_105, %c0_106], %138 {strides = array<i32>} : memref<128x128xf32, #tpu.memory_space<vmem>>, vector<128x128xf32>,
    %c0_i32_107 = arith.constant 0 : i32
    %140 = arith.cmpi eq, %arg1, %c0_i32_107 : i32
    %141 = arith.extui %140 : i1 to i32
    %c0_i32_108 = arith.constant 0 : i32
    %142 = arith.cmpi ne, %141, %c0_i32_108 : i32
    scf.if %142 {
      %c0_109 = arith.constant 0 : index
      %c0_110 = arith.constant 0 : index
      %143 = vector.load %arg10[%c0_109, %c0_110] : memref<128x128xf32, #tpu.memory_space<vmem>>, vector<128x128xf32>
      %144 = vector.extract_strided_slice %143 {offsets = [0, 0], sizes = [64, 128], strides = [1, 1]} : vector<128x128xf32> to vector<64x128xf32>
      %cst_111 = arith.constant dense<0.000000e+00> : vector<128xf32>
      %145 = vector.multi_reduction <add>, %144, %cst_111 [0] : vector<64x128xf32> to vector<128xf32>
      %146 = vector.shape_cast %145 : vector<128xf32> to vector<1x128xf32>
      %c0_112 = arith.constant 0 : index
      %c0_113 = arith.constant 0 : index
      %c0_114 = arith.constant 0 : index
      %147 = vector.load %arg8[%c0_112, %c0_113, %c0_114] : memref<2x1x128xf32, #tpu.memory_space<vmem>>, vector<1x1x128xf32>
      %148 = vector.shape_cast %147 : vector<1x1x128xf32> to vector<1x128xf32>
      %149 = vector.shape_cast %146 : vector<1x128xf32> to vector<1x1x128xf32>
      tpu.vector_store %arg8[%c0_112, %c0_113, %c0_114], %149 {strides = array<i32>} : memref<2x1x128xf32, #tpu.memory_space<vmem>>, vector<1x1x128xf32>,
      %150 = arith.mulf %144, %144 : vector<64x128xf32>
      %cst_115 = arith.constant dense<0.000000e+00> : vector<128xf32>
      %151 = vector.multi_reduction <add>, %150, %cst_115 [0] : vector<64x128xf32> to vector<128xf32>
      %152 = vector.shape_cast %151 : vector<128xf32> to vector<1x128xf32>
      %c0_116 = arith.constant 0 : index
      %c0_117 = arith.constant 0 : index
      %c0_118 = arith.constant 0 : index
      %153 = vector.load %arg9[%c0_116, %c0_117, %c0_118] : memref<2x1x128xf32, #tpu.memory_space<vmem>>, vector<1x1x128xf32>
      %154 = vector.shape_cast %153 : vector<1x1x128xf32> to vector<1x128xf32>
      %155 = vector.shape_cast %152 : vector<1x128xf32> to vector<1x1x128xf32>
      tpu.vector_store %arg9[%c0_116, %c0_117, %c0_118], %155 {strides = array<i32>} : memref<2x1x128xf32, #tpu.memory_space<vmem>>, vector<1x1x128xf32>,
      %156 = vector.extract_strided_slice %143 {offsets = [64, 0], sizes = [64, 128], strides = [1, 1]} : vector<128x128xf32> to vector<64x128xf32>
      %cst_119 = arith.constant dense<0.000000e+00> : vector<128xf32>
      %157 = vector.multi_reduction <add>, %156, %cst_119 [0] : vector<64x128xf32> to vector<128xf32>
      %158 = vector.shape_cast %157 : vector<128xf32> to vector<1x128xf32>
      %c1_120 = arith.constant 1 : index
      %c0_121 = arith.constant 0 : index
      %c0_122 = arith.constant 0 : index
      %159 = vector.load %arg8[%c1_120, %c0_121, %c0_122] : memref<2x1x128xf32, #tpu.memory_space<vmem>>, vector<1x1x128xf32>
      %160 = vector.shape_cast %159 : vector<1x1x128xf32> to vector<1x128xf32>
      %161 = vector.shape_cast %158 : vector<1x128xf32> to vector<1x1x128xf32>
      tpu.vector_store %arg8[%c1_120, %c0_121, %c0_122], %161 {strides = array<i32>} : memref<2x1x128xf32, #tpu.memory_space<vmem>>, vector<1x1x128xf32>,
      %162 = arith.mulf %156, %156 : vector<64x128xf32>
      %cst_123 = arith.constant dense<0.000000e+00> : vector<128xf32>
      %163 = vector.multi_reduction <add>, %162, %cst_123 [0] : vector<64x128xf32> to vector<128xf32>
      %164 = vector.shape_cast %163 : vector<128xf32> to vector<1x128xf32>
      %c1_124 = arith.constant 1 : index
      %c0_125 = arith.constant 0 : index
      %c0_126 = arith.constant 0 : index
      %165 = vector.load %arg9[%c1_124, %c0_125, %c0_126] : memref<2x1x128xf32, #tpu.memory_space<vmem>>, vector<1x1x128xf32>
      %166 = vector.shape_cast %165 : vector<1x1x128xf32> to vector<1x128xf32>
      %167 = vector.shape_cast %164 : vector<1x128xf32> to vector<1x1x128xf32>
      tpu.vector_store %arg9[%c1_124, %c0_125, %c0_126], %167 {strides = array<i32>} : memref<2x1x128xf32, #tpu.memory_space<vmem>>, vector<1x1x128xf32>,
      %168 = vector.shape_cast %143 : vector<128x128xf32> to vector<2x8x8x128xf32>
      %c0_127 = arith.constant 0 : index
      %c0_128 = arith.constant 0 : index
      %c0_129 = arith.constant 0 : index
      %c0_130 = arith.constant 0 : index
      %169 = vector.load %arg7[%c0_127, %c0_128, %c0_129, %c0_130] : memref<2x8x8x128xf32, #tpu.memory_space<vmem>>, vector<2x8x8x128xf32>
      tpu.vector_store %arg7[%c0_127, %c0_128, %c0_129, %c0_130], %168 {strides = array<i32>} : memref<2x8x8x128xf32, #tpu.memory_space<vmem>>, vector<2x8x8x128xf32>,
    } else {
    }
    return
  }
  func.func @transform_0(%arg0: i32, %arg1: i32) -> (i32, i32, i32, i32, i32) {
    %c0_i32 = arith.constant 0 : i32
    %c0_i32_0 = arith.constant 0 : i32
    %c0_i32_1 = arith.constant 0 : i32
    %c0_i32_2 = arith.constant 0 : i32
    return %c0_i32, %arg0, %c0_i32_0, %c0_i32_1, %arg1 : i32, i32, i32, i32, i32
  }
  func.func @transform_1(%arg0: i32, %arg1: i32) -> (i32, i32) {
    %c0_i32 = arith.constant 0 : i32
    %c0_i32_0 = arith.constant 0 : i32
    return %c0_i32, %arg1 : i32, i32
  }
  func.func @transform_2(%arg0: i32, %arg1: i32) -> (i32, i32) {
    %c0_i32 = arith.constant 0 : i32
    %c0_i32_0 = arith.constant 0 : i32
    return %c0_i32, %arg1 : i32, i32
  }
  func.func @transform_3(%arg0: i32, %arg1: i32) -> (i32, i32, i32, i32) {
    %c0_i32 = arith.constant 0 : i32
    %c0_i32_0 = arith.constant 0 : i32
    %c0_i32_1 = arith.constant 0 : i32
    %c0_i32_2 = arith.constant 0 : i32
    %c0_i32_3 = arith.constant 0 : i32
    return %c0_i32, %c0_i32_0, %c0_i32_1, %c0_i32_2 : i32, i32, i32, i32
  }
  func.func @transform_4(%arg0: i32, %arg1: i32) -> (i32, i32, i32) {
    %c0_i32 = arith.constant 0 : i32
    %c0_i32_0 = arith.constant 0 : i32
    %c0_i32_1 = arith.constant 0 : i32
    return %c0_i32, %arg1, %c0_i32_0 : i32, i32, i32
  }
  func.func @transform_5(%arg0: i32, %arg1: i32) -> (i32, i32, i32, i32) {
    %c0_i32 = arith.constant 0 : i32
    %c0_i32_0 = arith.constant 0 : i32
    %c0_i32_1 = arith.constant 0 : i32
    %c0_i32_2 = arith.constant 0 : i32
    return %arg0, %c0_i32, %c0_i32_0, %c0_i32_1 : i32, i32, i32, i32
  }
  func.func @transform_6(%arg0: i32, %arg1: i32) -> (i32, i32, i32) {
    %c0_i32 = arith.constant 0 : i32
    %c0_i32_0 = arith.constant 0 : i32
    %c0_i32_1 = arith.constant 0 : i32
    return %arg0, %c0_i32, %c0_i32_0 : i32, i32, i32
  }
  func.func @transform_7(%arg0: i32, %arg1: i32) -> (i32, i32, i32) {
    %c0_i32 = arith.constant 0 : i32
    %c0_i32_0 = arith.constant 0 : i32
    %c0_i32_1 = arith.constant 0 : i32
    return %arg0, %c0_i32, %c0_i32_0 : i32, i32, i32
  }
}

module attributes {stable_mosaic.version = 11 : i64} {
  func.func @_conv3x3_kernel(%arg0: i32, %arg1: i32, %arg2: memref<1x2x10x10x128xf32, #tpu.memory_space<vmem>>, %arg3: memref<1x128xf32, #tpu.memory_space<vmem>>, %arg4: memref<1x128xf32, #tpu.memory_space<vmem>>, %arg5: memref<1x10x10x1xf32, #tpu.memory_space<vmem>>, %arg6: memref<9x128x128xbf16, #tpu.memory_space<vmem>>, %arg7: memref<2x8x8x128xf32, #tpu.memory_space<vmem>>, %arg8: memref<2x8x8x128xf32, #tpu.memory_space<vmem>>, %arg9: memref<128x128xf32, #tpu.memory_space<vmem>>) attributes {dimension_semantics = [#tpu.dimension_semantics<parallel>, #tpu.dimension_semantics<arbitrary>], iteration_bounds = array<i64: 1, 1>, scalar_prefetch = 0 : i64, scratch_operands = 1 : i64, tpu.core_type = #tpu.core_type<tc>, window_params = [{transform_indices = @transform_0, window_bounds = array<i64: 1, 2, 10, 10, 128>}, {transform_indices = @transform_1, window_bounds = array<i64: 1, 128>}, {transform_indices = @transform_2, window_bounds = array<i64: 1, 128>}, {pipeline_mode = #tpu.pipeline_mode<synchronous>, transform_indices = @transform_3, window_bounds = array<i64: 1, 10, 10, 1>}, {transform_indices = @transform_4, window_bounds = array<i64: 9, 128, 128>}, {transform_indices = @transform_5, window_bounds = array<i64: 2, 8, 8, 128>}, {transform_indices = @transform_6, window_bounds = array<i64: 2, 8, 8, 128>}]} {
    %c0_i32 = arith.constant 0 : i32
    %0 = arith.cmpi eq, %arg1, %c0_i32 : i32
    %1 = arith.extui %0 : i1 to i32
    %c0_i32_0 = arith.constant 0 : i32
    %2 = arith.cmpi ne, %1, %c0_i32_0 : i32
    scf.if %2 {
      %cst_79 = arith.constant 0.000000e+00 : f32
      %104 = vector.broadcast %cst_79 : f32 to vector<128x128xf32>
      %c0_80 = arith.constant 0 : index
      %c0_81 = arith.constant 0 : index
      %105 = vector.load %arg9[%c0_80, %c0_81] : memref<128x128xf32, #tpu.memory_space<vmem>>, vector<128x128xf32>
      tpu.vector_store %arg9[%c0_80, %c0_81], %104 {strides = array<i32>} : memref<128x128xf32, #tpu.memory_space<vmem>>, vector<128x128xf32>,
    } else {
    }
    %c0 = arith.constant 0 : index
    %c0_1 = arith.constant 0 : index
    %3 = vector.load %arg3[%c0, %c0_1] : memref<1x128xf32, #tpu.memory_space<vmem>>, vector<1x128xf32>
    %c0_2 = arith.constant 0 : index
    %c0_3 = arith.constant 0 : index
    %4 = vector.load %arg4[%c0_2, %c0_3] : memref<1x128xf32, #tpu.memory_space<vmem>>, vector<1x128xf32>
    %5 = vector.shape_cast %3 : vector<1x128xf32> to vector<1x1x1x128xf32>
    %6 = vector.shape_cast %4 : vector<1x128xf32> to vector<1x1x1x128xf32>
    %c0_4 = arith.constant 0 : index
    %c0_5 = arith.constant 0 : index
    %c0_6 = arith.constant 0 : index
    %c0_7 = arith.constant 0 : index
    %c0_8 = arith.constant 0 : index
    %7 = vector.load %arg2[%c0_4, %c0_5, %c0_6, %c0_7, %c0_8] : memref<1x2x10x10x128xf32, #tpu.memory_space<vmem>>, vector<1x2x10x10x128xf32>
    %8 = vector.shape_cast %7 : vector<1x2x10x10x128xf32> to vector<2x10x10x128xf32>
    %9 = vector.broadcast %5 : vector<1x1x1x128xf32> to vector<2x10x10x128xf32>
    %10 = arith.mulf %8, %9 : vector<2x10x10x128xf32>
    %11 = vector.broadcast %6 : vector<1x1x1x128xf32> to vector<2x10x10x128xf32>
    %12 = arith.addf %10, %11 : vector<2x10x10x128xf32>
    %cst = arith.constant 0.000000e+00 : f32
    %13 = vector.broadcast %cst : f32 to vector<2x10x10x128xf32>
    %14 = arith.maximumf %12, %13 : vector<2x10x10x128xf32>
    %c0_9 = arith.constant 0 : index
    %c0_10 = arith.constant 0 : index
    %c0_11 = arith.constant 0 : index
    %c0_12 = arith.constant 0 : index
    %15 = vector.load %arg5[%c0_9, %c0_10, %c0_11, %c0_12] : memref<1x10x10x1xf32, #tpu.memory_space<vmem>>, vector<1x10x10x1xf32>
    %16 = vector.shape_cast %15 : vector<1x10x10x1xf32> to vector<10x10x1xf32>
    %17 = vector.shape_cast %16 : vector<10x10x1xf32> to vector<1x10x10x1xf32>
    %18 = vector.broadcast %17 : vector<1x10x10x1xf32> to vector<2x10x10x128xf32>
    %19 = arith.mulf %14, %18 : vector<2x10x10x128xf32>
    %20 = vector.extract_strided_slice %19 {offsets = [0, 0, 0, 0], sizes = [2, 8, 8, 128], strides = [1, 1, 1, 1]} : vector<2x10x10x128xf32> to vector<2x8x8x128xf32>
    %21 = vector.shape_cast %20 : vector<2x8x8x128xf32> to vector<128x128xf32>
    %c0_13 = arith.constant 0 : index
    %c0_14 = arith.constant 0 : index
    %22 = vector.load %arg9[%c0_13, %c0_14] : memref<128x128xf32, #tpu.memory_space<vmem>>, vector<128x128xf32>
    %23 = arith.truncf %21 : vector<128x128xf32> to vector<128x128xbf16>
    %c0_15 = arith.constant 0 : index
    %c0_16 = arith.constant 0 : index
    %c0_17 = arith.constant 0 : index
    %24 = vector.load %arg6[%c0_15, %c0_16, %c0_17] : memref<9x128x128xbf16, #tpu.memory_space<vmem>>, vector<1x128x128xbf16>
    %25 = vector.shape_cast %24 : vector<1x128x128xbf16> to vector<128x128xbf16>
    %cst_18 = arith.constant dense<0.000000e+00> : vector<128x128xf32>
    %26 = tpu.matmul %23, %25, %cst_18 {dimension_numbers = #tpu.dot_dimension_numbers<[1], [0], [0], [1], [0, 0, 1, 1], [], []>} : vector<128x128xbf16>, vector<128x128xbf16>, vector<128x128xf32> -> vector<128x128xf32>
    %27 = arith.addf %22, %26 : vector<128x128xf32>
    %c0_19 = arith.constant 0 : index
    %c0_20 = arith.constant 0 : index
    %28 = vector.load %arg9[%c0_19, %c0_20] : memref<128x128xf32, #tpu.memory_space<vmem>>, vector<128x128xf32>
    tpu.vector_store %arg9[%c0_19, %c0_20], %27 {strides = array<i32>} : memref<128x128xf32, #tpu.memory_space<vmem>>, vector<128x128xf32>,
    %29 = vector.extract_strided_slice %19 {offsets = [0, 0, 1, 0], sizes = [2, 8, 8, 128], strides = [1, 1, 1, 1]} : vector<2x10x10x128xf32> to vector<2x8x8x128xf32>
    %30 = vector.shape_cast %29 : vector<2x8x8x128xf32> to vector<128x128xf32>
    %c0_21 = arith.constant 0 : index
    %c0_22 = arith.constant 0 : index
    %31 = vector.load %arg9[%c0_21, %c0_22] : memref<128x128xf32, #tpu.memory_space<vmem>>, vector<128x128xf32>
    %32 = arith.truncf %30 : vector<128x128xf32> to vector<128x128xbf16>
    %c1 = arith.constant 1 : index
    %c0_23 = arith.constant 0 : index
    %c0_24 = arith.constant 0 : index
    %33 = vector.load %arg6[%c1, %c0_23, %c0_24] : memref<9x128x128xbf16, #tpu.memory_space<vmem>>, vector<1x128x128xbf16>
    %34 = vector.shape_cast %33 : vector<1x128x128xbf16> to vector<128x128xbf16>
    %cst_25 = arith.constant dense<0.000000e+00> : vector<128x128xf32>
    %35 = tpu.matmul %32, %34, %cst_25 {dimension_numbers = #tpu.dot_dimension_numbers<[1], [0], [0], [1], [0, 0, 1, 1], [], []>} : vector<128x128xbf16>, vector<128x128xbf16>, vector<128x128xf32> -> vector<128x128xf32>
    %36 = arith.addf %31, %35 : vector<128x128xf32>
    %c0_26 = arith.constant 0 : index
    %c0_27 = arith.constant 0 : index
    %37 = vector.load %arg9[%c0_26, %c0_27] : memref<128x128xf32, #tpu.memory_space<vmem>>, vector<128x128xf32>
    tpu.vector_store %arg9[%c0_26, %c0_27], %36 {strides = array<i32>} : memref<128x128xf32, #tpu.memory_space<vmem>>, vector<128x128xf32>,
    %38 = vector.extract_strided_slice %19 {offsets = [0, 0, 2, 0], sizes = [2, 8, 8, 128], strides = [1, 1, 1, 1]} : vector<2x10x10x128xf32> to vector<2x8x8x128xf32>
    %39 = vector.shape_cast %38 : vector<2x8x8x128xf32> to vector<128x128xf32>
    %c0_28 = arith.constant 0 : index
    %c0_29 = arith.constant 0 : index
    %40 = vector.load %arg9[%c0_28, %c0_29] : memref<128x128xf32, #tpu.memory_space<vmem>>, vector<128x128xf32>
    %41 = arith.truncf %39 : vector<128x128xf32> to vector<128x128xbf16>
    %c2 = arith.constant 2 : index
    %c0_30 = arith.constant 0 : index
    %c0_31 = arith.constant 0 : index
    %42 = vector.load %arg6[%c2, %c0_30, %c0_31] : memref<9x128x128xbf16, #tpu.memory_space<vmem>>, vector<1x128x128xbf16>
    %43 = vector.shape_cast %42 : vector<1x128x128xbf16> to vector<128x128xbf16>
    %cst_32 = arith.constant dense<0.000000e+00> : vector<128x128xf32>
    %44 = tpu.matmul %41, %43, %cst_32 {dimension_numbers = #tpu.dot_dimension_numbers<[1], [0], [0], [1], [0, 0, 1, 1], [], []>} : vector<128x128xbf16>, vector<128x128xbf16>, vector<128x128xf32> -> vector<128x128xf32>
    %45 = arith.addf %40, %44 : vector<128x128xf32>
    %c0_33 = arith.constant 0 : index
    %c0_34 = arith.constant 0 : index
    %46 = vector.load %arg9[%c0_33, %c0_34] : memref<128x128xf32, #tpu.memory_space<vmem>>, vector<128x128xf32>
    tpu.vector_store %arg9[%c0_33, %c0_34], %45 {strides = array<i32>} : memref<128x128xf32, #tpu.memory_space<vmem>>, vector<128x128xf32>,
    %47 = vector.extract_strided_slice %19 {offsets = [0, 1, 0, 0], sizes = [2, 8, 8, 128], strides = [1, 1, 1, 1]} : vector<2x10x10x128xf32> to vector<2x8x8x128xf32>
    %48 = vector.shape_cast %47 : vector<2x8x8x128xf32> to vector<128x128xf32>
    %c0_35 = arith.constant 0 : index
    %c0_36 = arith.constant 0 : index
    %49 = vector.load %arg9[%c0_35, %c0_36] : memref<128x128xf32, #tpu.memory_space<vmem>>, vector<128x128xf32>
    %50 = arith.truncf %48 : vector<128x128xf32> to vector<128x128xbf16>
    %c3 = arith.constant 3 : index
    %c0_37 = arith.constant 0 : index
    %c0_38 = arith.constant 0 : index
    %51 = vector.load %arg6[%c3, %c0_37, %c0_38] : memref<9x128x128xbf16, #tpu.memory_space<vmem>>, vector<1x128x128xbf16>
    %52 = vector.shape_cast %51 : vector<1x128x128xbf16> to vector<128x128xbf16>
    %cst_39 = arith.constant dense<0.000000e+00> : vector<128x128xf32>
    %53 = tpu.matmul %50, %52, %cst_39 {dimension_numbers = #tpu.dot_dimension_numbers<[1], [0], [0], [1], [0, 0, 1, 1], [], []>} : vector<128x128xbf16>, vector<128x128xbf16>, vector<128x128xf32> -> vector<128x128xf32>
    %54 = arith.addf %49, %53 : vector<128x128xf32>
    %c0_40 = arith.constant 0 : index
    %c0_41 = arith.constant 0 : index
    %55 = vector.load %arg9[%c0_40, %c0_41] : memref<128x128xf32, #tpu.memory_space<vmem>>, vector<128x128xf32>
    tpu.vector_store %arg9[%c0_40, %c0_41], %54 {strides = array<i32>} : memref<128x128xf32, #tpu.memory_space<vmem>>, vector<128x128xf32>,
    %56 = vector.extract_strided_slice %19 {offsets = [0, 1, 1, 0], sizes = [2, 8, 8, 128], strides = [1, 1, 1, 1]} : vector<2x10x10x128xf32> to vector<2x8x8x128xf32>
    %57 = vector.shape_cast %56 : vector<2x8x8x128xf32> to vector<128x128xf32>
    %c0_42 = arith.constant 0 : index
    %c0_43 = arith.constant 0 : index
    %58 = vector.load %arg9[%c0_42, %c0_43] : memref<128x128xf32, #tpu.memory_space<vmem>>, vector<128x128xf32>
    %59 = arith.truncf %57 : vector<128x128xf32> to vector<128x128xbf16>
    %c4 = arith.constant 4 : index
    %c0_44 = arith.constant 0 : index
    %c0_45 = arith.constant 0 : index
    %60 = vector.load %arg6[%c4, %c0_44, %c0_45] : memref<9x128x128xbf16, #tpu.memory_space<vmem>>, vector<1x128x128xbf16>
    %61 = vector.shape_cast %60 : vector<1x128x128xbf16> to vector<128x128xbf16>
    %cst_46 = arith.constant dense<0.000000e+00> : vector<128x128xf32>
    %62 = tpu.matmul %59, %61, %cst_46 {dimension_numbers = #tpu.dot_dimension_numbers<[1], [0], [0], [1], [0, 0, 1, 1], [], []>} : vector<128x128xbf16>, vector<128x128xbf16>, vector<128x128xf32> -> vector<128x128xf32>
    %63 = arith.addf %58, %62 : vector<128x128xf32>
    %c0_47 = arith.constant 0 : index
    %c0_48 = arith.constant 0 : index
    %64 = vector.load %arg9[%c0_47, %c0_48] : memref<128x128xf32, #tpu.memory_space<vmem>>, vector<128x128xf32>
    tpu.vector_store %arg9[%c0_47, %c0_48], %63 {strides = array<i32>} : memref<128x128xf32, #tpu.memory_space<vmem>>, vector<128x128xf32>,
    %65 = vector.extract_strided_slice %19 {offsets = [0, 1, 2, 0], sizes = [2, 8, 8, 128], strides = [1, 1, 1, 1]} : vector<2x10x10x128xf32> to vector<2x8x8x128xf32>
    %66 = vector.shape_cast %65 : vector<2x8x8x128xf32> to vector<128x128xf32>
    %c0_49 = arith.constant 0 : index
    %c0_50 = arith.constant 0 : index
    %67 = vector.load %arg9[%c0_49, %c0_50] : memref<128x128xf32, #tpu.memory_space<vmem>>, vector<128x128xf32>
    %68 = arith.truncf %66 : vector<128x128xf32> to vector<128x128xbf16>
    %c5 = arith.constant 5 : index
    %c0_51 = arith.constant 0 : index
    %c0_52 = arith.constant 0 : index
    %69 = vector.load %arg6[%c5, %c0_51, %c0_52] : memref<9x128x128xbf16, #tpu.memory_space<vmem>>, vector<1x128x128xbf16>
    %70 = vector.shape_cast %69 : vector<1x128x128xbf16> to vector<128x128xbf16>
    %cst_53 = arith.constant dense<0.000000e+00> : vector<128x128xf32>
    %71 = tpu.matmul %68, %70, %cst_53 {dimension_numbers = #tpu.dot_dimension_numbers<[1], [0], [0], [1], [0, 0, 1, 1], [], []>} : vector<128x128xbf16>, vector<128x128xbf16>, vector<128x128xf32> -> vector<128x128xf32>
    %72 = arith.addf %67, %71 : vector<128x128xf32>
    %c0_54 = arith.constant 0 : index
    %c0_55 = arith.constant 0 : index
    %73 = vector.load %arg9[%c0_54, %c0_55] : memref<128x128xf32, #tpu.memory_space<vmem>>, vector<128x128xf32>
    tpu.vector_store %arg9[%c0_54, %c0_55], %72 {strides = array<i32>} : memref<128x128xf32, #tpu.memory_space<vmem>>, vector<128x128xf32>,
    %74 = vector.extract_strided_slice %19 {offsets = [0, 2, 0, 0], sizes = [2, 8, 8, 128], strides = [1, 1, 1, 1]} : vector<2x10x10x128xf32> to vector<2x8x8x128xf32>
    %75 = vector.shape_cast %74 : vector<2x8x8x128xf32> to vector<128x128xf32>
    %c0_56 = arith.constant 0 : index
    %c0_57 = arith.constant 0 : index
    %76 = vector.load %arg9[%c0_56, %c0_57] : memref<128x128xf32, #tpu.memory_space<vmem>>, vector<128x128xf32>
    %77 = arith.truncf %75 : vector<128x128xf32> to vector<128x128xbf16>
    %c6 = arith.constant 6 : index
    %c0_58 = arith.constant 0 : index
    %c0_59 = arith.constant 0 : index
    %78 = vector.load %arg6[%c6, %c0_58, %c0_59] : memref<9x128x128xbf16, #tpu.memory_space<vmem>>, vector<1x128x128xbf16>
    %79 = vector.shape_cast %78 : vector<1x128x128xbf16> to vector<128x128xbf16>
    %cst_60 = arith.constant dense<0.000000e+00> : vector<128x128xf32>
    %80 = tpu.matmul %77, %79, %cst_60 {dimension_numbers = #tpu.dot_dimension_numbers<[1], [0], [0], [1], [0, 0, 1, 1], [], []>} : vector<128x128xbf16>, vector<128x128xbf16>, vector<128x128xf32> -> vector<128x128xf32>
    %81 = arith.addf %76, %80 : vector<128x128xf32>
    %c0_61 = arith.constant 0 : index
    %c0_62 = arith.constant 0 : index
    %82 = vector.load %arg9[%c0_61, %c0_62] : memref<128x128xf32, #tpu.memory_space<vmem>>, vector<128x128xf32>
    tpu.vector_store %arg9[%c0_61, %c0_62], %81 {strides = array<i32>} : memref<128x128xf32, #tpu.memory_space<vmem>>, vector<128x128xf32>,
    %83 = vector.extract_strided_slice %19 {offsets = [0, 2, 1, 0], sizes = [2, 8, 8, 128], strides = [1, 1, 1, 1]} : vector<2x10x10x128xf32> to vector<2x8x8x128xf32>
    %84 = vector.shape_cast %83 : vector<2x8x8x128xf32> to vector<128x128xf32>
    %c0_63 = arith.constant 0 : index
    %c0_64 = arith.constant 0 : index
    %85 = vector.load %arg9[%c0_63, %c0_64] : memref<128x128xf32, #tpu.memory_space<vmem>>, vector<128x128xf32>
    %86 = arith.truncf %84 : vector<128x128xf32> to vector<128x128xbf16>
    %c7 = arith.constant 7 : index
    %c0_65 = arith.constant 0 : index
    %c0_66 = arith.constant 0 : index
    %87 = vector.load %arg6[%c7, %c0_65, %c0_66] : memref<9x128x128xbf16, #tpu.memory_space<vmem>>, vector<1x128x128xbf16>
    %88 = vector.shape_cast %87 : vector<1x128x128xbf16> to vector<128x128xbf16>
    %cst_67 = arith.constant dense<0.000000e+00> : vector<128x128xf32>
    %89 = tpu.matmul %86, %88, %cst_67 {dimension_numbers = #tpu.dot_dimension_numbers<[1], [0], [0], [1], [0, 0, 1, 1], [], []>} : vector<128x128xbf16>, vector<128x128xbf16>, vector<128x128xf32> -> vector<128x128xf32>
    %90 = arith.addf %85, %89 : vector<128x128xf32>
    %c0_68 = arith.constant 0 : index
    %c0_69 = arith.constant 0 : index
    %91 = vector.load %arg9[%c0_68, %c0_69] : memref<128x128xf32, #tpu.memory_space<vmem>>, vector<128x128xf32>
    tpu.vector_store %arg9[%c0_68, %c0_69], %90 {strides = array<i32>} : memref<128x128xf32, #tpu.memory_space<vmem>>, vector<128x128xf32>,
    %92 = vector.extract_strided_slice %19 {offsets = [0, 2, 2, 0], sizes = [2, 8, 8, 128], strides = [1, 1, 1, 1]} : vector<2x10x10x128xf32> to vector<2x8x8x128xf32>
    %93 = vector.shape_cast %92 : vector<2x8x8x128xf32> to vector<128x128xf32>
    %c0_70 = arith.constant 0 : index
    %c0_71 = arith.constant 0 : index
    %94 = vector.load %arg9[%c0_70, %c0_71] : memref<128x128xf32, #tpu.memory_space<vmem>>, vector<128x128xf32>
    %95 = arith.truncf %93 : vector<128x128xf32> to vector<128x128xbf16>
    %c8 = arith.constant 8 : index
    %c0_72 = arith.constant 0 : index
    %c0_73 = arith.constant 0 : index
    %96 = vector.load %arg6[%c8, %c0_72, %c0_73] : memref<9x128x128xbf16, #tpu.memory_space<vmem>>, vector<1x128x128xbf16>
    %97 = vector.shape_cast %96 : vector<1x128x128xbf16> to vector<128x128xbf16>
    %cst_74 = arith.constant dense<0.000000e+00> : vector<128x128xf32>
    %98 = tpu.matmul %95, %97, %cst_74 {dimension_numbers = #tpu.dot_dimension_numbers<[1], [0], [0], [1], [0, 0, 1, 1], [], []>} : vector<128x128xbf16>, vector<128x128xbf16>, vector<128x128xf32> -> vector<128x128xf32>
    %99 = arith.addf %94, %98 : vector<128x128xf32>
    %c0_75 = arith.constant 0 : index
    %c0_76 = arith.constant 0 : index
    %100 = vector.load %arg9[%c0_75, %c0_76] : memref<128x128xf32, #tpu.memory_space<vmem>>, vector<128x128xf32>
    tpu.vector_store %arg9[%c0_75, %c0_76], %99 {strides = array<i32>} : memref<128x128xf32, #tpu.memory_space<vmem>>, vector<128x128xf32>,
    %c0_i32_77 = arith.constant 0 : i32
    %101 = arith.cmpi eq, %arg1, %c0_i32_77 : i32
    %102 = arith.extui %101 : i1 to i32
    %c0_i32_78 = arith.constant 0 : i32
    %103 = arith.cmpi ne, %102, %c0_i32_78 : i32
    scf.if %103 {
      %c0_79 = arith.constant 0 : index
      %c0_80 = arith.constant 0 : index
      %104 = vector.load %arg9[%c0_79, %c0_80] : memref<128x128xf32, #tpu.memory_space<vmem>>, vector<128x128xf32>
      %105 = vector.shape_cast %104 : vector<128x128xf32> to vector<2x8x8x128xf32>
      %c0_81 = arith.constant 0 : index
      %c0_82 = arith.constant 0 : index
      %c0_83 = arith.constant 0 : index
      %c0_84 = arith.constant 0 : index
      %106 = vector.load %arg7[%c0_81, %c0_82, %c0_83, %c0_84] : memref<2x8x8x128xf32, #tpu.memory_space<vmem>>, vector<2x8x8x128xf32>
      %107 = arith.addf %105, %106 : vector<2x8x8x128xf32>
      %c0_85 = arith.constant 0 : index
      %c0_86 = arith.constant 0 : index
      %c0_87 = arith.constant 0 : index
      %c0_88 = arith.constant 0 : index
      %108 = vector.load %arg8[%c0_85, %c0_86, %c0_87, %c0_88] : memref<2x8x8x128xf32, #tpu.memory_space<vmem>>, vector<2x8x8x128xf32>
      tpu.vector_store %arg8[%c0_85, %c0_86, %c0_87, %c0_88], %107 {strides = array<i32>} : memref<2x8x8x128xf32, #tpu.memory_space<vmem>>, vector<2x8x8x128xf32>,
    } else {
    }
    return
  }
  func.func @transform_0(%arg0: i32, %arg1: i32) -> (i32, i32, i32, i32, i32) {
    %c0_i32 = arith.constant 0 : i32
    %c0_i32_0 = arith.constant 0 : i32
    %c0_i32_1 = arith.constant 0 : i32
    %c0_i32_2 = arith.constant 0 : i32
    return %c0_i32, %arg0, %c0_i32_0, %c0_i32_1, %arg1 : i32, i32, i32, i32, i32
  }
  func.func @transform_1(%arg0: i32, %arg1: i32) -> (i32, i32) {
    %c0_i32 = arith.constant 0 : i32
    %c0_i32_0 = arith.constant 0 : i32
    return %c0_i32, %arg1 : i32, i32
  }
  func.func @transform_2(%arg0: i32, %arg1: i32) -> (i32, i32) {
    %c0_i32 = arith.constant 0 : i32
    %c0_i32_0 = arith.constant 0 : i32
    return %c0_i32, %arg1 : i32, i32
  }
  func.func @transform_3(%arg0: i32, %arg1: i32) -> (i32, i32, i32, i32) {
    %c0_i32 = arith.constant 0 : i32
    %c0_i32_0 = arith.constant 0 : i32
    %c0_i32_1 = arith.constant 0 : i32
    %c0_i32_2 = arith.constant 0 : i32
    %c0_i32_3 = arith.constant 0 : i32
    return %c0_i32, %c0_i32_0, %c0_i32_1, %c0_i32_2 : i32, i32, i32, i32
  }
  func.func @transform_4(%arg0: i32, %arg1: i32) -> (i32, i32, i32) {
    %c0_i32 = arith.constant 0 : i32
    %c0_i32_0 = arith.constant 0 : i32
    %c0_i32_1 = arith.constant 0 : i32
    return %c0_i32, %arg1, %c0_i32_0 : i32, i32, i32
  }
  func.func @transform_5(%arg0: i32, %arg1: i32) -> (i32, i32, i32, i32) {
    %c0_i32 = arith.constant 0 : i32
    %c0_i32_0 = arith.constant 0 : i32
    %c0_i32_1 = arith.constant 0 : i32
    %c0_i32_2 = arith.constant 0 : i32
    return %arg0, %c0_i32, %c0_i32_0, %c0_i32_1 : i32, i32, i32, i32
  }
  func.func @transform_6(%arg0: i32, %arg1: i32) -> (i32, i32, i32, i32) {
    %c0_i32 = arith.constant 0 : i32
    %c0_i32_0 = arith.constant 0 : i32
    %c0_i32_1 = arith.constant 0 : i32
    %c0_i32_2 = arith.constant 0 : i32
    return %arg0, %c0_i32, %c0_i32_0, %c0_i32_1 : i32, i32, i32, i32
  }
}

</mosaic_0001>

<bundles_post_ra>
// kernel: tpu_custom_call.1
= control target key start
LH: loop header
LB: loop body
LE: loop exit
PB: predicated region body
PF: predicated region fallthrough
CT: control target
= control target key end

     0   :  { %6 = vsyncpa [#allocation3], 0  ;;  %s331_s0 = inlined_call_operand.hbm [shape: f32[256,128], index: 0, kind: input, shape index: {}]   ;;  %s332_s1 = inlined_call_operand.hbm [shape: f32[256,128], index: 1, kind: output, shape index: {}]  }
   0x1   :  { %7 = vsyncpa [#allocation4], 0  ;;  %s12_s8 = sshll.u32 %s331_s0, 4  ;;  %s231_s9 = smov [#allocation2]   ;;  %s13_s8 = int_to_ptr.hbm [resolvable:$true] %s12_s8 }
   0x2   :  { %s14_s10 = sshll.u32 %s231_s9, 4  ;;  %s232_s11 = smov 128   ;;  %s15_s10 = int_to_ptr.vmem [resolvable:$true] %s14_s10 }
   0x3   :  { %s233_s12 = smov 8  }
   0x4   :  { %20 = dma.hbm_to_vmem [thread:$0]  %s13_s8, 4096, %s15_s10, [#allocation3], %s232_s11, %s232_s11, %s233_s12  }
   0x5   :  { %227 = dma.done.wait [#allocation3], 4096  }
   0x6   :  { %228 = vsyncadd [#allocation3], 4294963200  ;;  %v89_v0 = vlaneseq  ;;  %v253_v2 = vld [vmem:[#allocation2 + $0xe8] sm:$0xff]  ;;  %v55_v3 = vld [vmem:[#allocation2 + $0xf0] sm:$0xff]  ;;  %s234_s0 = smov [#allocation5]   ;;  %s162_s16 = sshll.u32 %s332_s1, 4  ;;  %s163_s16 = int_to_ptr.hbm [resolvable:$true] %s162_s16 }
   0x7   :  { %v56_v4 = vld [vmem:[#allocation2 + $0xf8] sm:$0xff]  ;;  %v86_v5 = vrot.slane %v253_v2, 7  ;;  %v87_v6 = vrot.slane %v55_v3, 7  ;;  %v25_v8 = vld [vmem:[#allocation2] sm:$0xff]  ;;  %v26_v9 = vld [vmem:[#allocation2 + $0x8] sm:$0xff]  ;;  %s160_s13 = sshll.u32 %s234_s0, 4  ;;  %s161_s13 = int_to_ptr.vmem [resolvable:$true] %s160_s13 }
   0x8   :  { %v251_v1 = vshrl.u32 %v89_v0, 7  ;;  %v88_v7 = vrot.slane %v56_v4, 7  ;;  %v27_v10 = vld [vmem:[#allocation2 + $0x10] sm:$0xff]  ;;  %v57_v11 = vrot.slane %v25_v8, 7  ;;  %v58_v12 = vrot.slane %v26_v9, 7  ;;  %v28_v14 = vld [vmem:[#allocation2 + $0x18] sm:$0xff] }
   0x9   :  { %v59_v13 = vrot.slane %v27_v10, 7  ;;  %v29_v15 = vld [vmem:[#allocation2 + $0x20] sm:$0xff]  ;;  %v30_v16 = vld [vmem:[#allocation2 + $0x28] sm:$0xff]  ;;  %v60_v19 = vrot.slane %v28_v14, 7  ;;  %v31_v21 = vld [vmem:[#allocation2 + $0x30] sm:$0xff] }
   0xa   :  { %vm91_vm0 = vcmp.lt.s32.totalorder %v251_v1, 1  ;;  %v61_v20 = vrot.slane %v29_v15, 7  ;;  %v32_v22 = vld [vmem:[#allocation2 + $0x38] sm:$0xff]  ;;  %v62_v25 = vrot.slane %v30_v16, 7  ;;  %v33_v26 = vld [vmem:[#allocation2 + $0x40] sm:$0xff]  ;;  %v63_v28 = vrot.slane %v31_v21, 7 }
   0xb   :  { %v93_v17 = vsel %vm91_vm0, %v86_v5, %v87_v6  ;;  %v92_v18 = vsel %vm91_vm0, %v87_v6, %v88_v7  ;;  %v123_v23 = vsel %vm91_vm0, %v88_v7, %v57_v11  ;;  %v122_v24 = vsel %vm91_vm0, %v57_v11, %v58_v12  ;;  %v34_v29 = vld [vmem:[#allocation2 + $0x48] sm:$0xff]  ;;  %v35_v32 = vld [vmem:[#allocation2 + $0x50] sm:$0xff]  ;;  %v36_v35 = vld [vmem:[#allocation2 + $0x58] sm:$0xff] }
   0xc   :  { %124 = vst [vmem:[#allocation5] sm:$0xff] %v93_v17  ;;  %v121_v27 = vsel %vm91_vm0, %v58_v12, %v59_v13  ;;  %v120_v30 = vsel %vm91_vm0, %v59_v13, %v60_v19  ;;  %v64_v31 = vrot.slane %v32_v22, 7  ;;  %v119_v33 = vsel %vm91_vm0, %v60_v19, %v61_v20  ;;  %v37_v38 = vld [vmem:[#allocation2 + $0x60] sm:$0xff]  ;;  %v38_v41 = vld [vmem:[#allocation2 + $0x68] sm:$0xff]  ;;  %v39_v44 = vld [vmem:[#allocation2 + $0x70] sm:$0xff] }
   0xd   :  { %125 = vst [vmem:[#allocation5 + $0x8] sm:$0xff] %v92_v18  ;;  %v65_v34 = vrot.slane %v33_v26, 7  ;;  %v118_v36 = vsel %vm91_vm0, %v61_v20, %v62_v25  ;;  %v66_v37 = vrot.slane %v34_v29, 7  ;;  %v117_v39 = vsel %vm91_vm0, %v62_v25, %v63_v28  ;;  %v40_v47 = vld [vmem:[#allocation2 + $0x78] sm:$0xff]  ;;  %v41_v50 = vld [vmem:[#allocation2 + $0x80] sm:$0xff]  ;;  %v42_v53 = vld [vmem:[#allocation2 + $0x88] sm:$0xff] }
   0xe   :  { %126 = vst [vmem:[#allocation5 + $0x10] sm:$0xff] %v123_v23  ;;  %v67_v40 = vrot.slane %v35_v32, 7  ;;  %v116_v42 = vsel %vm91_vm0, %v63_v28, %v64_v31  ;;  %v68_v43 = vrot.slane %v36_v35, 7  ;;  %v69_v46 = vrot.slane %v37_v38, 7  ;;  %v43_v56 = vld [vmem:[#allocation2 + $0x90] sm:$0xff]  ;;  %v44_v59 = vld [vmem:[#allocation2 + $0x98] sm:$0xff] }
   0xf   :  { %127 = vst [vmem:[#allocation5 + $0x18] sm:$0xff] %v122_v24  ;;  %v115_v45 = vsel %vm91_vm0, %v64_v31, %v65_v34  ;;  %v114_v48 = vsel %vm91_vm0, %v65_v34, %v66_v37  ;;  %v70_v49 = vrot.slane %v38_v41, 7  ;;  %v71_v52 = vrot.slane %v39_v44, 7  ;;  %v45_v62 = vld [vmem:[#allocation2 + $0xa0] sm:$0xff]  ;;  %v46_v3 = vld [vmem:[#allocation2 + $0xa8] sm:$0xff]  ;;  %v47_v7 = vld [vmem:[#allocation2 + $0xb0] sm:$0xff] }
  0x10   :  { %128 = vst [vmem:[#allocation5 + $0x20] sm:$0xff] %v121_v27  ;;  %v113_v51 = vsel %vm91_vm0, %v66_v37, %v67_v40  ;;  %v112_v54 = vsel %vm91_vm0, %v67_v40, %v68_v43  ;;  %v72_v55 = vrot.slane %v40_v47, 7  ;;  %v111_v57 = vsel %vm91_vm0, %v68_v43, %v69_v46  ;;  %v48_v10 = vld [vmem:[#allocation2 + $0xb8] sm:$0xff]  ;;  %v49_v13 = vld [vmem:[#allocation2 + $0xc0] sm:$0xff]  ;;  %v50_v16 = vld [vmem:[#allocation2 + $0xc8] sm:$0xff] }
  0x11   :  { %129 = vst [vmem:[#allocation5 + $0x28] sm:$0xff] %v120_v30  ;;  %v73_v58 = vrot.slane %v41_v50, 7  ;;  %v110_v60 = vsel %vm91_vm0, %v69_v46, %v70_v49  ;;  %v74_v61 = vrot.slane %v42_v53, 7  ;;  %v109_v63 = vsel %vm91_vm0, %v70_v49, %v71_v52  ;;  %v51_v19 = vld [vmem:[#allocation2 + $0xd0] sm:$0xff]  ;;  %v52_v22 = vld [vmem:[#allocation2 + $0xd8] sm:$0xff]  ;;  %v53_v25 = vld [vmem:[#allocation2 + $0xe0] sm:$0xff] }
  0x12   :  { %130 = vst [vmem:[#allocation5 + $0x30] sm:$0xff] %v119_v33  ;;  %v75_v0 = vrot.slane %v43_v56, 7  ;;  %v108_v4 = vsel %vm91_vm0, %v71_v52, %v72_v55  ;;  %v76_v6 = vrot.slane %v44_v59, 7  ;;  %v77_v9 = vrot.slane %v45_v62, 7 }
  0x13   :  { %131 = vst [vmem:[#allocation5 + $0x38] sm:$0xff] %v118_v36  ;;  %v107_v8 = vsel %vm91_vm0, %v72_v55, %v73_v58  ;;  %v106_v11 = vsel %vm91_vm0, %v73_v58, %v74_v61  ;;  %v78_v12 = vrot.slane %v46_v3, 7  ;;  %v79_v15 = vrot.slane %v47_v7, 7 }
  0x14   :  { %132 = vst [vmem:[#allocation5 + $0x40] sm:$0xff] %v117_v39  ;;  %v105_v14 = vsel %vm91_vm0, %v74_v61, %v75_v0  ;;  %v104_v17 = vsel %vm91_vm0, %v75_v0, %v76_v6  ;;  %v80_v18 = vrot.slane %v48_v10, 7  ;;  %v103_v20 = vsel %vm91_vm0, %v76_v6, %v77_v9 }
  0x15   :  { %133 = vst [vmem:[#allocation5 + $0x48] sm:$0xff] %v116_v42  ;;  %v81_v21 = vrot.slane %v49_v13, 7  ;;  %v102_v23 = vsel %vm91_vm0, %v77_v9, %v78_v12  ;;  %v82_v24 = vrot.slane %v50_v16, 7  ;;  %v101_v26 = vsel %vm91_vm0, %v78_v12, %v79_v15 }
  0x16   :  { %134 = vst [vmem:[#allocation5 + $0x50] sm:$0xff] %v115_v45  ;;  %v83_v27 = vrot.slane %v51_v19, 7  ;;  %v100_v28 = vsel %vm91_vm0, %v79_v15, %v80_v18  ;;  %v84_v29 = vrot.slane %v52_v22, 7  ;;  %v85_v31 = vrot.slane %v53_v25, 7 }
  0x17   :  { %135 = vst [vmem:[#allocation5 + $0x58] sm:$0xff] %v114_v48  ;;  %v99_v30 = vsel %vm91_vm0, %v80_v18, %v81_v21  ;;  %v98_v32 = vsel %vm91_vm0, %v81_v21, %v82_v24 }
  0x18   :  { %136 = vst [vmem:[#allocation5 + $0x60] sm:$0xff] %v113_v51  ;;  %v97_v33 = vsel %vm91_vm0, %v82_v24, %v83_v27  ;;  %v96_v34 = vsel %vm91_vm0, %v83_v27, %v84_v29  ;;  %v95_v35 = vsel %vm91_vm0, %v84_v29, %v85_v31  ;;  %v94_v36 = vsel %vm91_vm0, %v85_v31, %v86_v5 }
  0x19   :  { %137 = vst [vmem:[#allocation5 + $0x68] sm:$0xff] %v112_v54 }
  0x1a   :  { %138 = vst [vmem:[#allocation5 + $0x70] sm:$0xff] %v111_v57 }
  0x1b   :  { %139 = vst [vmem:[#allocation5 + $0x78] sm:$0xff] %v110_v60 }
  0x1c   :  { %140 = vst [vmem:[#allocation5 + $0x80] sm:$0xff] %v109_v63 }
  0x1d   :  { %141 = vst [vmem:[#allocation5 + $0x88] sm:$0xff] %v108_v4 }
  0x1e   :  { %142 = vst [vmem:[#allocation5 + $0x90] sm:$0xff] %v107_v8 }
  0x1f   :  { %143 = vst [vmem:[#allocation5 + $0x98] sm:$0xff] %v106_v11 }
  0x20   :  { %144 = vst [vmem:[#allocation5 + $0xa0] sm:$0xff] %v105_v14 }
  0x21   :  { %145 = vst [vmem:[#allocation5 + $0xa8] sm:$0xff] %v104_v17 }
  0x22   :  { %146 = vst [vmem:[#allocation5 + $0xb0] sm:$0xff] %v103_v20 }
  0x23   :  { %147 = vst [vmem:[#allocation5 + $0xb8] sm:$0xff] %v102_v23 }
  0x24   :  { %148 = vst [vmem:[#allocation5 + $0xc0] sm:$0xff] %v101_v26 }
  0x25   :  { %149 = vst [vmem:[#allocation5 + $0xc8] sm:$0xff] %v100_v28 }
  0x26   :  { %150 = vst [vmem:[#allocation5 + $0xd0] sm:$0xff] %v99_v30 }
  0x27   :  { %151 = vst [vmem:[#allocation5 + $0xd8] sm:$0xff] %v98_v32 }
  0x28   :  { %152 = vst [vmem:[#allocation5 + $0xe0] sm:$0xff] %v97_v33 }
  0x29   :  { %153 = vst [vmem:[#allocation5 + $0xe8] sm:$0xff] %v96_v34 }
  0x2a   :  { %154 = vst [vmem:[#allocation5 + $0xf0] sm:$0xff] %v95_v35 }
  0x2b   :  { %155 = vst [vmem:[#allocation5 + $0xf8] sm:$0xff] %v94_v36 }
  0x2c   :  { %168 = dma.vmem_to_hbm [thread:$0]  %s161_s13, 4096, %s163_s16, [#allocation4], %s232_s11, %s232_s11, %s233_s12  }
  0x2d   :  { %229 = dma.done.wait [#allocation4], 4096  }
  0x2e   :  { %230 = vsyncadd [#allocation4], 4294963200 }
  0x2f   :  { %173 = vsyncpa [#allocation3], 1 }
  0x30   :  { %174 = vsyncpa [#allocation4], 1 }

// kernel: a_call__.4
= control target key start
LH: loop header
LB: loop body
LE: loop exit
PB: predicated region body
PF: predicated region fallthrough
CT: control target
= control target key end

     0   :  { %s499_s0 = inlined_call_operand.vmem [shape: f32[512,128], index: 0, kind: input, shape index: {}]   ;;  %s500_s1 = inlined_call_operand.vmem [shape: f32[1,128], index: 1, kind: output, shape index: {0}]   ;;  %s501_s2 = inlined_call_operand.vmem [shape: f32[1,128], index: 2, kind: output, shape index: {1}]  }
   0x1   :  { %v10_v0 = vld [vmem:[%s499_s0] sm:$0xff]  ;;  %v11_v1 = vld [vmem:[%s499_s0 + $0x8] sm:$0xff]  ;;  %v12_v2 = vld [vmem:[%s499_s0 + $0x10] sm:$0xff] }
   0x2   :  { %v13_v3 = vld [vmem:[%s499_s0 + $0x18] sm:$0xff]  ;;  %v74_v4 = vadd.f32 %v11_v1, %v10_v0  ;;  %v144_v5 = vmul.f32 %v10_v0, %v10_v0  ;;  %v145_v6 = vmul.f32 %v11_v1, %v11_v1  ;;  %v146_v7 = vmul.f32 %v12_v2, %v12_v2  ;;  %v14_v8 = vld [vmem:[%s499_s0 + $0x20] sm:$0xff]  ;;  %v15_v12 = vld [vmem:[%s499_s0 + $0x28] sm:$0xff] }
   0x3   :  { %v147_v10 = vmul.f32 %v13_v3, %v13_v3  ;;  %v148_v14 = vmul.f32 %v14_v8, %v14_v8  ;;  %v16_v16 = vld [vmem:[%s499_s0 + $0x30] sm:$0xff]  ;;  %v149_v18 = vmul.f32 %v15_v12, %v15_v12  ;;  %v17_v20 = vld [vmem:[%s499_s0 + $0x38] sm:$0xff]  ;;  %v18_v24 = vld [vmem:[%s499_s0 + $0x40] sm:$0xff] }
   0x4   :  { %v75_v9 = vadd.f32 %v74_v4, %v12_v2  ;;  %v208_v11 = vadd.f32 %v145_v6, %v144_v5  ;;  %v150_v22 = vmul.f32 %v16_v16, %v16_v16  ;;  %v151_v26 = vmul.f32 %v17_v20, %v17_v20  ;;  %v19_v28 = vld [vmem:[%s499_s0 + $0x48] sm:$0xff]  ;;  %v20_v32 = vld [vmem:[%s499_s0 + $0x50] sm:$0xff]  ;;  %v21_v36 = vld [vmem:[%s499_s0 + $0x58] sm:$0xff] }
   0x5   :  { %v152_v30 = vmul.f32 %v18_v24, %v18_v24  ;;  %v153_v34 = vmul.f32 %v19_v28, %v19_v28  ;;  %v154_v38 = vmul.f32 %v20_v32, %v20_v32  ;;  %v22_v40 = vld [vmem:[%s499_s0 + $0x60] sm:$0xff]  ;;  %v155_v42 = vmul.f32 %v21_v36, %v21_v36  ;;  %v23_v44 = vld [vmem:[%s499_s0 + $0x68] sm:$0xff]  ;;  %v24_v48 = vld [vmem:[%s499_s0 + $0x70] sm:$0xff] }
   0x6   :  { %v76_v13 = vadd.f32 %v75_v9, %v13_v3  ;;  %v209_v15 = vadd.f32 %v208_v11, %v146_v7  ;;  %v156_v46 = vmul.f32 %v22_v40, %v22_v40  ;;  %v157_v50 = vmul.f32 %v23_v44, %v23_v44  ;;  %v25_v52 = vld [vmem:[%s499_s0 + $0x78] sm:$0xff]  ;;  %v26_v56 = vld [vmem:[%s499_s0 + $0x80] sm:$0xff]  ;;  %v27_v60 = vld [vmem:[%s499_s0 + $0x88] sm:$0xff] }
   0x7   :  { %v158_v54 = vmul.f32 %v24_v48, %v24_v48  ;;  %v159_v58 = vmul.f32 %v25_v52, %v25_v52  ;;  %v160_v62 = vmul.f32 %v26_v56, %v26_v56  ;;  %v28_v0 = vld [vmem:[%s499_s0 + $0x90] sm:$0xff]  ;;  %v161_v2 = vmul.f32 %v27_v60, %v27_v60  ;;  %v29_v4 = vld [vmem:[%s499_s0 + $0x98] sm:$0xff] }
   0x8   :  { %v77_v17 = vadd.f32 %v76_v13, %v14_v8  ;;  %v210_v19 = vadd.f32 %v209_v15, %v147_v10  ;;  %v162_v6 = vmul.f32 %v28_v0, %v28_v0  ;;  %v30_v8 = vld [vmem:[%s499_s0 + $0xa0] sm:$0xff]  ;;  %v163_v10 = vmul.f32 %v29_v4, %v29_v4 }
   0xa   :  { %v78_v21 = vadd.f32 %v77_v17, %v15_v12  ;;  %v211_v23 = vadd.f32 %v210_v19, %v148_v14  ;;  %v31_v12 = vld [vmem:[%s499_s0 + $0xa8] sm:$0xff]  ;;  %v164_v14 = vmul.f32 %v30_v8, %v30_v8 }
   0xc   :  { %v79_v25 = vadd.f32 %v78_v21, %v16_v16  ;;  %v212_v27 = vadd.f32 %v211_v23, %v149_v18  ;;  %v32_v16 = vld [vmem:[%s499_s0 + $0xb0] sm:$0xff]  ;;  %v165_v18 = vmul.f32 %v31_v12, %v31_v12 }
   0xe   :  { %v80_v29 = vadd.f32 %v79_v25, %v17_v20  ;;  %v213_v31 = vadd.f32 %v212_v27, %v150_v22  ;;  %v33_v20 = vld [vmem:[%s499_s0 + $0xb8] sm:$0xff]  ;;  %v166_v22 = vmul.f32 %v32_v16, %v32_v16 }
  0x10   :  { %v81_v33 = vadd.f32 %v80_v29, %v18_v24  ;;  %v214_v35 = vadd.f32 %v213_v31, %v151_v26  ;;  %v34_v24 = vld [vmem:[%s499_s0 + $0xc0] sm:$0xff]  ;;  %v167_v26 = vmul.f32 %v33_v20, %v33_v20 }
  0x12   :  { %v82_v37 = vadd.f32 %v81_v33, %v19_v28  ;;  %v215_v39 = vadd.f32 %v214_v35, %v152_v30  ;;  %v35_v28 = vld [vmem:[%s499_s0 + $0xc8] sm:$0xff]  ;;  %v168_v30 = vmul.f32 %v34_v24, %v34_v24 }
  0x14   :  { %v83_v41 = vadd.f32 %v82_v37, %v20_v32  ;;  %v216_v43 = vadd.f32 %v215_v39, %v153_v34  ;;  %v36_v32 = vld [vmem:[%s499_s0 + $0xd0] sm:$0xff]  ;;  %v169_v34 = vmul.f32 %v35_v28, %v35_v28 }
  0x16   :  { %v84_v45 = vadd.f32 %v83_v41, %v21_v36  ;;  %v217_v47 = vadd.f32 %v216_v43, %v154_v38  ;;  %v37_v36 = vld [vmem:[%s499_s0 + $0xd8] sm:$0xff]  ;;  %v170_v38 = vmul.f32 %v36_v32, %v36_v32 }
  0x18   :  { %v85_v49 = vadd.f32 %v84_v45, %v22_v40  ;;  %v218_v51 = vadd.f32 %v217_v47, %v155_v42  ;;  %v38_v40 = vld [vmem:[%s499_s0 + $0xe0] sm:$0xff]  ;;  %v171_v42 = vmul.f32 %v37_v36, %v37_v36 }
  0x1a   :  { %v86_v53 = vadd.f32 %v85_v49, %v23_v44  ;;  %v219_v55 = vadd.f32 %v218_v51, %v156_v46  ;;  %v39_v44 = vld [vmem:[%s499_s0 + $0xe8] sm:$0xff]  ;;  %v172_v46 = vmul.f32 %v38_v40, %v38_v40 }
  0x1c   :  { %v87_v57 = vadd.f32 %v86_v53, %v24_v48  ;;  %v220_v59 = vadd.f32 %v219_v55, %v157_v50  ;;  %v40_v48 = vld [vmem:[%s499_s0 + $0xf0] sm:$0xff]  ;;  %v173_v50 = vmul.f32 %v39_v44, %v39_v44 }
  0x1e   :  { %v88_v61 = vadd.f32 %v87_v57, %v25_v52  ;;  %v221_v63 = vadd.f32 %v220_v59, %v158_v54  ;;  %v41_v52 = vld [vmem:[%s499_s0 + $0xf8] sm:$0xff]  ;;  %v174_v54 = vmul.f32 %v40_v48, %v40_v48 }
  0x20   :  { %v89_v1 = vadd.f32 %v88_v61, %v26_v56  ;;  %v222_v3 = vadd.f32 %v221_v63, %v159_v58  ;;  %v42_v56 = vld [vmem:[%s499_s0 + $0x100] sm:$0xff]  ;;  %v175_v58 = vmul.f32 %v41_v52, %v41_v52 }
  0x22   :  { %v90_v5 = vadd.f32 %v89_v1, %v27_v60  ;;  %v223_v7 = vadd.f32 %v222_v3, %v160_v62  ;;  %v43_v60 = vld [vmem:[%s499_s0 + $0x108] sm:$0xff]  ;;  %v176_v62 = vmul.f32 %v42_v56, %v42_v56 }
  0x24   :  { %v91_v9 = vadd.f32 %v90_v5, %v28_v0  ;;  %v224_v11 = vadd.f32 %v223_v7, %v161_v2  ;;  %v44_v0 = vld [vmem:[%s499_s0 + $0x110] sm:$0xff]  ;;  %v177_v2 = vmul.f32 %v43_v60, %v43_v60 }
  0x26   :  { %v92_v13 = vadd.f32 %v91_v9, %v29_v4  ;;  %v225_v15 = vadd.f32 %v224_v11, %v162_v6  ;;  %v45_v4 = vld [vmem:[%s499_s0 + $0x118] sm:$0xff]  ;;  %v178_v6 = vmul.f32 %v44_v0, %v44_v0 }
  0x28   :  { %v93_v17 = vadd.f32 %v92_v13, %v30_v8  ;;  %v226_v19 = vadd.f32 %v225_v15, %v163_v10  ;;  %v46_v8 = vld [vmem:[%s499_s0 + $0x120] sm:$0xff]  ;;  %v179_v10 = vmul.f32 %v45_v4, %v45_v4 }
  0x2a   :  { %v94_v21 = vadd.f32 %v93_v17, %v31_v12  ;;  %v227_v23 = vadd.f32 %v226_v19, %v164_v14  ;;  %v47_v12 = vld [vmem:[%s499_s0 + $0x128] sm:$0xff]  ;;  %v180_v14 = vmul.f32 %v46_v8, %v46_v8 }
  0x2c   :  { %v95_v25 = vadd.f32 %v94_v21, %v32_v16  ;;  %v228_v27 = vadd.f32 %v227_v23, %v165_v18  ;;  %v48_v16 = vld [vmem:[%s499_s0 + $0x130] sm:$0xff]  ;;  %v181_v18 = vmul.f32 %v47_v12, %v47_v12 }
  0x2e   :  { %v96_v29 = vadd.f32 %v95_v25, %v33_v20  ;;  %v229_v31 = vadd.f32 %v228_v27, %v166_v22  ;;  %v49_v20 = vld [vmem:[%s499_s0 + $0x138] sm:$0xff]  ;;  %v182_v22 = vmul.f32 %v48_v16, %v48_v16 }
  0x30   :  { %v97_v33 = vadd.f32 %v96_v29, %v34_v24  ;;  %v230_v35 = vadd.f32 %v229_v31, %v167_v26  ;;  %v50_v24 = vld [vmem:[%s499_s0 + $0x140] sm:$0xff]  ;;  %v183_v26 = vmul.f32 %v49_v20, %v49_v20 }
  0x32   :  { %v98_v37 = vadd.f32 %v97_v33, %v35_v28  ;;  %v231_v39 = vadd.f32 %v230_v35, %v168_v30  ;;  %v51_v28 = vld [vmem:[%s499_s0 + $0x148] sm:$0xff]  ;;  %v184_v30 = vmul.f32 %v50_v24, %v50_v24 }
  0x34   :  { %v99_v41 = vadd.f32 %v98_v37, %v36_v32  ;;  %v232_v43 = vadd.f32 %v231_v39, %v169_v34  ;;  %v52_v32 = vld [vmem:[%s499_s0 + $0x150] sm:$0xff]  ;;  %v185_v34 = vmul.f32 %v51_v28, %v51_v28 }
  0x36   :  { %v100_v45 = vadd.f32 %v99_v41, %v37_v36  ;;  %v233_v47 = vadd.f32 %v232_v43, %v170_v38  ;;  %v53_v36 = vld [vmem:[%s499_s0 + $0x158] sm:$0xff]  ;;  %v186_v38 = vmul.f32 %v52_v32, %v52_v32 }
  0x38   :  { %v101_v49 = vadd.f32 %v100_v45, %v38_v40  ;;  %v234_v51 = vadd.f32 %v233_v47, %v171_v42  ;;  %v54_v40 = vld [vmem:[%s499_s0 + $0x160] sm:$0xff]  ;;  %v187_v42 = vmul.f32 %v53_v36, %v53_v36 }
  0x3a   :  { %v102_v53 = vadd.f32 %v101_v49, %v39_v44  ;;  %v235_v55 = vadd.f32 %v234_v51, %v172_v46  ;;  %v55_v44 = vld [vmem:[%s499_s0 + $0x168] sm:$0xff]  ;;  %v188_v46 = vmul.f32 %v54_v40, %v54_v40 }
  0x3c   :  { %v103_v57 = vadd.f32 %v102_v53, %v40_v48  ;;  %v236_v59 = vadd.f32 %v235_v55, %v173_v50  ;;  %v56_v48 = vld [vmem:[%s499_s0 + $0x170] sm:$0xff]  ;;  %v189_v50 = vmul.f32 %v55_v44, %v55_v44 }
  0x3e   :  { %v104_v61 = vadd.f32 %v103_v57, %v41_v52  ;;  %v237_v63 = vadd.f32 %v236_v59, %v174_v54  ;;  %v57_v52 = vld [vmem:[%s499_s0 + $0x178] sm:$0xff]  ;;  %v190_v54 = vmul.f32 %v56_v48, %v56_v48 }
  0x40   :  { %v105_v1 = vadd.f32 %v104_v61, %v42_v56  ;;  %v238_v3 = vadd.f32 %v237_v63, %v175_v58  ;;  %v58_v56 = vld [vmem:[%s499_s0 + $0x180] sm:$0xff]  ;;  %v191_v58 = vmul.f32 %v57_v52, %v57_v52 }
  0x42   :  { %v106_v5 = vadd.f32 %v105_v1, %v43_v60  ;;  %v239_v7 = vadd.f32 %v238_v3, %v176_v62  ;;  %v59_v60 = vld [vmem:[%s499_s0 + $0x188] sm:$0xff]  ;;  %v192_v62 = vmul.f32 %v58_v56, %v58_v56 }
  0x44   :  { %v107_v9 = vadd.f32 %v106_v5, %v44_v0  ;;  %v240_v11 = vadd.f32 %v239_v7, %v177_v2  ;;  %v60_v0 = vld [vmem:[%s499_s0 + $0x190] sm:$0xff]  ;;  %v193_v2 = vmul.f32 %v59_v60, %v59_v60 }
  0x46   :  { %v108_v13 = vadd.f32 %v107_v9, %v45_v4  ;;  %v241_v15 = vadd.f32 %v240_v11, %v178_v6  ;;  %v61_v4 = vld [vmem:[%s499_s0 + $0x198] sm:$0xff]  ;;  %v194_v6 = vmul.f32 %v60_v0, %v60_v0 }
  0x48   :  { %v109_v17 = vadd.f32 %v108_v13, %v46_v8  ;;  %v242_v19 = vadd.f32 %v241_v15, %v179_v10  ;;  %v62_v8 = vld [vmem:[%s499_s0 + $0x1a0] sm:$0xff]  ;;  %v195_v10 = vmul.f32 %v61_v4, %v61_v4 }
  0x4a   :  { %v110_v21 = vadd.f32 %v109_v17, %v47_v12  ;;  %v243_v23 = vadd.f32 %v242_v19, %v180_v14  ;;  %v63_v12 = vld [vmem:[%s499_s0 + $0x1a8] sm:$0xff]  ;;  %v196_v14 = vmul.f32 %v62_v8, %v62_v8 }
  0x4c   :  { %v111_v25 = vadd.f32 %v110_v21, %v48_v16  ;;  %v244_v27 = vadd.f32 %v243_v23, %v181_v18  ;;  %v64_v16 = vld [vmem:[%s499_s0 + $0x1b0] sm:$0xff]  ;;  %v197_v18 = vmul.f32 %v63_v12, %v63_v12 }
  0x4e   :  { %v112_v29 = vadd.f32 %v111_v25, %v49_v20  ;;  %v245_v31 = vadd.f32 %v244_v27, %v182_v22  ;;  %v65_v20 = vld [vmem:[%s499_s0 + $0x1b8] sm:$0xff]  ;;  %v198_v22 = vmul.f32 %v64_v16, %v64_v16 }
  0x50   :  { %v113_v33 = vadd.f32 %v112_v29, %v50_v24  ;;  %v246_v35 = vadd.f32 %v245_v31, %v183_v26  ;;  %v66_v24 = vld [vmem:[%s499_s0 + $0x1c0] sm:$0xff]  ;;  %v199_v26 = vmul.f32 %v65_v20, %v65_v20 }
  0x52   :  { %v114_v37 = vadd.f32 %v113_v33, %v51_v28  ;;  %v247_v39 = vadd.f32 %v246_v35, %v184_v30  ;;  %v67_v28 = vld [vmem:[%s499_s0 + $0x1c8] sm:$0xff]  ;;  %v200_v30 = vmul.f32 %v66_v24, %v66_v24 }
  0x54   :  { %v115_v41 = vadd.f32 %v114_v37, %v52_v32  ;;  %v248_v43 = vadd.f32 %v247_v39, %v185_v34  ;;  %v68_v32 = vld [vmem:[%s499_s0 + $0x1d0] sm:$0xff]  ;;  %v201_v34 = vmul.f32 %v67_v28, %v67_v28 }
  0x56   :  { %v116_v45 = vadd.f32 %v115_v41, %v53_v36  ;;  %v249_v47 = vadd.f32 %v248_v43, %v186_v38  ;;  %v69_v36 = vld [vmem:[%s499_s0 + $0x1d8] sm:$0xff]  ;;  %v202_v38 = vmul.f32 %v68_v32, %v68_v32 }
  0x58   :  { %v117_v49 = vadd.f32 %v116_v45, %v54_v40  ;;  %v250_v51 = vadd.f32 %v249_v47, %v187_v42  ;;  %v70_v40 = vld [vmem:[%s499_s0 + $0x1e0] sm:$0xff]  ;;  %v203_v42 = vmul.f32 %v69_v36, %v69_v36 }
  0x5a   :  { %v118_v53 = vadd.f32 %v117_v49, %v55_v44  ;;  %v251_v55 = vadd.f32 %v250_v51, %v188_v46  ;;  %v71_v44 = vld [vmem:[%s499_s0 + $0x1e8] sm:$0xff]  ;;  %v204_v46 = vmul.f32 %v70_v40, %v70_v40 }
  0x5c   :  { %v119_v57 = vadd.f32 %v118_v53, %v56_v48  ;;  %v252_v59 = vadd.f32 %v251_v55, %v189_v50  ;;  %v72_v48 = vld [vmem:[%s499_s0 + $0x1f0] sm:$0xff]  ;;  %v205_v50 = vmul.f32 %v71_v44, %v71_v44 }
  0x5e   :  { %v120_v61 = vadd.f32 %v119_v57, %v57_v52  ;;  %v253_v63 = vadd.f32 %v252_v59, %v190_v54  ;;  %v73_v52 = vld [vmem:[%s499_s0 + $0x1f8] sm:$0xff]  ;;  %v206_v54 = vmul.f32 %v72_v48, %v72_v48 }
  0x5f   :  { %v207_v57 = vmul.f32 %v73_v52, %v73_v52 }
  0x60   :  { %v121_v1 = vadd.f32 %v120_v61, %v58_v56  ;;  %v254_v3 = vadd.f32 %v253_v63, %v191_v58 }
  0x62   :  { %v122_v5 = vadd.f32 %v121_v1, %v59_v60  ;;  %v255_v7 = vadd.f32 %v254_v3, %v192_v62 }
  0x64   :  { %v123_v9 = vadd.f32 %v122_v5, %v60_v0  ;;  %v256_v11 = vadd.f32 %v255_v7, %v193_v2 }
  0x66   :  { %v124_v13 = vadd.f32 %v123_v9, %v61_v4  ;;  %v257_v15 = vadd.f32 %v256_v11, %v194_v6 }
  0x68   :  { %v125_v17 = vadd.f32 %v124_v13, %v62_v8  ;;  %v258_v19 = vadd.f32 %v257_v15, %v195_v10 }
  0x6a   :  { %v126_v21 = vadd.f32 %v125_v17, %v63_v12  ;;  %v259_v23 = vadd.f32 %v258_v19, %v196_v14 }
  0x6c   :  { %v127_v25 = vadd.f32 %v126_v21, %v64_v16  ;;  %v260_v27 = vadd.f32 %v259_v23, %v197_v18 }
  0x6e   :  { %v128_v29 = vadd.f32 %v127_v25, %v65_v20  ;;  %v261_v31 = vadd.f32 %v260_v27, %v198_v22 }
  0x70   :  { %v129_v33 = vadd.f32 %v128_v29, %v66_v24  ;;  %v262_v35 = vadd.f32 %v261_v31, %v199_v26 }
  0x72   :  { %v130_v37 = vadd.f32 %v129_v33, %v67_v28  ;;  %v263_v39 = vadd.f32 %v262_v35, %v200_v30 }
  0x74   :  { %v131_v41 = vadd.f32 %v130_v37, %v68_v32  ;;  %v264_v43 = vadd.f32 %v263_v39, %v201_v34 }
  0x76   :  { %v132_v45 = vadd.f32 %v131_v41, %v69_v36  ;;  %v265_v47 = vadd.f32 %v264_v43, %v202_v38 }
  0x78   :  { %v133_v49 = vadd.f32 %v132_v45, %v70_v40  ;;  %v266_v51 = vadd.f32 %v265_v47, %v203_v42 }
  0x7a   :  { %v134_v53 = vadd.f32 %v133_v49, %v71_v44  ;;  %v267_v55 = vadd.f32 %v266_v51, %v204_v46 }
  0x7c   :  { %v135_v56 = vadd.f32 %v134_v53, %v72_v48  ;;  %v268_v58 = vadd.f32 %v267_v55, %v205_v50 }
  0x7e   :  { %v136_v59 = vadd.f32 %v135_v56, %v73_v52  ;;  %v269_v60 = vadd.f32 %v268_v58, %v206_v54 }
  0x80   :  { %v137_v61 = vrot.slane %v136_v59, 4  ;;  %v270_v62 = vadd.f32 %v269_v60, %v207_v57 }
  0x82   :  { %v138_v63 = vadd.f32 %v137_v61, %v136_v59  ;;  %v271_v0 = vrot.slane %v270_v62, 4 }
  0x84   :  { %v139_v1 = vrot.slane %v138_v63, 2  ;;  %v272_v2 = vadd.f32 %v271_v0, %v270_v62 }
  0x86   :  { %v140_v3 = vadd.f32 %v139_v1, %v138_v63  ;;  %v273_v4 = vrot.slane %v272_v2, 2 }
  0x88   :  { %v141_v5 = vrot.slane %v140_v3, 1  ;;  %v274_v6 = vadd.f32 %v273_v4, %v272_v2 }
  0x8a   :  { %v142_v7 = vadd.f32 %v141_v5, %v140_v3  ;;  %v275_v8 = vrot.slane %v274_v6, 1 }
  0x8c   :  { %143 = vst [vmem:[%s500_s1] sm:$0x1] %v142_v7  ;;  %v276_v9 = vadd.f32 %v275_v8, %v274_v6 }
  0x8e   :  { %277 = vst [vmem:[%s501_s2] sm:$0x1] %v276_v9 }

// kernel: a_call__.6
= control target key start
LH: loop header
LB: loop body
LE: loop exit
PB: predicated region body
PF: predicated region fallthrough
CT: control target
= control target key end

     0   :  { %s570_s3 = inlined_call_operand.vmem [shape: bf16[128,128], index: 3, kind: input, shape index: {}]   ;;  %s571_s1 = inlined_call_operand.vmem [shape: f32[1,128], index: 1, kind: input, shape index: {}]   ;;  %s572_s2 = inlined_call_operand.vmem [shape: f32[1,128], index: 2, kind: input, shape index: {}]   ;;  %s573_s0 = inlined_call_operand.vmem [shape: f32[128,128], index: 0, kind: input, shape index: {}]   ;;  %s574_s4 = inlined_call_operand.vmem [shape: f32[128,128], index: 4, kind: output, shape index: {}]  }
   0x1   :  { %v356_v0 = vld [vmem:[%s570_s3 + $0x38] sm:$0xff]  ;;  %v355_v1 = vld [vmem:[%s570_s3 + $0x30] sm:$0xff]  ;;  %v354_v2 = vld [vmem:[%s570_s3 + $0x28] sm:$0xff] }
   0x2   :  { %197 = vmatpush.bf16.msra.mxu0 %v356_v0  ;;  %357 = vmatpush.bf16.msra.mxu1 %v356_v0  ;;  %v353_v3 = vld [vmem:[%s570_s3 + $0x20] sm:$0xff]  ;;  %v352_v5 = vld [vmem:[%s570_s3 + $0x18] sm:$0xff]  ;;  %v38_v7 = vld [vmem:[%s573_s0 + $0x8] sm:$0xff] }
   0x3   :  { %358 = vmatpush.bf16.msra.mxu2 %v356_v0  ;;  %359 = vmatpush.bf16.msra.mxu3 %v356_v0  ;;  %v423_v4 = vld [vmem:[%s571_s1] ss:$0 sm:$0xff]  ;;  %v42_v9 = vld [vmem:[%s573_s0 + $0x28] sm:$0xff]  ;;  %v351_v20 = vld [vmem:[%s570_s3 + $0x10] sm:$0xff] }
   0x4   :  { %v37_v6 = vld [vmem:[%s573_s0] sm:$0xff]  ;;  %v46_v11 = vld [vmem:[%s573_s0 + $0x48] sm:$0xff]  ;;  %v58_v16 = vmul.f32 %v423_v4, %v38_v7  ;;  %v62_v18 = vmul.f32 %v423_v4, %v42_v9  ;;  %v39_v44 = vld [vmem:[%s573_s0 + $0x10] sm:$0xff] }
   0x5   :  { %v41_v8 = vld [vmem:[%s573_s0 + $0x20] sm:$0xff]  ;;  %v50_v13 = vld [vmem:[%s573_s0 + $0x68] sm:$0xff]  ;;  %v57_v14 = vmul.f32 %v423_v4, %v37_v6  ;;  %v66_v21 = vmul.f32 %v423_v4, %v46_v11  ;;  %v40_v45 = vld [vmem:[%s573_s0 + $0x18] sm:$0xff]  ;;  %v59_v54 = vmul.f32 %v423_v4, %v39_v44 }
   0x6   :  { %198 = vmatpush.bf16.msra.mxu0 %v355_v1  ;;  %360 = vmatpush.bf16.msra.mxu1 %v355_v1  ;;  %v45_v10 = vld [vmem:[%s573_s0 + $0x40] sm:$0xff]  ;;  %v61_v17 = vmul.f32 %v423_v4, %v41_v8  ;;  %v70_v23 = vmul.f32 %v423_v4, %v50_v13  ;;  %v350_v29 = vld [vmem:[%s570_s3 + $0x8] sm:$0xff]  ;;  %v43_v48 = vld [vmem:[%s573_s0 + $0x30] sm:$0xff]  ;;  %v60_v55 = vmul.f32 %v423_v4, %v40_v45 }
   0x7   :  { %361 = vmatpush.bf16.msra.mxu2 %v355_v1  ;;  %362 = vmatpush.bf16.msra.mxu3 %v355_v1  ;;  %v49_v12 = vld [vmem:[%s573_s0 + $0x60] sm:$0xff]  ;;  %v65_v19 = vmul.f32 %v423_v4, %v45_v10  ;;  %v44_v49 = vld [vmem:[%s573_s0 + $0x38] sm:$0xff]  ;;  %v47_v50 = vld [vmem:[%s573_s0 + $0x50] sm:$0xff]  ;;  %v63_v56 = vmul.f32 %v423_v4, %v43_v48 }
   0x8   :  { %v456_v15 = vld [vmem:[%s572_s2] ss:$0 sm:$0xff]  ;;  %v69_v22 = vmul.f32 %v423_v4, %v49_v12  ;;  %v48_v51 = vld [vmem:[%s573_s0 + $0x58] sm:$0xff]  ;;  %v51_v52 = vld [vmem:[%s573_s0 + $0x70] sm:$0xff]  ;;  %v64_v57 = vmul.f32 %v423_v4, %v44_v49  ;;  %v67_v58 = vmul.f32 %v423_v4, %v47_v50 }
   0x9   :  { %v77_v24 = vadd.f32 %v456_v15, %v57_v14  ;;  %v78_v25 = vadd.f32 %v456_v15, %v58_v16  ;;  %v81_v26 = vadd.f32 %v456_v15, %v61_v17  ;;  %v82_v27 = vadd.f32 %v456_v15, %v62_v18  ;;  %v349_v37 = vld [vmem:[%s570_s3] sm:$0xff]  ;;  %v52_v53 = vld [vmem:[%s573_s0 + $0x78] sm:$0xff] }
   0xa   :  { %199 = vmatpush.bf16.msra.mxu0 %v354_v2  ;;  %363 = vmatpush.bf16.msra.mxu1 %v354_v2  ;;  %v85_v28 = vadd.f32 %v456_v15, %v65_v19  ;;  %v86_v30 = vadd.f32 %v456_v15, %v66_v21  ;;  %v89_v31 = vadd.f32 %v456_v15, %v69_v22 }
   0xb   :  { %364 = vmatpush.bf16.msra.mxu2 %v354_v2  ;;  %365 = vmatpush.bf16.msra.mxu3 %v354_v2  ;;  %v90_v32 = vadd.f32 %v456_v15, %v70_v23  ;;  %v93_v33 = vmax.f32 %v77_v24, 0.0  ;;  %v94_v34 = vmax.f32 %v78_v25, 0.0  ;;  %v97_v35 = vmax.f32 %v81_v26, 0.0 }
   0xc   :  { %v98_v36 = vmax.f32 %v82_v27, 0.0  ;;  %v101_v38 = vmax.f32 %v85_v28, 0.0  ;;  %v102_v39 = vmax.f32 %v86_v30, 0.0  ;;  %v105_v40 = vmax.f32 %v89_v31, 0.0 }
   0xd   :  { %v106_v41 = vmax.f32 %v90_v32, 0.0  ;;  %v125_v42 = vpack.c.bf16 %v94_v34, %v93_v33  ;;  %v68_v59 = vmul.f32 %v423_v4, %v48_v51  ;;  %v71_v60 = vmul.f32 %v423_v4, %v51_v52 }
   0xe   :  { %200 = vmatpush.bf16.msra.mxu0 %v353_v3  ;;  %366 = vmatpush.bf16.msra.mxu1 %v353_v3  ;;  %v127_v43 = vpack.c.bf16 %v98_v36, %v97_v35  ;;  %v129_v46 = vpack.c.bf16 %v102_v39, %v101_v38  ;;  %v72_v61 = vmul.f32 %v423_v4, %v52_v53 }
   0xf   :  { %367 = vmatpush.bf16.msra.mxu2 %v353_v3  ;;  %368 = vmatpush.bf16.msra.mxu3 %v353_v3  ;;  %v131_v47 = vpack.c.bf16 %v106_v41, %v105_v40  ;;  %v79_v62 = vadd.f32 %v456_v15, %v59_v54  ;;  %v80_v63 = vadd.f32 %v456_v15, %v60_v55 }
  0x10   :  { %v83_v0 = vadd.f32 %v456_v15, %v63_v56  ;;  %v84_v1 = vadd.f32 %v456_v15, %v64_v57  ;;  %v87_v2 = vadd.f32 %v456_v15, %v67_v58  ;;  %v88_v3 = vadd.f32 %v456_v15, %v68_v59 }
  0x11   :  { %v92_v6 = vadd.f32 %v456_v15, %v72_v61  ;;  %v95_v7 = vmax.f32 %v79_v62, 0.0  ;;  %v96_v8 = vmax.f32 %v80_v63, 0.0 }
  0x12   :  { %201 = vmatpush.bf16.msra.mxu0 %v352_v5  ;;  %369 = vmatpush.bf16.msra.mxu1 %v352_v5  ;;  %v99_v9 = vmax.f32 %v83_v0, 0.0  ;;  %v100_v4 = vmax.f32 %v84_v1, 0.0  ;;  %v103_v10 = vmax.f32 %v87_v2, 0.0  ;;  %v104_v11 = vmax.f32 %v88_v3, 0.0 }
  0x13   :  { %370 = vmatpush.bf16.msra.mxu2 %v352_v5  ;;  %371 = vmatpush.bf16.msra.mxu3 %v352_v5  ;;  %v91_v5 = vadd.f32 %v456_v15, %v71_v60  ;;  %v108_v13 = vmax.f32 %v92_v6, 0.0  ;;  %v126_v14 = vpack.c.bf16 %v96_v8, %v95_v7 }
  0x14   :  { %v128_v16 = vpack.c.bf16 %v100_v4, %v99_v9  ;;  %v130_v17 = vpack.c.bf16 %v104_v11, %v103_v10 }
  0x15   :  { %v107_v12 = vmax.f32 %v91_v5, 0.0 }
  0x16   :  { %202 = vmatpush.bf16.msra.mxu0 %v351_v20  ;;  %372 = vmatpush.bf16.msra.mxu1 %v351_v20 }
  0x17   :  { %373 = vmatpush.bf16.msra.mxu2 %v351_v20  ;;  %374 = vmatpush.bf16.msra.mxu3 %v351_v20  ;;  %v132_v18 = vpack.c.bf16 %v108_v13, %v107_v12 }
  0x1a   :  { %203 = vmatpush.bf16.msra.mxu0 %v350_v29  ;;  %375 = vmatpush.bf16.msra.mxu1 %v350_v29 }
  0x1b   :  { %376 = vmatpush.bf16.msra.mxu2 %v350_v29  ;;  %377 = vmatpush.bf16.msra.mxu3 %v350_v29 }
  0x1e   :  { %204 = vmatpush.bf16.msra.mxu0 %v349_v37  ;;  %378 = vmatpush.bf16.msra.mxu1 %v349_v37 }
  0x1f   :  { %379 = vmatpush.bf16.msra.mxu2 %v349_v37  ;;  %380 = vmatpush.bf16.msra.mxu3 %v349_v37 }
  0x21   :  { %205 = vmatmul.bf16.vlgmr.msra.gmra.mxu0 %v125_v42  ;;  %215 = vmatmul.bf16.vlgmr.msra.gmra.mxu1 %v127_v43 }
  0x22   :  { %225 = vmatmul.bf16.vlgmr.msra.gmra.mxu2 %v129_v46  ;;  %235 = vmatmul.bf16.vlgmr.msra.gmra.mxu3 %v131_v47 }
  0x31   :  { %210 = vmatmul.bf16.gmra.mxu0 %v126_v14  ;;  %220 = vmatmul.bf16.gmra.mxu1 %v128_v16 }
  0x32   :  { %230 = vmatmul.bf16.gmra.mxu2 %v130_v17  ;;  %240 = vmatmul.bf16.gmra.mxu3 %v132_v18 }
  0x9e   :  { %v206_v19 = vpop.f32.mrf.mxu0  ;;  %v216_v20 = vpop.f32.mrf.mxu1 }
  0x9f   :  { %297 = vst [vmem:[%s574_s4] sm:$0xff] %v206_v19 }
  0xa0   :  { %301 = vst [vmem:[%s574_s4 + $0x20] sm:$0xff] %v216_v20 }
  0xa5   :  { %v226_v15 = vpop.f32.mrf.mxu2  ;;  %v236_v21 = vpop.f32.mrf.mxu3 }
  0xa6   :  { %305 = vst [vmem:[%s574_s4 + $0x40] sm:$0xff] %v226_v15  ;;  %v208_v22 = vpop.f32.mrf.mxu0  ;;  %v218_v23 = vpop.f32.mrf.mxu1 }
  0xa7   :  { %309 = vst [vmem:[%s574_s4 + $0x60] sm:$0xff] %v236_v21 }
  0xa8   :  { %298 = vst [vmem:[%s574_s4 + $0x8] sm:$0xff] %v208_v22 }
  0xa9   :  { %302 = vst [vmem:[%s574_s4 + $0x28] sm:$0xff] %v218_v23 }
  0xad   :  { %v228_v24 = vpop.f32.mrf.mxu2  ;;  %v238_v25 = vpop.f32.mrf.mxu3 }
  0xae   :  { %306 = vst [vmem:[%s574_s4 + $0x48] sm:$0xff] %v228_v24  ;;  %v211_v26 = vpop.f32.mrf.mxu0  ;;  %v221_v27 = vpop.f32.mrf.mxu1 }
  0xaf   :  { %310 = vst [vmem:[%s574_s4 + $0x68] sm:$0xff] %v238_v25 }
  0xb0   :  { %299 = vst [vmem:[%s574_s4 + $0x10] sm:$0xff] %v211_v26 }
  0xb1   :  { %303 = vst [vmem:[%s574_s4 + $0x30] sm:$0xff] %v221_v27 }
  0xb5   :  { %v231_v28 = vpop.f32.mrf.mxu2  ;;  %v241_v29 = vpop.f32.mrf.mxu3 }
  0xb6   :  { %307 = vst [vmem:[%s574_s4 + $0x50] sm:$0xff] %v231_v28  ;;  %v213_v30 = vpop.f32.mrf.mxu0  ;;  %v223_v31 = vpop.f32.mrf.mxu1 }
  0xb7   :  { %311 = vst [vmem:[%s574_s4 + $0x70] sm:$0xff] %v241_v29 }
  0xb8   :  { %300 = vst [vmem:[%s574_s4 + $0x18] sm:$0xff] %v213_v30 }
  0xb9   :  { %304 = vst [vmem:[%s574_s4 + $0x38] sm:$0xff] %v223_v31 }
  0xbd   :  { %v233_v32 = vpop.f32.mrf.mxu2  ;;  %v243_v33 = vpop.f32.mrf.mxu3 }
  0xbe   :  { %308 = vst [vmem:[%s574_s4 + $0x58] sm:$0xff] %v233_v32 }
  0xbf   :  { %312 = vst [vmem:[%s574_s4 + $0x78] sm:$0xff] %v243_v33 }

// kernel: a_call__.7
= control target key start
LH: loop header
LB: loop body
LE: loop exit
PB: predicated region body
PF: predicated region fallthrough
CT: control target
= control target key end

     0   :  { %v2673_v0 = vmov 0   ;;  %vm572_vm0 = vcmask 1046528   ;;  %vm807_vm1 = vcmask 1045504   ;;  %s4098_s3 = inlined_call_operand.vmem [shape: f32[1,10,10,1], index: 3, kind: input, shape index: {}]   ;;  %s4099_s1 = inlined_call_operand.vmem [shape: f32[1,128], index: 1, kind: input, shape index: {}]   ;;  %s4100_s2 = inlined_call_operand.vmem [shape: f32[1,128], index: 2, kind: input, shape index: {}]   ;;  %s4101_s4 = inlined_call_operand.vmem [shape: bf16[9,128,128], index: 4, kind: input, shape index: {}]   ;;  %s4102_s0 = inlined_call_operand.vmem [shape: f32[1,2,10,10,128], index: 0, kind: input, shape index: {}]   ;;  %s4103_s5 = inlined_call_operand.vmem [shape: f32[2,8,8,128], index: 5, kind: input, shape index: {}]   ;;  %s4104_s6 = inlined_call_operand.vmem [shape: f32[2,8,8,128], index: 6, kind: output, shape index: {}]  }
   0x1   :  { %2670 = vset.pattern.permute.xlu2 %v2673_v0  ;;  %2669 = vset.pattern.permute.xlu1 %v2673_v0  ;;  %v219_v1 = vld [vmem:[%s4098_s3 + $0x40] sm:$0xff]  ;;  %v221_v4 = vld [vmem:[%s4098_s3 + $0x50] sm:$0xff]  ;;  %v212_v8 = vld [vmem:[%s4098_s3 + $0x8] sm:$0x3] }
   0x2   :  { %v215_v2 = vld [vmem:[%s4098_s3 + $0x20] sm:$0xff]  ;;  %2668 = vset.pattern.permute.xlu0 %v2673_v0  ;;  %273 = vperm.xlu1 %2669, %v219_v1   ;;  %v217_v5 = vld [vmem:[%s4098_s3 + $0x30] sm:$0xff]  ;;  %v216_v10 = vld [vmem:[%s4098_s3 + $0x28] sm:$0x3] }
   0x3   :  { %v211_v3 = vld [vmem:[%s4098_s3] sm:$0xff]  ;;  %253 = vperm.xlu2 %2670, %v215_v2   ;;  %v213_v6 = vld [vmem:[%s4098_s3 + $0x10] sm:$0xff]  ;;  %v218_v11 = vld [vmem:[%s4098_s3 + $0x38] sm:$0x3] }
   0x4   :  { %233 = vperm.xlu0 %2668, %v211_v3   ;;  %v225_v7 = vld [vmem:[%s4098_s3 + $0x70] sm:$0xff]  ;;  %v223_v9 = vld [vmem:[%s4098_s3 + $0x60] sm:$0xff]  ;;  %v214_v12 = vld [vmem:[%s4098_s3 + $0x18] sm:$0x3] }
   0x5   :  { %v222_v13 = vld [vmem:[%s4098_s3 + $0x58] sm:$0x3]  ;;  %v224_v14 = vld [vmem:[%s4098_s3 + $0x68] sm:$0x3]  ;;  %v227_v16 = vld [vmem:[%s4098_s3 + $0x80] sm:$0xff] }
   0x6   :  { %v220_v15 = vld [vmem:[%s4098_s3 + $0x48] sm:$0x3]  ;;  %v226_v18 = vld [vmem:[%s4098_s3 + $0x78] sm:$0x3]  ;;  %v229_v20 = vld [vmem:[%s4098_s3 + $0x90] sm:$0xff] }
   0x7   :  { %v228_v17 = vld [vmem:[%s4098_s3 + $0x88] sm:$0x3]  ;;  %v230_v19 = vld [vmem:[%s4098_s3 + $0x98] sm:$0x3]  ;;  %v2577_v22 = vld [vmem:[%s4101_s4 + $0x30] sm:$0xff] }
   0x8   :  { %v2578_v21 = vld [vmem:[%s4101_s4 + $0x38] sm:$0xff]  ;;  %v2576_v23 = vld [vmem:[%s4101_s4 + $0x28] sm:$0xff]  ;;  %v2575_v24 = vld [vmem:[%s4101_s4 + $0x20] sm:$0xff] }
   0x9   :  { %459 = vmatpush.bf16.msra.mxu0 %v2578_v21  ;;  %2643 = vmatpush.bf16.msra.mxu1 %v2578_v21  ;;  %v2574_v25 = vld [vmem:[%s4101_s4 + $0x18] sm:$0xff]  ;;  %v2573_v26 = vld [vmem:[%s4101_s4 + $0x10] sm:$0xff]  ;;  %v49_v27 = vld [vmem:[%s4102_s0 + $0x20] sm:$0xff] }
   0xa   :  { %283 = vperm.xlu1 %2669, %v221_v4   ;;  %2644 = vmatpush.bf16.msra.mxu2 %v2578_v21  ;;  %v69_v28 = vld [vmem:[%s4102_s0 + $0xc0] sm:$0xff]  ;;  %v51_v30 = vld [vmem:[%s4102_s0 + $0x30] sm:$0xff]  ;;  %v2572_v31 = vld [vmem:[%s4101_s4 + $0x8] sm:$0xff] }
   0xb   :  { %263 = vperm.xlu2 %2670, %v217_v5   ;;  %2645 = vmatpush.bf16.msra.mxu3 %v2578_v21  ;;  %v2796_v29 = vld [vmem:[%s4099_s1] ss:$0 sm:$0xff]  ;;  %v71_v33 = vld [vmem:[%s4102_s0 + $0xd0] sm:$0xff]  ;;  %v46_v34 = vld [vmem:[%s4102_s0 + $0x8] sm:$0x3] }
   0xc   :  { %243 = vperm.xlu0 %2668, %v213_v6   ;;  %v92_v32 = vmul.f32 %v2796_v29, %v49_v27  ;;  %v66_v35 = vld [vmem:[%s4102_s0 + $0xa8] sm:$0x3]  ;;  %v112_v36 = vmul.f32 %v2796_v29, %v69_v28  ;;  %v94_v37 = vmul.f32 %v2796_v29, %v51_v30  ;;  %v45_v38 = vld [vmem:[%s4102_s0] sm:$0xff]  ;;  %v114_v43 = vmul.f32 %v2796_v29, %v71_v33  ;;  %v52_v47 = vld [vmem:[%s4102_s0 + $0x38] sm:$0x3] }
   0xd   :  { %460 = vmatpush.bf16.msra.mxu0 %v2577_v22  ;;  %2646 = vmatpush.bf16.msra.mxu1 %v2577_v22  ;;  %v2824_v40 = vld [vmem:[%s4100_s2] ss:$0 sm:$0xff]  ;;  %v89_v44 = vmul.f32 %v2796_v29, %v46_v34  ;;  %v109_v45 = vmul.f32 %v2796_v29, %v66_v35  ;;  %v88_v50 = vmul.f32 %v2796_v29, %v45_v38  ;;  %v72_v53 = vld [vmem:[%s4102_s0 + $0xd8] sm:$0x3]  ;;  %v55_v58 = vld [vmem:[%s4102_s0 + $0x50] sm:$0xff] }
   0xe   :  { %2647 = vmatpush.bf16.msra.mxu2 %v2577_v22  ;;  %v53_v41 = vld [vmem:[%s4102_s0 + $0x40] sm:$0xff]  ;;  %v2845_v49 = vadd.f32 %v2824_v40, %v92_v32  ;;  %v2849_v51 = vadd.f32 %v2824_v40, %v112_v36  ;;  %v2852_v52 = vadd.f32 %v2824_v40, %v94_v37  ;;  %v95_v57 = vmul.f32 %v2796_v29, %v52_v47  ;;  %v75_v59 = vld [vmem:[%s4102_s0 + $0xf0] sm:$0xff]  ;;  %v2594_v63 = vld [vmem:[%s4101_s4 + $0xb8] sm:$0xff] }
   0xf   :  { %2648 = vmatpush.bf16.msra.mxu3 %v2577_v22  ;;  %v65_v42 = vld [vmem:[%s4102_s0 + $0xa0] sm:$0xff]  ;;  %v96_v55 = vmul.f32 %v2796_v29, %v53_v41  ;;  %v2868_v60 = vadd.f32 %v2824_v40, %v114_v43  ;;  %v2871_v61 = vadd.f32 %v2824_v40, %v89_v44  ;;  %v2874_v62 = vadd.f32 %v2824_v40, %v109_v45  ;;  %v2586_v0 = vld [vmem:[%s4101_s4 + $0x78] sm:$0xff]  ;;  %v47_v5 = vld [vmem:[%s4102_s0 + $0x10] sm:$0xff] }
  0x10   :  { %v73_v46 = vld [vmem:[%s4102_s0 + $0xe0] sm:$0xff]  ;;  %v108_v54 = vmul.f32 %v2796_v29, %v65_v42  ;;  %v2602_v1 = vld [vmem:[%s4101_s4 + $0xf8] sm:$0xff]  ;;  %v175_v2 = vmax.f32 %v2845_v49, 0.0  ;;  %v115_v3 = vmul.f32 %v2796_v29, %v72_v53  ;;  %v2888_v4 = vadd.f32 %v2824_v40, %v88_v50  ;;  %v2601_v27 = vld [vmem:[%s4101_s4 + $0xf0] sm:$0xff] }
  0x11   :  { %461 = vmatpush.bf16.msra.mxu0 %v2576_v23  ;;  %2649 = vmatpush.bf16.msra.mxu1 %v2576_v23  ;;  %v2571_v48 = vld [vmem:[%s4101_s4] sm:$0xff]  ;;  %v116_v56 = vmul.f32 %v2796_v29, %v73_v46  ;;  %v2610_v6 = vld [vmem:[%s4101_s4 + $0x138] sm:$0xff]  ;;  %v197_v21 = vmax.f32 %v2868_v60, 0.0  ;;  %v172_v22 = vmax.f32 %v2871_v61, 0.0  ;;  %v62_v32 = vld [vmem:[%s4102_s0 + $0x88] sm:$0x3] }
  0x12   :  { %303 = vperm.xlu1 %2669, %v225_v7   ;;  %2650 = vmatpush.bf16.msra.mxu2 %v2576_v23  ;;  %v195_v7 = vmax.f32 %v2849_v51, 0.0  ;;  %v2943_v28 = vadd.f32 %v2824_v40, %v115_v3  ;;  %v171_v30 = vmax.f32 %v2888_v4, 0.0  ;;  %v82_v33 = vld [vmem:[%s4102_s0 + $0x128] sm:$0x3]  ;;  %v2609_v34 = vld [vmem:[%s4101_s4 + $0x130] sm:$0xff]  ;;  %v57_v41 = vld [vmem:[%s4102_s0 + $0x60] sm:$0xff] }
  0x13   :  { %238 = vperm.xlu2 %2670, %v212_v8   ;;  %2651 = vmatpush.bf16.msra.mxu3 %v2576_v23  ;;  %v2898_v8 = vadd.f32 %v2824_v40, %v108_v54  ;;  %v192_v23 = vmax.f32 %v2874_v62, 0.0  ;;  %v2592_v42 = vld [vmem:[%s4101_s4 + $0xa8] sm:$0xff]  ;;  %v48_v49 = vld [vmem:[%s4102_s0 + $0x18] sm:$0x3]  ;;  %v2597_v61 = vld [vmem:[%s4101_s4 + $0xd0] sm:$0xff] }
  0x14   :  { %293 = vperm.xlu0 %2668, %v223_v9   ;;  %v98_v9 = vmul.f32 %v2796_v29, %v55_v58  ;;  %v2584_v43 = vld [vmem:[%s4101_s4 + $0x68] sm:$0xff]  ;;  %v198_v58 = vmax.f32 %v2943_v28, 0.0  ;;  %v68_v51 = vld [vmem:[%s4102_s0 + $0xb8] sm:$0x3] }
  0x15   :  { %462 = vmatpush.bf16.msra.mxu0 %v2575_v24  ;;  %2652 = vmatpush.bf16.msra.mxu1 %v2575_v24  ;;  %v191_v35 = vmax.f32 %v2898_v8, 0.0  ;;  %v2600_v50 = vld [vmem:[%s4101_s4 + $0xe8] sm:$0xff] }
  0x16   :  { %2653 = vmatpush.bf16.msra.mxu2 %v2575_v24  ;;  %v2958_v36 = vadd.f32 %v2824_v40, %v98_v9  ;;  %v2608_v53 = vld [vmem:[%s4101_s4 + $0x128] sm:$0xff] }
  0x17   :  { %2654 = vmatpush.bf16.msra.mxu3 %v2575_v24  ;;  %v90_v24 = vmul.f32 %v2796_v29, %v47_v5  ;;  %v50_v9 = vld [vmem:[%s4102_s0 + $0x28] sm:$0x3] }
  0x19   :  { %463 = vmatpush.bf16.msra.mxu0 %v2574_v25  ;;  %2655 = vmatpush.bf16.msra.mxu1 %v2574_v25  ;;  %v2987_v54 = vadd.f32 %v2824_v40, %v90_v24  ;;  %v2591_v24 = vld [vmem:[%s4101_s4 + $0xa0] sm:$0xff] }
  0x1a   :  { %258 = vperm.xlu1 %2669, %v216_v10   ;;  %2656 = vmatpush.bf16.msra.mxu2 %v2574_v25  ;;  %v118_v10 = vmul.f32 %v2796_v29, %v75_v59 }
  0x1b   :  { %268 = vperm.xlu2 %2670, %v218_v11   ;;  %2657 = vmatpush.bf16.msra.mxu3 %v2574_v25  ;;  %v58_v11 = vld [vmem:[%s4102_s0 + $0x68] sm:$0x3]  ;;  %v2593_v25 = vld [vmem:[%s4101_s4 + $0xb0] sm:$0xff] }
  0x1c   :  { %248 = vperm.xlu0 %2668, %v214_v12   ;;  %v67_v12 = vld [vmem:[%s4102_s0 + $0xb0] sm:$0xff]  ;;  %v2961_v37 = vadd.f32 %v2824_v40, %v118_v10  ;;  %v101_v38 = vmul.f32 %v2796_v29, %v58_v11 }
  0x1d   :  { %464 = vmatpush.bf16.msra.mxu0 %v2573_v26  ;;  %2658 = vmatpush.bf16.msra.mxu1 %v2573_v26 }
  0x1e   :  { %2659 = vmatpush.bf16.msra.mxu2 %v2573_v26  ;;  %v201_v3 = vmax.f32 %v2961_v37, 0.0  ;;  %v3001_v5 = vadd.f32 %v2824_v40, %v101_v38 }
  0x1f   :  { %2660 = vmatpush.bf16.msra.mxu3 %v2573_v26  ;;  %v2585_v26 = vld [vmem:[%s4101_s4 + $0x70] sm:$0xff] }
  0x21   :  { %465 = vmatpush.bf16.msra.mxu0 %v2572_v31  ;;  %2661 = vmatpush.bf16.msra.mxu1 %v2572_v31 }
  0x22   :  { %288 = vperm.xlu1 %2669, %v222_v13   ;;  %2662 = vmatpush.bf16.msra.mxu2 %v2572_v31 }
  0x23   :  { %298 = vperm.xlu2 %2670, %v224_v14   ;;  %2663 = vmatpush.bf16.msra.mxu3 %v2572_v31  ;;  %v177_v14 = vmax.f32 %v2852_v52, 0.0  ;;  %v110_v31 = vmul.f32 %v2796_v29, %v67_v12  ;;  %v91_v52 = vmul.f32 %v2796_v29, %v48_v49  ;;  %v54_v49 = vld [vmem:[%s4102_s0 + $0x48] sm:$0x3] }
  0x24   :  { %278 = vperm.xlu0 %2668, %v220_v15   ;;  %v2912_v15 = vadd.f32 %v2824_v40, %v96_v55 }
  0x25   :  { %466 = vmatpush.bf16.msra.mxu0 %v2571_v48  ;;  %2664 = vmatpush.bf16.msra.mxu1 %v2571_v48  ;;  %v2994_v59 = vadd.f32 %v2824_v40, %v110_v31 }
  0x26   :  { %2665 = vmatpush.bf16.msra.mxu2 %v2571_v48  ;;  %v179_v44 = vmax.f32 %v2912_v15, 0.0 }
  0x27   :  { %2666 = vmatpush.bf16.msra.mxu3 %v2571_v48  ;;  %v77_v48 = vld [vmem:[%s4102_s0 + $0x100] sm:$0xff] }
  0x29   :  { %726 = vmatpush.bf16.msrb.mxu1 %v2586_v0  ;;  %1313 = vmatpush.bf16.msrb.mxu0 %v2610_v6  ;;  %v100_v0 = vmul.f32 %v2796_v29, %v57_v41  ;;  %v120_v6 = vmul.f32 %v2796_v29, %v77_v48  ;;  %v184_v41 = vmax.f32 %v3001_v5, 0.0  ;;  %v2626_v5 = vld [vmem:[%s4101_s4 + $0x1b8] sm:$0xff] }
  0x2a   :  { %313 = vperm.xlu1 %2669, %v227_v16   ;;  %961 = vmatpush.bf16.msrb.mxu2 %v2594_v63  ;;  %v2915_v16 = vadd.f32 %v2824_v40, %v116_v56  ;;  %v125_v63 = vmul.f32 %v2796_v29, %v82_v33  ;;  %v93_v33 = vmul.f32 %v2796_v29, %v50_v9 }
  0x2b   :  { %318 = vperm.xlu2 %2670, %v228_v17   ;;  %v2918_v17 = vadd.f32 %v2824_v40, %v95_v57  ;;  %1131 = vmatpush.bf16.msrb.mxu3 %v2602_v1  ;;  %v105_v57 = vmul.f32 %v2796_v29, %v62_v32  ;;  %v181_v1 = vmax.f32 %v2958_v36, 0.0  ;;  %v3053_v32 = vadd.f32 %v2824_v40, %v100_v0  ;;  %v80_v36 = vld [vmem:[%s4102_s0 + $0x118] sm:$0x3] }
  0x2c   :  { %308 = vperm.xlu0 %2668, %v226_v18   ;;  %v78_v18 = vld [vmem:[%s4102_s0 + $0x108] sm:$0x3]  ;;  %v199_v45 = vmax.f32 %v2915_v16, 0.0  ;;  %v3050_v31 = vadd.f32 %v2824_v40, %v125_v63  ;;  %v3097_v0 = vadd.f32 %v2824_v40, %v93_v33 }
  0x2d   :  { %727 = vmatpush.bf16.msrb.mxu1 %v2585_v26  ;;  %v178_v46 = vmax.f32 %v2918_v17, 0.0  ;;  %v121_v47 = vmul.f32 %v2796_v29, %v78_v18  ;;  %1314 = vmatpush.bf16.msrb.mxu0 %v2609_v34  ;;  %v2599_v26 = vld [vmem:[%s4101_s4 + $0xe0] sm:$0xff] }
  0x2e   :  { %962 = vmatpush.bf16.msrb.mxu2 %v2593_v25  ;;  %v2583_v25 = vld [vmem:[%s4101_s4 + $0x60] sm:$0xff]  ;;  %v4128_v4 = vmax.f32 %v3050_v31, 0.0 }
  0x2f   :  { %1132 = vmatpush.bf16.msrb.mxu3 %v2601_v27  ;;  %v3018_v18 = vadd.f32 %v2824_v40, %v121_v47  ;;  %v193_v27 = vmax.f32 %v2994_v59, 0.0  ;;  %v2607_v34 = vld [vmem:[%s4101_s4 + $0x120] sm:$0xff] }
  0x31   :  { %728 = vmatpush.bf16.msrb.mxu1 %v2584_v43  ;;  %1315 = vmatpush.bf16.msrb.mxu0 %v2608_v53  ;;  %v204_v48 = vmax.f32 %v3018_v18, 0.0  ;;  %v76_v53 = vld [vmem:[%s4102_s0 + $0xf8] sm:$0x3] }
  0x32   :  { %328 = vperm.xlu1 %2669, %v230_v19   ;;  %v59_v19 = vld [vmem:[%s4102_s0 + $0x70] sm:$0xff]  ;;  %963 = vmatpush.bf16.msrb.mxu2 %v2592_v42  ;;  %v3066_v42 = vadd.f32 %v2824_v40, %v120_v6  ;;  %v2634_v18 = vld [vmem:[%s4101_s4 + $0x1f8] sm:$0xff] }
  0x33   :  { %v102_v55 = vmul.f32 %v2796_v29, %v59_v19  ;;  %1133 = vmatpush.bf16.msrb.mxu3 %v2600_v50  ;;  %v70_v19 = vld [vmem:[%s4102_s0 + $0xc8] sm:$0x3]  ;;  %v56_v50 = vld [vmem:[%s4102_s0 + $0x58] sm:$0x3] }
  0x34   :  { %323 = vperm.xlu0 %2668, %v229_v20   ;;  %v79_v20 = vld [vmem:[%s4102_s0 + $0x110] sm:$0xff]  ;;  %v113_v43 = vmul.f32 %v2796_v29, %v70_v19  ;;  %v2606_v19 = vld [vmem:[%s4101_s4 + $0x118] sm:$0xff]  ;;  %v99_v33 = vmul.f32 %v2796_v29, %v56_v50 }
  0x35   :  { %v122_v56 = vmul.f32 %v2796_v29, %v79_v20  ;;  %v3037_v20 = vadd.f32 %v2824_v40, %v105_v57  ;;  %729 = vmatpush.bf16.msrb.mxu1 %v2583_v25  ;;  %1316 = vmatpush.bf16.msrb.mxu0 %v2607_v34  ;;  %v2598_v57 = vld [vmem:[%s4101_s4 + $0xd8] sm:$0xff]  ;;  %v74_v34 = vld [vmem:[%s4102_s0 + $0xe8] sm:$0x3] }
  0x36   :  { %964 = vmatpush.bf16.msrb.mxu2 %v2591_v24  ;;  %v117_v8 = vmul.f32 %v2796_v29, %v74_v34  ;;  %v2588_v34 = vld [vmem:[%s4101_s4 + $0x88] sm:$0xff] }
  0x37   :  { %1134 = vmatpush.bf16.msrb.mxu3 %v2599_v26  ;;  %v3119_v26 = vadd.f32 %v2824_v40, %v113_v43  ;;  %v119_v43 = vmul.f32 %v2796_v29, %v76_v53 }
  0x39   :  { %1317 = vmatpush.bf16.msrb.mxu0 %v2606_v19  ;;  %v3175_v62 = vadd.f32 %v2824_v40, %v119_v43 }
  0x3b   :  { %1135 = vmatpush.bf16.msrb.mxu3 %v2598_v57 }
  0x3f   :  { %1136 = vmatpush.bf16.msrb.mxu3 %v2597_v61  ;;  %v61_v61 = vld [vmem:[%s4102_s0 + $0x80] sm:$0xff] }
  0x5d   :  { %v2819_v39 = vpop.permute.xlu2 %253 }
  0x5e   :  { %v3010_v10 = vmul.f32 %v2819_v39, %v175_v2  ;;  %v3015_v11 = vmul.f32 %v2819_v39, %v195_v7  ;;  %v173_v39 = vmax.f32 %v2987_v54, 0.0  ;;  %v3031_v2 = vadd.f32 %v2824_v40, %v102_v55  ;;  %v2590_v55 = vld [vmem:[%s4101_s4 + $0x98] sm:$0xff]  ;;  %v2595_v54 = vld [vmem:[%s4101_s4 + $0xc0] sm:$0xff] }
  0x5f   :  { %v3034_v7 = vadd.f32 %v2824_v40, %v122_v56  ;;  %v2582_v56 = vld [vmem:[%s4101_s4 + $0x58] sm:$0xff]  ;;  %965 = vmatpush.bf16.msrb.mxu2 %v2590_v55 }
  0x60   :  { %730 = vmatpush.bf16.msrb.mxu1 %v2582_v56  ;;  %v97_v56 = vmul.f32 %v2796_v29, %v54_v49  ;;  %v3205_v49 = vadd.f32 %v2824_v40, %v117_v8  ;;  %v2587_v8 = vld [vmem:[%s4101_s4 + $0x80] sm:$0xff] }
  0x62   :  { %v3187_v43 = vadd.f32 %v2824_v40, %v97_v56  ;;  %v81_v56 = vld [vmem:[%s4102_s0 + $0x120] sm:$0xff] }
  0x65   :  { %v2908_v13 = vpop.permute.xlu2 %263 }
  0x66   :  { %v3062_v38 = vmul.f32 %v2908_v13, %v177_v14  ;;  %v3072_v47 = vmul.f32 %v2908_v13, %v197_v21  ;;  %v111_v14 = vmul.f32 %v2796_v29, %v68_v51 }
  0x68   :  { %4121 = vst [vmem:[#allocation3_spill] sm:$0xff] %v3072_v47  ;;  %v3101_v6 = vpack.c.bf16 %v3062_v38, %v3010_v10  ;;  %v3105_v9 = vpack.c.bf16 %v3072_v47, %v3015_v11  ;;  %v3130_v25 = vadd.f32 %v2824_v40, %v111_v14  ;;  %v2581_v14 = vld [vmem:[%s4101_s4 + $0x50] sm:$0xff]  ;;  %v817_v57 = vrot.slane %v3062_v38, 2 }
  0x69   :  { %731 = vmatpush.bf16.msrb.mxu1 %v2581_v14 }
  0x6a   :  { %4122 = vst [vmem:[#allocation4_spill] sm:$0xff] %v3101_v6 }
  0x6b   :  { %4123 = vst [vmem:[#allocation5_spill] sm:$0xff] %v3105_v9 }
  0x6d   :  { %v239_v12 = vpop.permute.xlu2 %238 }
  0x6e   :  { %v3115_v51 = vmul.f32 %v239_v12, %v192_v23  ;;  %v3127_v23 = vadd.f32 %v2824_v40, %v91_v52  ;;  %v3135_v50 = vmul.f32 %v239_v12, %v172_v22  ;;  %v2589_v52 = vld [vmem:[%s4101_s4 + $0x90] sm:$0xff]  ;;  %v3163_v22 = vadd.f32 %v2824_v40, %v99_v33  ;;  %v2580_v12 = vld [vmem:[%s4101_s4 + $0x48] sm:$0xff] }
  0x6f   :  { %966 = vmatpush.bf16.msrb.mxu2 %v2589_v52  ;;  %v2596_v33 = vld [vmem:[%s4101_s4 + $0xc8] sm:$0xff]  ;;  %732 = vmatpush.bf16.msrb.mxu1 %v2580_v12  ;;  %v2579_v12 = vld [vmem:[%s4101_s4 + $0x40] sm:$0xff] }
  0x70   :  { %v598_v19 = vrot.slane %v3115_v51, 1  ;;  %v2604_v52 = vld [vmem:[%s4101_s4 + $0x108] sm:$0xff]  ;;  %v574_v14 = vrot.slane %v3135_v50, 1  ;;  %1137 = vmatpush.bf16.msrb.mxu3 %v2596_v33 }
  0x73   :  { %967 = vmatpush.bf16.msrb.mxu2 %v2588_v34  ;;  %733 = vmatpush.bf16.msrb.mxu1 %v2579_v12 }
  0x74   :  { %v274_v24 = vpop.permute.xlu1 %273  ;;  %1138 = vmatpush.bf16.msrb.mxu3 %v2595_v54  ;;  %v4126_v54 = vrot.slane %v3135_v50, 2  ;;  %v63_v50 = vld [vmem:[%s4102_s0 + $0x90] sm:$0xff] }
  0x75   :  { %v269_v13 = vpop.permute.xlu2 %268  ;;  %v3198_v21 = vmul.f32 %v274_v24, %v199_v45  ;;  %v106_v45 = vmul.f32 %v2796_v29, %v63_v50 }
  0x76   :  { %v234_v60 = vpop.permute.xlu0 %233  ;;  %v3202_v63 = vmul.f32 %v269_v13, %v178_v46  ;;  %v3212_v15 = vmul.f32 %v269_v13, %v198_v58 }
  0x77   :  { %v3139_v55 = vmul.f32 %v234_v60, %v191_v35  ;;  %v2605_v35 = vld [vmem:[%s4101_s4 + $0x110] sm:$0xff]  ;;  %v331_v16 = vmul.f32 %v234_v60, %v171_v30  ;;  %v104_v30 = vmul.f32 %v2796_v29, %v61_v61  ;;  %v60_v60 = vld [vmem:[%s4102_s0 + $0x78] sm:$0x3]  ;;  %v123_v61 = vmul.f32 %v2796_v29, %v80_v36  ;;  %968 = vmatpush.bf16.msrb.mxu2 %v2587_v8 }
  0x78   :  { %1318 = vmatpush.bf16.msrb.mxu0 %v2605_v35  ;;  %v3194_v35 = vmul.f32 %v274_v24, %v179_v44  ;;  %v124_v24 = vmul.f32 %v2796_v29, %v81_v56  ;;  %v818_v59 = vrot.slane %v3202_v63, 2  ;;  %v4130_v36 = vmax.f32 %v3034_v7, 0.0 }
  0x79   :  { %v597_v53 = vrot.slane %v3139_v55, 1  ;;  %v573_v34 = vrot.slane %v331_v16, 1  ;;  %v808_v33 = vrot.slane %v331_v16, 2  ;;  %v832_v56 = vrot.slane %v3139_v55, 2 }
  0x7a   :  { %v3292_v12 = vadd.f32 %v2824_v40, %v124_v24  ;;  %v4133_v7 = vrot.slane %v3115_v51, 2 }
  0x7b   :  { %v3218_v17 = vsel %vm572_vm0, %v597_v53, %v598_v19  ;;  %v2603_v19 = vld [vmem:[%s4101_s4 + $0x100] sm:$0xff]  ;;  %v3277_v53 = vadd.f32 %v2824_v40, %v104_v30  ;;  %v3314_v24 = vsel %vm572_vm0, %v573_v34, %v574_v14  ;;  %v83_v14 = vld [vmem:[%s4102_s0 + $0x130] sm:$0xff]  ;;  %v603_v34 = vrot.slane %v3015_v11, 1 }
  0x7c   :  { %v284_v44 = vpop.permute.xlu1 %283  ;;  %1319 = vmatpush.bf16.msrb.mxu0 %v2604_v52  ;;  %v103_v52 = vmul.f32 %v2796_v29, %v60_v60  ;;  %v64_v60 = vld [vmem:[%s4102_s0 + $0x98] sm:$0x3] }
  0x7d   :  { %v3222_v46 = vmul.f32 %v284_v44, %v181_v1  ;;  %v3226_v28 = vmul.f32 %v284_v44, %v201_v3  ;;  %v299_v58 = vpop.permute.xlu2 %298 }
  0x7e   :  { %v244_v13 = vpop.permute.xlu0 %243  ;;  %v3285_v8 = vmul.f32 %v299_v58, %v184_v41  ;;  %v107_v41 = vmul.f32 %v2796_v29, %v64_v60 }
  0x7f   :  { %v3238_v37 = vmul.f32 %v244_v13, %v173_v39  ;;  %v3242_v1 = vmul.f32 %v244_v13, %v193_v27  ;;  %v3258_v39 = vpack.c.bf16 %v3222_v46, %v3194_v35  ;;  %v3262_v27 = vpack.c.bf16 %v3226_v28, %v3198_v21 }
  0x80   :  { %1320 = vmatpush.bf16.msrb.mxu0 %v2603_v19  ;;  %v3319_v19 = vsel %vm807_vm1, %v808_v33, %v4126_v54  ;;  %v606_v33 = vrot.slane %v3072_v47, 1  ;;  %v3345_v3 = vadd.f32 %v2824_v40, %v107_v41  ;;  %v4127_v41 = vmax.f32 %v3037_v20, 0.0 }
  0x81   :  { %4124 = vst [vmem:[#allocation6_spill] sm:$0xff] %v3258_v39  ;;  %v387_v44 = vpack.c.bf16 %v3238_v37, %v331_v16  ;;  %477 = vmatmul.bf16.vlgmr.msra.gmra.mxu1 %v3258_v39  ;;  %v391_v13 = vpack.c.bf16 %v3242_v1, %v3139_v55  ;;  %497 = vmatmul.bf16.vlgmr.msra.gmra.mxu3 %v3262_v27  ;;  %v811_v30 = vrot.slane %v3238_v37, 2  ;;  %v4131_v20 = vmax.f32 %v3053_v32, 0.0 }
  0x82   :  { %4125 = vst [vmem:[#allocation7_spill] sm:$0xff] %v3262_v27  ;;  %v3289_v16 = vmul.f32 %v299_v58, %v204_v48  ;;  %v3306_v48 = vsel %vm807_vm1, %v817_v57, %v818_v59  ;;  %v3309_v55 = vadd.f32 %v2824_v40, %v103_v52  ;;  %1831 = vmatpush.bf16.msra.mxu3 %v2634_v18  ;;  %v2618_v18 = vld [vmem:[%s4101_s4 + $0x178] sm:$0xff]  ;;  %v600_v31 = vrot.slane %v3242_v1, 1 }
  0x83   :  { %467 = vmatmul.bf16.vlgmr.msra.gmra.mxu0 %v387_v44  ;;  %487 = vmatmul.bf16.vlgmr.msra.gmra.mxu2 %v391_v13  ;;  %v84_v44 = vld [vmem:[%s4102_s0 + $0x138] sm:$0x3]  ;;  %v3327_v13 = vadd.f32 %v2824_v40, %v123_v61  ;;  %v126_v61 = vmul.f32 %v2796_v29, %v83_v14  ;;  %v4129_v14 = vmax.f32 %v3031_v2, 0.0  ;;  %v835_v50 = vrot.slane %v3242_v1, 2 }
  0x84   :  { %v304_v58 = vpop.permute.xlu1 %303  ;;  %1655 = vmatpush.bf16.msra.mxu2 %v2626_v5  ;;  %v127_v57 = vmul.f32 %v2796_v29, %v84_v44  ;;  %v2642_v44 = vld [vmem:[%s4101_s4 + $0x238] sm:$0xff]  ;;  %1491 = vmatpush.bf16.msra.mxu1 %v2618_v18 }
  0x85   :  { %v319_v5 = vpop.permute.xlu2 %318  ;;  %v3370_v60 = vmul.f32 %v304_v58, %v4129_v14  ;;  %v3374_v27 = vmul.f32 %v304_v58, %v4130_v36  ;;  %2003 = vmatpush.bf16.msra.mxu0 %v2642_v44  ;;  %v3392_v36 = vsel %vm807_vm1, %v832_v56, %v4133_v7  ;;  %v3395_v58 = vadd.f32 %v2824_v40, %v106_v45 }
  0x86   :  { %v294_v59 = vpop.permute.xlu0 %293  ;;  %v3360_v52 = vmul.f32 %v319_v5, %v4127_v41  ;;  %v3364_v54 = vmul.f32 %v319_v5, %v4128_v4  ;;  %v4132_v4 = vmax.f32 %v3066_v42, 0.0  ;;  %v3386_v2 = vadd.f32 %v2824_v40, %v127_v57 }
  0x87   :  { %v3378_v41 = vmul.f32 %v294_v59, %v4131_v20  ;;  %v3398_v18 = vadd.f32 %v2824_v40, %v126_v61  ;;  %v4134_v57 = vrot.slane %v3212_v15, 1  ;;  %v4135_v44 = vmax.f32 %v3097_v0, 0.0 }
  0x88   :  { %v3383_v5 = vmul.f32 %v294_v59, %v4132_v4  ;;  %v4136_v45 = vmax.f32 %v3119_v26, 0.0  ;;  %v4137_v61 = vmax.f32 %v3127_v23, 0.0  ;;  %v4138_v42 = vmax.f32 %v3130_v25, 0.0 }
  0x89   :  { %v3405_v59 = vsel %vm572_vm0, %v606_v33, %v4134_v57  ;;  %v3421_v33 = vpack.c.bf16 %v3370_v60, %v3378_v41  ;;  %v826_v23 = vrot.slane %v3378_v41, 2  ;;  %v4141_v57 = vrot.slane %v3010_v10, 2 }
  0x8a   :  { %v3428_v26 = vpack.c.bf16 %v3374_v27, %v3383_v5 }
  0x8b   :  { %4139 = vst [vmem:[#allocation8_spill] sm:$0xff] %v3421_v33 }
  0x8c   :  { %v259_v32 = vpop.permute.xlu1 %258  ;;  %4140 = vst [vmem:[#allocation9_spill] sm:$0xff] %v3428_v26 }
  0x8d   :  { %v336_v20 = vmul.f32 %v259_v32, %v4135_v44  ;;  %v3413_v4 = vmul.f32 %v259_v32, %v4136_v45 }
  0x8e   :  { %v249_v40 = vpop.permute.xlu0 %248 }
  0x8f   :  { %v334_v7 = vmul.f32 %v249_v40, %v4137_v61  ;;  %v354_v14 = vmul.f32 %v249_v40, %v4138_v42  ;;  %v604_v0 = vrot.slane %v3413_v4, 1  ;;  %v815_v44 = vrot.slane %v336_v20, 2  ;;  %v2641_v40 = vld [vmem:[%s4101_s4 + $0x230] sm:$0xff] }
  0x90   :  { %v580_v29 = vrot.slane %v336_v20, 1  ;;  %v839_v61 = vrot.slane %v3413_v4, 2  ;;  %v4143_v20 = vrot.slane %v3285_v8, 2  ;;  %2004 = vmatpush.bf16.msra.mxu0 %v2641_v40 }
  0x91   :  { %v601_v25 = vrot.slane %v354_v14, 1  ;;  %v812_v42 = vrot.slane %v334_v7, 2  ;;  %v836_v45 = vrot.slane %v354_v14, 2  ;;  %482 = vmatmul.bf16.gmra.mxu1 %v3421_v33  ;;  %502 = vmatmul.bf16.gmra.mxu3 %v3428_v26  ;;  %v3439_v56 = vsel %vm807_vm1, %v4141_v57, %v815_v44  ;;  %v2617_v57 = vld [vmem:[%s4101_s4 + $0x170] sm:$0xff] }
  0x92   :  { %v3442_v51 = vsel %vm572_vm0, %v603_v34, %v604_v0  ;;  %v2625_v34 = vld [vmem:[%s4101_s4 + $0x1b0] sm:$0xff]  ;;  %v3465_v4 = vsel %vm807_vm1, %v826_v23, %v4143_v20  ;;  %v577_v20 = vrot.slane %v334_v7, 1  ;;  %v4146_v0 = vmax.f32 %v3163_v22, 0.0  ;;  %1492 = vmatpush.bf16.msra.mxu1 %v2617_v57 }
  0x93   :  { %v3445_v32 = vsel %vm807_vm1, %v811_v30, %v812_v42  ;;  %472 = vmatmul.bf16.gmra.mxu0 %v3101_v6  ;;  %492 = vmatmul.bf16.gmra.mxu2 %v3105_v9  ;;  %v2633_v30 = vld [vmem:[%s4101_s4 + $0x1f0] sm:$0xff]  ;;  %4144 = vst [vmem:[#allocation11_spill] sm:$0xff] %v3465_v4  ;;  %v3474_v14 = vsel %vm572_vm0, %v600_v31, %v601_v25  ;;  %v4147_v42 = vmax.f32 %v3175_v62, 0.0  ;;  %v838_v62 = vrot.slane %v3015_v11, 2 }
  0x94   :  { %4142 = vst [vmem:[#allocation10_spill] sm:$0xff] %v3445_v32  ;;  %v289_v44 = vpop.permute.xlu1 %288  ;;  %v3477_v26 = vsel %vm807_vm1, %v835_v50, %v836_v45  ;;  %v3481_v23 = vpack.c.bf16 %v3405_v59, %v3442_v51  ;;  %1656 = vmatpush.bf16.msra.mxu2 %v2625_v34  ;;  %1832 = vmatpush.bf16.msra.mxu3 %v2633_v30  ;;  %v4148_v50 = vmax.f32 %v3187_v43, 0.0  ;;  %v4149_v45 = vmax.f32 %v3205_v49, 0.0 }
  0x95   :  { %v3485_v9 = vmul.f32 %v289_v44, %v4146_v0  ;;  %v362_v33 = vmul.f32 %v289_v44, %v4147_v42  ;;  %v4150_v30 = vrot.slane %v3010_v10, 1  ;;  %v841_v43 = vrot.slane %v3072_v47, 2 }
  0x96   :  { %4145 = vst [vmem:[#allocation12_spill] sm:$0xff] %v3481_v23  ;;  %v279_v39 = vpop.permute.xlu0 %278  ;;  %v609_v44 = vrot.slane %v3198_v21, 1  ;;  %v612_v57 = vrot.slane %v3226_v28, 1  ;;  %v4151_v42 = vrot.slane %v3238_v37, 1  ;;  %v4155_v47 = vrot.slane %v3194_v35, 2 }
  0x97   :  { %v3493_v25 = vmul.f32 %v279_v39, %v4148_v50  ;;  %v360_v7 = vmul.f32 %v279_v39, %v4149_v45  ;;  %v824_v34 = vrot.slane %v3485_v9, 2  ;;  %v3504_v0 = vsel %vm572_vm0, %v4150_v30, %v580_v29 }
  0x98   :  { %v613_v49 = vrot.slane %v362_v33, 1  ;;  %v578_v50 = vsel %vm572_vm0, %v4151_v42, %v577_v20  ;;  %v4152_v45 = vrot.slane %v3222_v46, 2  ;;  %v3521_v30 = vsel %vm807_vm1, %v838_v62, %v839_v61 }
  0x99   :  { %v610_v39 = vrot.slane %v360_v7, 1  ;;  %v821_v40 = vrot.slane %v3493_v25, 2  ;;  %4154 = vst [vmem:[#allocation14_spill] sm:$0xff] %v3521_v30  ;;  %v848_v31 = vrot.slane %v362_v33, 2  ;;  %v845_v6 = vrot.slane %v360_v7, 2 }
  0x9a   :  { %v3516_v22 = vsel %vm807_vm1, %v4152_v45, %v824_v34  ;;  %v4156_v42 = vrot.slane %v3212_v15, 2  ;;  %v844_v33 = vrot.slane %v3198_v21, 2  ;;  %v847_v61 = vrot.slane %v3226_v28, 2 }
  0x9b   :  { %4153 = vst [vmem:[#allocation13_spill] sm:$0xff] %v3516_v22  ;;  %v3526_v23 = vsel %vm807_vm1, %v4155_v47, %v821_v40  ;;  %v3548_v40 = vsel %vm572_vm0, %v609_v44, %v610_v39  ;;  %v3551_v15 = vsel %vm572_vm0, %v612_v57, %v613_v49  ;;  %v615_v62 = vrot.slane %v3383_v5, 1 }
  0x9c   :  { %v3532_v34 = vpack.c.bf16 %v3516_v22, %v3526_v23  ;;  %v3537_v45 = vsel %vm807_vm1, %v841_v43, %v4156_v42  ;;  %v314_v7 = vpop.permute.xlu1 %313  ;;  %v4158_v43 = vmax.f32 %v3277_v53, 0.0  ;;  %v3561_v22 = vpack.c.bf16 %v3551_v15, %v3548_v40 }
  0x9d   :  { %4157 = vst [vmem:[#allocation15_spill] sm:$0xff] %v3537_v45  ;;  %v3543_v47 = vpack.c.bf16 %v3537_v45, %v3521_v30  ;;  %v4160_v44 = vmax.f32 %v3309_v55, 0.0  ;;  %v4161_v49 = vmax.f32 %v3327_v13, 0.0  ;;  %v3571_v53 = vsel %vm807_vm1, %v844_v33, %v845_v6 }
  0x9e   :  { %v3555_v42 = vmul.f32 %v314_v7, %v4158_v43  ;;  %v309_v20 = vpop.permute.xlu0 %308  ;;  %4159 = vst [vmem:[#allocation16_spill] sm:$0xff] %v3561_v22  ;;  %v3574_v43 = vsel %vm807_vm1, %v847_v61, %v848_v31  ;;  %v653_v29 = vpack.c.bf16 %v578_v50, %v3314_v24  ;;  %v888_v30 = vpack.c.bf16 %v3445_v32, %v3319_v19 }
  0x9f   :  { %v3566_v39 = vmul.f32 %v309_v20, %v4160_v44  ;;  %v366_v57 = vmul.f32 %v309_v20, %v4161_v49  ;;  %4162 = vst [vmem:[#allocation17_spill] sm:$0xff] %v3571_v53  ;;  %v3582_v55 = vpack.c.bf16 %v3574_v43, %v3571_v53  ;;  %v1240_v6 = vpack.c.bf16 %v3504_v0, %v578_v50 }
  0xa0   :  { %v1394_v22 = vrot.slane %v3555_v42, 2  ;;  %v1216_v20 = vrot.slane %v3555_v42, 1  ;;  %v4163_v24 = vmax.f32 %v3292_v12, 0.0  ;;  %v4164_v19 = vpack.c.bf16 %v3010_v10, %v3238_v37 }
  0xa1   :  { %v619_v44 = vrot.slane %v366_v57, 1  ;;  %v830_v13 = vrot.slane %v3566_v39, 2  ;;  %734 = vmatmul.bf16.vlgmr.msrb.gmra.mxu1 %v653_v29  ;;  %v4165_v61 = vrot.slane %v3360_v52, 2  ;;  %v4166_v32 = vrot.slane %v3370_v60, 2 }
  0xa2   :  { %v3590_v33 = vmul.f32 %v314_v7, %v4163_v24  ;;  %1139 = vmatmul.bf16.vlgmr.msrb.gmra.mxu3 %v4164_v19  ;;  %v4168_v29 = vrot.slane %v3289_v16, 1  ;;  %v618_v37 = vrot.slane %v3374_v27, 1  ;;  %v2624_v7 = vld [vmem:[%s4101_s4 + $0x1a8] sm:$0xff]  ;;  %v4169_v19 = vrot.slane %v3360_v52, 1 }
  0xa3   :  { %v3598_v49 = vsel %vm807_vm1, %v1394_v22, %v4165_v61  ;;  %v3605_v31 = vsel %vm807_vm1, %v4166_v32, %v830_v13  ;;  %v854_v22 = vrot.slane %v366_v57, 2  ;;  %969 = vmatmul.bf16.vlgmr.msrb.gmra.mxu2 %v888_v30  ;;  %1321 = vmatmul.bf16.vlgmr.msrb.gmra.mxu0 %v1240_v6  ;;  %v2632_v32 = vld [vmem:[%s4101_s4 + $0x1e8] sm:$0xff]  ;;  %v850_v57 = vrot.slane %v3383_v5, 2 }
  0xa4   :  { %4167 = vst [vmem:[#allocation18_spill] sm:$0xff] %v3605_v31  ;;  %v3612_v10 = vsel %vm572_vm0, %v615_v62, %v4168_v29  ;;  %v2616_v13 = vld [vmem:[%s4101_s4 + $0x168] sm:$0xff]  ;;  %v3626_v62 = vpack.c.bf16 %v3605_v31, %v3465_v4  ;;  %v329_v6 = vpop.permute.xlu1 %328  ;;  %v3637_v61 = vsel %vm572_vm0, %v1216_v20, %v4169_v19  ;;  %v3642_v50 = vsel %vm572_vm0, %v618_v37, %v619_v44 }
  0xa5   :  { %v2640_v24 = vld [vmem:[%s4101_s4 + $0x228] sm:$0xff]  ;;  %v853_v30 = vrot.slane %v3374_v27, 2  ;;  %v4170_v12 = vmax.f32 %v3345_v3, 0.0  ;;  %v4171_v53 = vmax.f32 %v3386_v2, 0.0  ;;  %1657 = vmatpush.bf16.msra.mxu2 %v2624_v7  ;;  %1833 = vmatpush.bf16.msra.mxu3 %v2632_v32  ;;  %v3651_v52 = vpack.c.bf16 %v3642_v50, %v3612_v10 }
  0xa6   :  { %v324_v4 = vpop.permute.xlu0 %323  ;;  %v1397_v20 = vrot.slane %v3590_v33, 2  ;;  %v4172_v44 = vmax.f32 %v3395_v58, 0.0  ;;  %v4173_v19 = vmax.f32 %v3398_v18, 0.0  ;;  %1493 = vmatpush.bf16.msra.mxu1 %v2616_v13  ;;  %2005 = vmatpush.bf16.msra.mxu0 %v2640_v24  ;;  %v4174_v2 = vrot.slane %v3289_v16, 2 }
  0xa7   :  { %v350_v45 = vmul.f32 %v329_v6, %v4170_v12  ;;  %v370_v31 = vmul.f32 %v329_v6, %v4171_v53  ;;  %v1219_v12 = vrot.slane %v3590_v33, 1  ;;  %v3673_v13 = vsel %vm807_vm1, %v853_v30, %v854_v22 }
  0xa8   :  { %v3656_v37 = vmul.f32 %v324_v4, %v4172_v44  ;;  %v3660_v3 = vmul.f32 %v324_v4, %v4173_v19  ;;  %v3665_v53 = vsel %vm807_vm1, %v850_v57, %v4174_v2  ;;  %v4175_v16 = vrot.slane %v3364_v54, 2 }
  0xa9   :  { %v1741_v7 = vrot.slane %v350_v45, 1  ;;  %v1744_v32 = vrot.slane %v370_v31, 1  ;;  %v1913_v6 = vrot.slane %v350_v45, 2  ;;  %v1916_v29 = vrot.slane %v370_v31, 2 }
  0xaa   :  { %v1740_v58 = vrot.slane %v3656_v37, 1  ;;  %v1743_v44 = vrot.slane %v3660_v3, 1  ;;  %v1912_v18 = vrot.slane %v3656_v37, 2  ;;  %v1915_v4 = vrot.slane %v3660_v3, 2 }
  0xab   :  { %v3678_v57 = vsel %vm807_vm1, %v1397_v20, %v4175_v16  ;;  %v1065_v31 = vpack.c.bf16 %v3590_v33, %v3374_v27  ;;  %v3689_v19 = vpack.c.bf16 %v3673_v13, %v3665_v53  ;;  %v4176_v30 = vrot.slane %v3364_v54, 1 }
  0xac   :  { %v3685_v24 = vsel %vm572_vm0, %v1740_v58, %v1741_v7  ;;  %v3703_v7 = vsel %vm572_vm0, %v1743_v44, %v1744_v32  ;;  %v585_v45 = vrot.slane %v3194_v35, 1  ;;  %v3718_v32 = vsel %vm807_vm1, %v1915_v4, %v1916_v29 }
  0xad   :  { %v3696_v20 = vsel %vm572_vm0, %v1219_v12, %v4176_v30  ;;  %v3711_v12 = vsel %vm807_vm1, %v1912_v18, %v1913_v6  ;;  %v4177_v44 = vrot.slane %v3202_v63, 1  ;;  %v4178_v2 = vrot.slane %v3062_v38, 1 }
  0xae   :  { %v1247_v16 = vpack.c.bf16 %v3696_v20, %v3642_v50  ;;  %v1936_v22 = vpack.c.bf16 %v3711_v12, %v3598_v49  ;;  %v4179_v54 = vrot.slane %v3493_v25, 1  ;;  %v1937_v18 = vpack.c.bf16 %v3718_v32, %v3678_v57  ;;  %v2623_v25 = vld [vmem:[%s4101_s4 + $0x1a0] sm:$0xff]  ;;  %v4193_v50 = vld [vmem:[#allocation4_spill] sm:$0xff]  ;;  %v4205_v12 = vld [vmem:[#allocation5_spill] sm:$0xff] }
  0xaf   :  { %v584_v58 = vsel %vm572_vm0, %v4178_v2, %v4177_v44  ;;  %v1059_v29 = vpack.c.bf16 %v3194_v35, %v3062_v38  ;;  %v3738_v63 = vpack.c.bf16 %v3306_v48, %v3439_v56  ;;  %v2615_v38 = vld [vmem:[%s4101_s4 + $0x160] sm:$0xff]  ;;  %1658 = vmatpush.bf16.msra.mxu2 %v2623_v25  ;;  %v588_v2 = vrot.slane %v3222_v46, 1 }
  0xb0   :  { %v587_v6 = vsel %vm572_vm0, %v585_v45, %v4179_v54  ;;  %v3731_v30 = vpack.c.bf16 %v584_v58, %v3504_v0  ;;  %v2631_v0 = vld [vmem:[%s4101_s4 + $0x1e0] sm:$0xff]  ;;  %1494 = vmatpush.bf16.msra.mxu1 %v2615_v38  ;;  %v589_v45 = vrot.slane %v3485_v9, 1  ;;  %v591_v44 = vrot.slane %v3378_v41, 1  ;;  %v2622_v9 = vld [vmem:[%s4101_s4 + $0x198] sm:$0xff] }
  0xb1   :  { %v1241_v4 = vpack.c.bf16 %v587_v6, %v584_v58  ;;  %v2639_v35 = vld [vmem:[%s4101_s4 + $0x220] sm:$0xff]  ;;  %1834 = vmatpush.bf16.msra.mxu3 %v2631_v0  ;;  %v592_v58 = vrot.slane %v3285_v8, 1  ;;  %v2630_v8 = vld [vmem:[%s4101_s4 + $0x1d8] sm:$0xff]  ;;  %v594_v38 = vrot.slane %v3370_v60, 1 }
  0xb2   :  { %739 = vmatmul.bf16.gmra.mxu1 %v3731_v30  ;;  %1144 = vmatmul.bf16.gmra.mxu3 %v1059_v29  ;;  %v590_v54 = vsel %vm572_vm0, %v588_v2, %v589_v45  ;;  %v1061_v2 = vpack.c.bf16 %v3555_v42, %v3370_v60  ;;  %v2613_v60 = vld [vmem:[%s4101_s4 + $0x150] sm:$0xff] }
  0xb3   :  { %974 = vmatmul.bf16.gmra.mxu2 %v3738_v63  ;;  %1326 = vmatmul.bf16.gmra.mxu0 %v1241_v4  ;;  %v3758_v29 = vpack.c.bf16 %v590_v54, %v587_v6  ;;  %v1060_v4 = vpack.c.bf16 %v3378_v41, %v3222_v46  ;;  %v593_v25 = vsel %vm572_vm0, %v591_v44, %v592_v58  ;;  %v2614_v46 = vld [vmem:[%s4101_s4 + $0x158] sm:$0xff]  ;;  %v595_v6 = vrot.slane %v3566_v39, 1  ;;  %v2621_v39 = vld [vmem:[%s4101_s4 + $0x190] sm:$0xff] }
  0xb4   :  { %2006 = vmatpush.bf16.msra.mxu0 %v2639_v35  ;;  %v1242_v0 = vpack.c.bf16 %v593_v25, %v590_v54  ;;  %v2638_v41 = vld [vmem:[%s4101_s4 + $0x218] sm:$0xff]  ;;  %1659 = vmatpush.bf16.msra.mxu2 %v2622_v9  ;;  %v2629_v54 = vld [vmem:[%s4101_s4 + $0x1d0] sm:$0xff]  ;;  %v4183_v9 = vpack.c.bf16 %v3442_v51, %v3474_v14  ;;  %v4185_v51 = vld [vmem:[#allocation3_spill] sm:$0xff] }
  0xb5   :  { %1835 = vmatpush.bf16.msra.mxu3 %v2630_v8  ;;  %1495 = vmatpush.bf16.msra.mxu1 %v2614_v46  ;;  %v596_v35 = vsel %vm572_vm0, %v594_v38, %v595_v6  ;;  %v2637_v44 = vld [vmem:[%s4101_s4 + $0x210] sm:$0xff]  ;;  %v2620_v8 = vld [vmem:[%s4101_s4 + $0x188] sm:$0xff]  ;;  %v4187_v46 = vpack.c.bf16 %v3548_v40, %v3405_v59  ;;  %v2627_v6 = vld [vmem:[%s4101_s4 + $0x1c0] sm:$0xff] }
  0xb6   :  { %v3780_v45 = vpack.c.bf16 %v596_v35, %v593_v25  ;;  %v1243_v58 = vpack.c.bf16 %v3637_v61, %v596_v35  ;;  %v4181_v25 = vpack.c.bf16 %v3015_v11, %v3242_v1  ;;  %v2612_v11 = vld [vmem:[%s4101_s4 + $0x148] sm:$0xff]  ;;  %v2635_v59 = vld [vmem:[%s4101_s4 + $0x200] sm:$0xff] }
  0xb7   :  { %v2636_v1 = vld [vmem:[%s4101_s4 + $0x208] sm:$0xff] }
  0xb8   :  { %2007 = vmatpush.bf16.msra.mxu0 %v2638_v41  ;;  %1660 = vmatpush.bf16.msra.mxu2 %v2621_v39  ;;  %v2619_v41 = vld [vmem:[%s4101_s4 + $0x180] sm:$0xff]  ;;  %v4188_v35 = vld [vmem:[#allocation16_spill] sm:$0xff] }
  0xb9   :  { %1836 = vmatpush.bf16.msra.mxu3 %v2629_v54  ;;  %1496 = vmatpush.bf16.msra.mxu1 %v2613_v60 }
  0xbc   :  { %2008 = vmatpush.bf16.msra.mxu0 %v2637_v44  ;;  %1661 = vmatpush.bf16.msra.mxu2 %v2620_v8 }
  0xbd   :  { %1497 = vmatpush.bf16.msra.mxu1 %v2612_v11 }
  0xc0   :  { %2009 = vmatpush.bf16.msra.mxu0 %v2636_v1  ;;  %1662 = vmatpush.bf16.msra.mxu2 %v2619_v41  ;;  %v4191_v1 = vld [vmem:[#allocation10_spill] sm:$0xff] }
  0xc2   :  { %744 = vmatmul.bf16.gmra.mxu1 %v3758_v29  ;;  %1149 = vmatmul.bf16.gmra.mxu3 %v1060_v4  ;;  %v4180_v4 = vpack.c.bf16 %v3474_v14, %v3218_v17  ;;  %v2628_v17 = vld [vmem:[%s4101_s4 + $0x1c8] sm:$0xff]  ;;  %v4186_v14 = vpack.c.bf16 %v3198_v21, %v4185_v51  ;;  %v2611_v21 = vld [vmem:[%s4101_s4 + $0x140] sm:$0xff]  ;;  %v4192_v51 = vpack.c.bf16 %v3439_v56, %v4191_v1 }
  0xc3   :  { %979 = vmatmul.bf16.gmra.mxu2 %v3532_v34  ;;  %1331 = vmatmul.bf16.gmra.mxu0 %v1242_v0  ;;  %v4182_v0 = vpack.c.bf16 %v3477_v26, %v3392_v36  ;;  %v4184_v36 = vld [vmem:[#allocation12_spill] sm:$0xff] }
  0xc4   :  { %1837 = vmatpush.bf16.msra.mxu3 %v2628_v17  ;;  %1498 = vmatpush.bf16.msra.mxu1 %v2611_v21 }
  0xc5   :  { %2010 = vmatpush.bf16.msra.mxu0 %v2635_v59 }
  0xc8   :  { %1838 = vmatpush.bf16.msra.mxu3 %v2627_v6 }
  0xd2   :  { %749 = vmatmul.bf16.gmra.mxu1 %v3780_v45  ;;  %1154 = vmatmul.bf16.gmra.mxu3 %v1061_v2  ;;  %v4189_v2 = vpack.c.bf16 %v3383_v5, %v3226_v28 }
  0xd3   :  { %984 = vmatmul.bf16.gmra.mxu2 %v3626_v62  ;;  %1336 = vmatmul.bf16.gmra.mxu0 %v1243_v58  ;;  %v4190_v58 = vpack.c.bf16 %v3612_v10, %v3551_v15 }
  0xe2   :  { %754 = vmatmul.bf16.gmra.mxu1 %v4180_v4  ;;  %1159 = vmatmul.bf16.gmra.mxu3 %v4181_v25 }
  0xe3   :  { %989 = vmatmul.bf16.gmra.mxu2 %v4182_v0  ;;  %1341 = vmatmul.bf16.gmra.mxu0 %v4183_v9 }
  0xf2   :  { %759 = vmatmul.bf16.gmra.mxu1 %v4184_v36  ;;  %1164 = vmatmul.bf16.gmra.mxu3 %v4186_v14 }
  0xf3   :  { %994 = vmatmul.bf16.gmra.mxu2 %v3543_v47  ;;  %1346 = vmatmul.bf16.gmra.mxu0 %v4187_v46 }
  0xfe   :  { %v3843_v40 = vpop.f32.mrf.mxu1 }
 0x100   :  { %v468_v38 = vpop.f32.mrf.mxu0 }
 0x102   :  { %764 = vmatmul.bf16.gmra.mxu1 %v4188_v35  ;;  %1169 = vmatmul.bf16.gmra.mxu3 %v4189_v2 }
 0x103   :  { %999 = vmatmul.bf16.gmra.mxu2 %v3582_v55  ;;  %1351 = vmatmul.bf16.gmra.mxu0 %v4190_v58 }
 0x104   :  { %v3853_v39 = vpop.f32.mrf.mxu3 }
 0x106   :  { %v3855_v54 = vpop.f32.mrf.mxu2  ;;  %v3857_v60 = vpop.f32.mrf.mxu1 }
 0x108   :  { %v470_v44 = vpop.f32.mrf.mxu0 }
 0x10c   :  { %v3859_v4 = vpop.f32.mrf.mxu3 }
 0x10e   :  { %v3861_v25 = vpop.f32.mrf.mxu2  ;;  %v3863_v0 = vpop.f32.mrf.mxu1 }
 0x110   :  { %v473_v28 = vpop.f32.mrf.mxu0 }
 0x112   :  { %769 = vmatmul.bf16.gmra.mxu1 %v3651_v52  ;;  %1174 = vmatmul.bf16.gmra.mxu3 %v1065_v31 }
 0x113   :  { %1004 = vmatmul.bf16.gmra.mxu2 %v3689_v19  ;;  %1356 = vmatmul.bf16.gmra.mxu0 %v1247_v16 }
 0x114   :  { %v3873_v5 = vpop.f32.mrf.mxu3 }
 0x116   :  { %v3875_v15 = vpop.f32.mrf.mxu2  ;;  %v3877_v10 = vpop.f32.mrf.mxu1 }
 0x118   :  { %v475_v9 = vpop.f32.mrf.mxu0 }
 0x11c   :  { %v3879_v8 = vpop.f32.mrf.mxu3 }
 0x11e   :  { %v3881_v17 = vpop.f32.mrf.mxu2  ;;  %v735_v11 = vpop.f32.mrf.mxu1 }
 0x11f   :  { %v775_v27 = vadd.f32 %v735_v11, %v468_v38 }
 0x120   :  { %v1322_v31 = vpop.f32.mrf.mxu0 }
 0x122   :  { %1499 = vmatmul.bf16.vlgmr.msra.gmra.mxu1 %v4192_v51  ;;  %1839 = vmatmul.bf16.vlgmr.msra.gmra.mxu3 %v3731_v30 }
 0x123   :  { %1663 = vmatmul.bf16.vlgmr.msra.gmra.mxu2 %v4193_v50  ;;  %2011 = vmatmul.bf16.vlgmr.msra.gmra.mxu0 %v3738_v63  ;;  %v4194_v50 = vpack.c.bf16 %v3526_v23, %v3306_v48  ;;  %v4195_v63 = vld [vmem:[#allocation6_spill] sm:$0xff] }
 0x125   :  { %v1140_v16 = vpop.f32.mrf.mxu3 }
 0x126   :  { %v970_v14 = vpop.f32.mrf.mxu2  ;;  %v737_v46 = vpop.f32.mrf.mxu1 }
 0x127   :  { %v1010_v41 = vadd.f32 %v970_v14, %v775_v27  ;;  %v776_v6 = vadd.f32 %v737_v46, %v470_v44 }
 0x128   :  { %v1324_v21 = vpop.f32.mrf.mxu0 }
 0x129   :  { %v1180_v59 = vadd.f32 %v1140_v16, %v1010_v41 }
 0x12b   :  { %v3889_v2 = vadd.f32 %v1322_v31, %v1180_v59 }
 0x12d   :  { %v1142_v38 = vpop.f32.mrf.mxu3 }
 0x12e   :  { %v972_v58 = vpop.f32.mrf.mxu2 }
 0x12f   :  { %v740_v11 = vpop.f32.mrf.mxu1  ;;  %v1011_v56 = vadd.f32 %v972_v58, %v776_v6 }
 0x130   :  { %v777_v1 = vadd.f32 %v740_v11, %v473_v28  ;;  %v1327_v51 = vpop.f32.mrf.mxu0 }
 0x131   :  { %v1181_v30 = vadd.f32 %v1142_v38, %v1011_v56 }
 0x132   :  { %1504 = vmatmul.bf16.gmra.mxu1 %v4194_v50  ;;  %1844 = vmatmul.bf16.gmra.mxu3 %v3758_v29 }
 0x133   :  { %1668 = vmatmul.bf16.gmra.mxu2 %v4195_v63  ;;  %2016 = vmatmul.bf16.gmra.mxu0 %v3532_v34  ;;  %v3897_v44 = vadd.f32 %v1324_v21, %v1181_v30  ;;  %v4196_v34 = vld [vmem:[#allocation11_spill] sm:$0xff]  ;;  %v4197_v21 = vld [vmem:[#allocation13_spill] sm:$0xff] }
 0x134   :  { %v4198_v56 = vpack.c.bf16 %v4196_v34, %v4197_v21 }
 0x135   :  { %v1145_v27 = vpop.f32.mrf.mxu3 }
 0x136   :  { %v975_v31 = vpop.f32.mrf.mxu2 }
 0x137   :  { %v742_v16 = vpop.f32.mrf.mxu1  ;;  %v1012_v14 = vadd.f32 %v975_v31, %v777_v1  ;;  %v4199_v1 = vld [vmem:[#allocation8_spill] sm:$0xff] }
 0x138   :  { %v778_v46 = vadd.f32 %v742_v16, %v475_v9  ;;  %v1329_v28 = vpop.f32.mrf.mxu0 }
 0x139   :  { %v1182_v41 = vadd.f32 %v1145_v27, %v1012_v14 }
 0x13b   :  { %v3899_v6 = vadd.f32 %v1327_v51, %v1182_v41 }
 0x13d   :  { %v1147_v59 = vpop.f32.mrf.mxu3 }
 0x13e   :  { %v977_v48 = vpop.f32.mrf.mxu2 }
 0x13f   :  { %v745_v23 = vpop.f32.mrf.mxu1  ;;  %v1013_v38 = vadd.f32 %v977_v48, %v778_v46 }
 0x140   :  { %v779_v29 = vadd.f32 %v745_v23, %v3843_v40  ;;  %v1332_v58 = vpop.f32.mrf.mxu0 }
 0x141   :  { %v1183_v11 = vadd.f32 %v1147_v59, %v1013_v38  ;;  %v1588_v38 = vpack.c.bf16 %v3656_v37, %v3555_v42 }
 0x142   :  { %1509 = vmatmul.bf16.gmra.mxu1 %v4198_v56  ;;  %1849 = vmatmul.bf16.gmra.mxu3 %v3780_v45 }
 0x143   :  { %1673 = vmatmul.bf16.gmra.mxu2 %v4199_v1  ;;  %2021 = vmatmul.bf16.gmra.mxu0 %v3626_v62  ;;  %v3908_v9 = vadd.f32 %v1329_v28, %v1183_v11  ;;  %v4200_v28 = vld [vmem:[#allocation18_spill] sm:$0xff] }
 0x144   :  { %v4201_v23 = vpack.c.bf16 %v3598_v49, %v4200_v28  ;;  %v4203_v49 = vld [vmem:[#allocation14_spill] sm:$0xff] }
 0x145   :  { %v1150_v51 = vpop.f32.mrf.mxu3 }
 0x146   :  { %v980_v30 = vpop.f32.mrf.mxu2 }
 0x147   :  { %v747_v50 = vpop.f32.mrf.mxu1  ;;  %v1014_v63 = vadd.f32 %v980_v30, %v779_v29 }
 0x148   :  { %v780_v40 = vadd.f32 %v747_v50, %v3857_v60  ;;  %v1334_v27 = vpop.f32.mrf.mxu0  ;;  %v4202_v60 = vpack.c.bf16 %v3685_v24, %v3637_v61 }
 0x149   :  { %v1184_v31 = vadd.f32 %v1150_v51, %v1014_v63 }
 0x14b   :  { %v3911_v16 = vadd.f32 %v1332_v58, %v1184_v31 }
 0x14d   :  { %v1152_v14 = vpop.f32.mrf.mxu3 }
 0x14e   :  { %v982_v46 = vpop.f32.mrf.mxu2 }
 0x14f   :  { %v750_v41 = vpop.f32.mrf.mxu1  ;;  %v1015_v45 = vadd.f32 %v982_v46, %v780_v40 }
 0x150   :  { %v781_v59 = vadd.f32 %v750_v41, %v3863_v0  ;;  %v1337_v48 = vpop.f32.mrf.mxu0 }
 0x151   :  { %v1185_v62 = vadd.f32 %v1152_v14, %v1015_v45 }
 0x152   :  { %1514 = vmatmul.bf16.gmra.mxu1 %v4201_v23  ;;  %1854 = vmatmul.bf16.gmra.mxu3 %v4202_v60  ;;  %v4206_v23 = vld [vmem:[#allocation17_spill] sm:$0xff] }
 0x153   :  { %1678 = vmatmul.bf16.gmra.mxu2 %v1588_v38  ;;  %2026 = vmatmul.bf16.gmra.mxu0 %v1936_v22  ;;  %v3925_v29 = vadd.f32 %v1334_v27, %v1185_v62  ;;  %v4204_v22 = vpack.c.bf16 %v4203_v49, %v3477_v26  ;;  %v4207_v38 = vld [vmem:[#allocation15_spill] sm:$0xff]  ;;  %v4210_v49 = vpack.c.bf16 %v3665_v53, %v3574_v43 }
 0x154   :  { %v4208_v60 = vpack.c.bf16 %v4206_v23, %v4207_v38 }
 0x155   :  { %v1155_v0 = vpop.f32.mrf.mxu3 }
 0x156   :  { %v985_v58 = vpop.f32.mrf.mxu2 }
 0x157   :  { %v752_v11 = vpop.f32.mrf.mxu1  ;;  %v1016_v34 = vadd.f32 %v985_v58, %v781_v59 }
 0x158   :  { %v782_v21 = vadd.f32 %v752_v11, %v3877_v10  ;;  %v1339_v56 = vpop.f32.mrf.mxu0 }
 0x159   :  { %v1186_v1 = vadd.f32 %v1155_v0, %v1016_v34 }
 0x15b   :  { %v3928_v42 = vadd.f32 %v1337_v48, %v1186_v1 }
 0x15d   :  { %v1157_v37 = vpop.f32.mrf.mxu3 }
 0x15e   :  { %v987_v61 = vpop.f32.mrf.mxu2 }
 0x15f   :  { %v755_v24 = vpop.f32.mrf.mxu1  ;;  %v1017_v51 = vadd.f32 %v987_v61, %v782_v21 }
 0x160   :  { %v1342_v30 = vpop.f32.mrf.mxu0  ;;  %v783_v40 = vadd.f32 %v755_v24, %v3855_v54  ;;  %v4209_v54 = vld [vmem:[#allocation7_spill] sm:$0xff] }
 0x161   :  { %v1187_v50 = vadd.f32 %v1157_v37, %v1017_v51 }
 0x162   :  { %1519 = vmatmul.bf16.gmra.mxu1 %v4204_v22  ;;  %1859 = vmatmul.bf16.gmra.mxu3 %v4184_v36 }
 0x163   :  { %1683 = vmatmul.bf16.gmra.mxu2 %v4205_v12  ;;  %2031 = vmatmul.bf16.gmra.mxu0 %v3543_v47  ;;  %v3936_v10 = vadd.f32 %v1339_v56, %v1187_v50 }
 0x165   :  { %v1160_v63 = vpop.f32.mrf.mxu3 }
 0x166   :  { %v990_v27 = vpop.f32.mrf.mxu2 }
 0x167   :  { %v757_v31 = vpop.f32.mrf.mxu1  ;;  %v1018_v14 = vadd.f32 %v990_v27, %v783_v40 }
 0x168   :  { %v1344_v46 = vpop.f32.mrf.mxu0  ;;  %v784_v59 = vadd.f32 %v757_v31, %v3861_v25 }
 0x169   :  { %v1188_v41 = vadd.f32 %v1160_v63, %v1018_v14 }
 0x16b   :  { %v3939_v45 = vadd.f32 %v1342_v30, %v1188_v41 }
 0x16d   :  { %v1162_v26 = vpop.f32.mrf.mxu3 }
 0x16e   :  { %v992_v36 = vpop.f32.mrf.mxu2 }
 0x16f   :  { %v760_v48 = vpop.f32.mrf.mxu1  ;;  %v1019_v62 = vadd.f32 %v992_v36, %v784_v59  ;;  %v4212_v36 = vpack.c.bf16 %v3678_v57, %v3673_v13 }
 0x170   :  { %v1347_v28 = vpop.f32.mrf.mxu0  ;;  %v785_v25 = vadd.f32 %v760_v48, %v3875_v15  ;;  %v4211_v15 = vld [vmem:[#allocation9_spill] sm:$0xff]  ;;  %v4214_v48 = vpack.c.bf16 %v3660_v3, %v3590_v33 }
 0x171   :  { %v1189_v47 = vadd.f32 %v1162_v26, %v1019_v62 }
 0x172   :  { %1524 = vmatmul.bf16.gmra.mxu1 %v4208_v60  ;;  %1864 = vmatmul.bf16.gmra.mxu3 %v4188_v35 }
 0x173   :  { %1688 = vmatmul.bf16.gmra.mxu2 %v4209_v54  ;;  %2036 = vmatmul.bf16.gmra.mxu0 %v3582_v55  ;;  %v3948_v0 = vadd.f32 %v1344_v46, %v1189_v47 }
 0x175   :  { %v1165_v58 = vpop.f32.mrf.mxu3 }
 0x176   :  { %v995_v11 = vpop.f32.mrf.mxu2 }
 0x177   :  { %v762_v34 = vpop.f32.mrf.mxu1  ;;  %v1020_v21 = vadd.f32 %v995_v11, %v785_v25 }
 0x178   :  { %v1349_v56 = vpop.f32.mrf.mxu0  ;;  %v786_v24 = vadd.f32 %v762_v34, %v3881_v17 }
 0x179   :  { %v1190_v1 = vadd.f32 %v1165_v58, %v1020_v21 }
 0x17b   :  { %v3951_v37 = vadd.f32 %v1347_v28, %v1190_v1 }
 0x17d   :  { %v1167_v61 = vpop.f32.mrf.mxu3 }
 0x17e   :  { %v997_v35 = vpop.f32.mrf.mxu2 }
 0x17f   :  { %v765_v51 = vpop.f32.mrf.mxu1  ;;  %v1021_v30 = vadd.f32 %v997_v35, %v786_v24 }
 0x180   :  { %v1352_v50 = vpop.f32.mrf.mxu0  ;;  %v787_v17 = vadd.f32 %v765_v51, %v3853_v39  ;;  %v4213_v39 = vpack.c.bf16 %v3703_v7, %v3696_v20 }
 0x181   :  { %v1191_v55 = vadd.f32 %v1167_v61, %v1021_v30  ;;  %v2103_v61 = vld [vmem:[%s4103_s5] sm:$0xff] }
 0x182   :  { %1529 = vmatmul.bf16.gmra.mxu1 %v4210_v49  ;;  %1869 = vmatmul.bf16.gmra.mxu3 %v3651_v52 }
 0x183   :  { %1693 = vmatmul.bf16.gmra.mxu2 %v4211_v15  ;;  %2041 = vmatmul.bf16.gmra.mxu0 %v3689_v19  ;;  %v3960_v22 = vadd.f32 %v1349_v56, %v1191_v55  ;;  %v2104_v15 = vld [vmem:[%s4103_s5 + $0x8] sm:$0xff] }
 0x185   :  { %v1170_v12 = vpop.f32.mrf.mxu3 }
 0x186   :  { %v1000_v63 = vpop.f32.mrf.mxu2 }
 0x187   :  { %v767_v40 = vpop.f32.mrf.mxu1  ;;  %v1022_v27 = vadd.f32 %v1000_v63, %v787_v17 }
 0x188   :  { %v1354_v31 = vpop.f32.mrf.mxu0  ;;  %v788_v53 = vadd.f32 %v767_v40, %v3859_v4 }
 0x189   :  { %v1192_v14 = vadd.f32 %v1170_v12, %v1022_v27 }
 0x18b   :  { %v3963_v46 = vadd.f32 %v1352_v50, %v1192_v14 }
 0x18d   :  { %v1172_v43 = vpop.f32.mrf.mxu3 }
 0x18e   :  { %v1002_v52 = vpop.f32.mrf.mxu2 }
 0x18f   :  { %v770_v41 = vpop.f32.mrf.mxu1  ;;  %v1023_v26 = vadd.f32 %v1002_v52, %v788_v53  ;;  %v2105_v53 = vld [vmem:[%s4103_s5 + $0x10] sm:$0xff] }
 0x190   :  { %v1357_v59 = vpop.f32.mrf.mxu0  ;;  %v789_v28 = vadd.f32 %v770_v41, %v3873_v5 }
 0x191   :  { %v1193_v19 = vadd.f32 %v1172_v43, %v1023_v26 }
 0x192   :  { %1534 = vmatmul.bf16.gmra.mxu1 %v4212_v36  ;;  %1874 = vmatmul.bf16.gmra.mxu3 %v4213_v39 }
 0x193   :  { %1698 = vmatmul.bf16.gmra.mxu2 %v4214_v48  ;;  %2046 = vmatmul.bf16.gmra.mxu0 %v1937_v18  ;;  %v3978_v4 = vadd.f32 %v1354_v31, %v1193_v19 }
 0x195   :  { %v1175_v62 = vpop.f32.mrf.mxu3 }
 0x196   :  { %v1005_v47 = vpop.f32.mrf.mxu2 }
 0x197   :  { %v772_v13 = vpop.f32.mrf.mxu1  ;;  %v1024_v23 = vadd.f32 %v1005_v47, %v789_v28 }
 0x198   :  { %v1359_v38 = vpop.f32.mrf.mxu0  ;;  %v790_v33 = vadd.f32 %v772_v13, %v3879_v8 }
 0x199   :  { %v1194_v60 = vadd.f32 %v1175_v62, %v1024_v23  ;;  %v2106_v62 = vld [vmem:[%s4103_s5 + $0x18] sm:$0xff] }
 0x19b   :  { %v3981_v20 = vadd.f32 %v1357_v59, %v1194_v60 }
 0x19d   :  { %v1177_v7 = vpop.f32.mrf.mxu3 }
 0x19e   :  { %v1007_v3 = vpop.f32.mrf.mxu2 }
 0x19f   :  { %v1500_v54 = vpop.f32.mrf.mxu1  ;;  %v1025_v58 = vadd.f32 %v1007_v3, %v790_v33  ;;  %v2107_v3 = vld [vmem:[%s4103_s5 + $0x20] sm:$0xff] }
 0x1a0   :  { %v2012_v57 = vpop.f32.mrf.mxu0  ;;  %v1540_v5 = vadd.f32 %v1500_v54, %v3889_v2 }
 0x1a1   :  { %v1195_v32 = vadd.f32 %v1177_v7, %v1025_v58 }
 0x1a3   :  { %v3984_v18 = vadd.f32 %v1359_v38, %v1195_v32 }
 0x1a5   :  { %v1840_v25 = vpop.f32.mrf.mxu3 }
 0x1a6   :  { %v1664_v11 = vpop.f32.mrf.mxu2 }
 0x1a7   :  { %v1502_v34 = vpop.f32.mrf.mxu1  ;;  %v1704_v21 = vadd.f32 %v1664_v11, %v1540_v5 }
 0x1a8   :  { %v2014_v56 = vpop.f32.mrf.mxu0  ;;  %v1541_v51 = vadd.f32 %v1502_v34, %v3897_v44 }
 0x1a9   :  { %v1880_v1 = vadd.f32 %v1840_v25, %v1704_v21  ;;  %v2108_v21 = vld [vmem:[%s4103_s5 + $0x28] sm:$0xff] }
 0x1ab   :  { %v2052_v8 = vadd.f32 %v2012_v57, %v1880_v1 }
 0x1ad   :  { %v1842_v24 = vpop.f32.mrf.mxu3  ;;  %v2119_v35 = vadd.f32 %v2103_v61, %v2052_v8 }
 0x1ae   :  { %v1666_v30 = vpop.f32.mrf.mxu2 }
 0x1af   :  { %v1505_v50 = vpop.f32.mrf.mxu1  ;;  %2135 = vst [vmem:[%s4104_s6] sm:$0xff] %v2119_v35  ;;  %v1705_v2 = vadd.f32 %v1666_v30, %v1541_v51 }
 0x1b0   :  { %v2017_v55 = vpop.f32.mrf.mxu0  ;;  %v1542_v40 = vadd.f32 %v1505_v50, %v3899_v6  ;;  %v2109_v50 = vld [vmem:[%s4103_s5 + $0x30] sm:$0xff] }
 0x1b1   :  { %v1881_v49 = vadd.f32 %v1842_v24, %v1705_v2 }
 0x1b3   :  { %v2053_v12 = vadd.f32 %v2014_v56, %v1881_v49 }
 0x1b5   :  { %v1845_v17 = vpop.f32.mrf.mxu3  ;;  %v2120_v63 = vadd.f32 %v2104_v15, %v2053_v12 }
 0x1b6   :  { %v1669_v27 = vpop.f32.mrf.mxu2 }
 0x1b7   :  { %v1507_v44 = vpop.f32.mrf.mxu1  ;;  %2136 = vst [vmem:[%s4104_s6 + $0x8] sm:$0xff] %v2120_v63  ;;  %v1706_v31 = vadd.f32 %v1669_v27, %v1542_v40  ;;  %v2110_v27 = vld [vmem:[%s4103_s5 + $0x38] sm:$0xff] }
 0x1b8   :  { %v2019_v14 = vpop.f32.mrf.mxu0  ;;  %v1543_v59 = vadd.f32 %v1507_v44, %v3908_v9 }
 0x1b9   :  { %v1882_v43 = vadd.f32 %v1845_v17, %v1706_v31 }
 0x1bb   :  { %v2054_v52 = vadd.f32 %v2017_v55, %v1882_v43 }
 0x1bd   :  { %v1847_v41 = vpop.f32.mrf.mxu3  ;;  %v2121_v26 = vadd.f32 %v2105_v53, %v2054_v52 }
 0x1be   :  { %v1671_v19 = vpop.f32.mrf.mxu2 }
 0x1bf   :  { %v1510_v6 = vpop.f32.mrf.mxu1  ;;  %2137 = vst [vmem:[%s4104_s6 + $0x10] sm:$0xff] %v2121_v26  ;;  %v1707_v36 = vadd.f32 %v1671_v19, %v1543_v59  ;;  %v2111_v59 = vld [vmem:[%s4103_s5 + $0x40] sm:$0xff] }
 0x1c0   :  { %v2022_v39 = vpop.f32.mrf.mxu0  ;;  %v1544_v23 = vadd.f32 %v1510_v6, %v3911_v16 }
 0x1c1   :  { %v1883_v48 = vadd.f32 %v1847_v41, %v1707_v36 }
 0x1c3   :  { %v2055_v28 = vadd.f32 %v2019_v14, %v1883_v48 }
 0x1c5   :  { %v1850_v47 = vpop.f32.mrf.mxu3  ;;  %v2122_v13 = vadd.f32 %v2106_v62, %v2055_v28 }
 0x1c6   :  { %v1674_v38 = vpop.f32.mrf.mxu2 }
 0x1c7   :  { %v1512_v9 = vpop.f32.mrf.mxu1  ;;  %2138 = vst [vmem:[%s4104_s6 + $0x18] sm:$0xff] %v2122_v13  ;;  %v1708_v60 = vadd.f32 %v1674_v38, %v1544_v23  ;;  %v2112_v13 = vld [vmem:[%s4103_s5 + $0x48] sm:$0xff] }
 0x1c8   :  { %v2024_v7 = vpop.f32.mrf.mxu0  ;;  %v1545_v32 = vadd.f32 %v1512_v9, %v3925_v29 }
 0x1c9   :  { %v1884_v33 = vadd.f32 %v1850_v47, %v1708_v60 }
 0x1cb   :  { %v2056_v54 = vadd.f32 %v2022_v39, %v1884_v33 }
 0x1cd   :  { %v1852_v58 = vpop.f32.mrf.mxu3  ;;  %v2123_v57 = vadd.f32 %v2107_v3, %v2056_v54  ;;  %v2113_v54 = vld [vmem:[%s4103_s5 + $0x50] sm:$0xff] }
 0x1ce   :  { %v1676_v25 = vpop.f32.mrf.mxu2 }
 0x1cf   :  { %v1515_v16 = vpop.f32.mrf.mxu1  ;;  %2139 = vst [vmem:[%s4104_s6 + $0x20] sm:$0xff] %v2123_v57  ;;  %v1709_v5 = vadd.f32 %v1676_v25, %v1545_v32 }
 0x1d0   :  { %v2027_v11 = vpop.f32.mrf.mxu0  ;;  %v1546_v8 = vadd.f32 %v1515_v16, %v3928_v42 }
 0x1d1   :  { %v1885_v34 = vadd.f32 %v1852_v58, %v1709_v5 }
 0x1d3   :  { %v2057_v56 = vadd.f32 %v2024_v7, %v1885_v34 }
 0x1d5   :  { %v1855_v1 = vpop.f32.mrf.mxu3  ;;  %v2124_v61 = vadd.f32 %v2108_v21, %v2057_v56  ;;  %v2114_v21 = vld [vmem:[%s4103_s5 + $0x58] sm:$0xff] }
 0x1d6   :  { %v1679_v24 = vpop.f32.mrf.mxu2 }
 0x1d7   :  { %v1517_v29 = vpop.f32.mrf.mxu1  ;;  %2140 = vst [vmem:[%s4104_s6 + $0x28] sm:$0xff] %v2124_v61  ;;  %v1710_v35 = vadd.f32 %v1679_v24, %v1546_v8 }
 0x1d8   :  { %v2029_v51 = vpop.f32.mrf.mxu0  ;;  %v1547_v15 = vadd.f32 %v1517_v29, %v3936_v10 }
 0x1d9   :  { %v1886_v30 = vadd.f32 %v1855_v1, %v1710_v35 }
 0x1db   :  { %v2058_v2 = vadd.f32 %v2027_v11, %v1886_v30  ;;  %v2115_v30 = vld [vmem:[%s4103_s5 + $0x60] sm:$0xff] }
 0x1dd   :  { %v1857_v55 = vpop.f32.mrf.mxu3  ;;  %v2125_v49 = vadd.f32 %v2109_v50, %v2058_v2 }
 0x1de   :  { %v1681_v12 = vpop.f32.mrf.mxu2 }
 0x1df   :  { %v1520_v42 = vpop.f32.mrf.mxu1  ;;  %2141 = vst [vmem:[%s4104_s6 + $0x30] sm:$0xff] %v2125_v49  ;;  %v1711_v17 = vadd.f32 %v1681_v12, %v1547_v15 }
 0x1e0   :  { %v2032_v63 = vpop.f32.mrf.mxu0  ;;  %v1548_v43 = vadd.f32 %v1520_v42, %v3939_v45 }
 0x1e1   :  { %v1887_v40 = vadd.f32 %v1857_v55, %v1711_v17 }
 0x1e3   :  { %v2059_v44 = vadd.f32 %v2029_v51, %v1887_v40 }
 0x1e5   :  { %v1860_v31 = vpop.f32.mrf.mxu3  ;;  %v2126_v14 = vadd.f32 %v2110_v27, %v2059_v44 }
 0x1e6   :  { %v1684_v53 = vpop.f32.mrf.mxu2 }
 0x1e7   :  { %v1522_v10 = vpop.f32.mrf.mxu1  ;;  %2142 = vst [vmem:[%s4104_s6 + $0x38] sm:$0xff] %v2126_v14  ;;  %v1712_v52 = vadd.f32 %v1684_v53, %v1548_v43 }
 0x1e8   :  { %v2034_v41 = vpop.f32.mrf.mxu0  ;;  %v1549_v39 = vadd.f32 %v1522_v10, %v3948_v0  ;;  %v2117_v10 = vld [vmem:[%s4103_s5 + $0x70] sm:$0xff] }
 0x1e9   :  { %v1888_v26 = vadd.f32 %v1860_v31, %v1712_v52 }
 0x1eb   :  { %v2060_v19 = vadd.f32 %v2032_v63, %v1888_v26  ;;  %v2116_v63 = vld [vmem:[%s4103_s5 + $0x68] sm:$0xff] }
 0x1ed   :  { %v1862_v6 = vpop.f32.mrf.mxu3  ;;  %v2127_v36 = vadd.f32 %v2111_v59, %v2060_v19 }
 0x1ee   :  { %v1686_v48 = vpop.f32.mrf.mxu2 }
 0x1ef   :  { %v1525_v45 = vpop.f32.mrf.mxu1  ;;  %2143 = vst [vmem:[%s4104_s6 + $0x40] sm:$0xff] %v2127_v36  ;;  %v1713_v62 = vadd.f32 %v1686_v48, %v1549_v39  ;;  %v2118_v48 = vld [vmem:[%s4103_s5 + $0x78] sm:$0xff] }
 0x1f0   :  { %v2037_v28 = vpop.f32.mrf.mxu0  ;;  %v1550_v60 = vadd.f32 %v1525_v45, %v3951_v37 }
 0x1f1   :  { %v1889_v47 = vadd.f32 %v1862_v6, %v1713_v62 }
 0x1f3   :  { %v2061_v23 = vadd.f32 %v2034_v41, %v1889_v47 }
 0x1f5   :  { %v1865_v38 = vpop.f32.mrf.mxu3  ;;  %v2128_v9 = vadd.f32 %v2112_v13, %v2061_v23 }
 0x1f6   :  { %v1689_v7 = vpop.f32.mrf.mxu2 }
 0x1f7   :  { %v1527_v0 = vpop.f32.mrf.mxu1  ;;  %2144 = vst [vmem:[%s4104_s6 + $0x48] sm:$0xff] %v2128_v9  ;;  %v1714_v33 = vadd.f32 %v1689_v7, %v1550_v60 }
 0x1f8   :  { %v2039_v58 = vpop.f32.mrf.mxu0  ;;  %v1551_v16 = vadd.f32 %v1527_v0, %v3960_v22 }
 0x1f9   :  { %v1890_v3 = vadd.f32 %v1865_v38, %v1714_v33 }
 0x1fb   :  { %v2062_v57 = vadd.f32 %v2037_v28, %v1890_v3 }
 0x1fd   :  { %v1867_v32 = vpop.f32.mrf.mxu3  ;;  %v2129_v25 = vadd.f32 %v2113_v54, %v2062_v57 }
 0x1fe   :  { %v1691_v5 = vpop.f32.mrf.mxu2 }
 0x1ff   :  { %v1530_v37 = vpop.f32.mrf.mxu1  ;;  %2145 = vst [vmem:[%s4104_s6 + $0x50] sm:$0xff] %v2129_v25  ;;  %v1715_v11 = vadd.f32 %v1691_v5, %v1551_v16 }
 0x200   :  { %v2042_v1 = vpop.f32.mrf.mxu0  ;;  %v1552_v24 = vadd.f32 %v1530_v37, %v3963_v46 }
 0x201   :  { %v1891_v34 = vadd.f32 %v1867_v32, %v1715_v11 }
 0x203   :  { %v2063_v56 = vadd.f32 %v2039_v58, %v1891_v34 }
 0x205   :  { %v1870_v61 = vpop.f32.mrf.mxu3  ;;  %v2130_v8 = vadd.f32 %v2114_v21, %v2063_v56 }
 0x206   :  { %v1694_v29 = vpop.f32.mrf.mxu2 }
 0x207   :  { %v1532_v22 = vpop.f32.mrf.mxu1  ;;  %2146 = vst [vmem:[%s4104_s6 + $0x58] sm:$0xff] %v2130_v8  ;;  %v1716_v35 = vadd.f32 %v1694_v29, %v1552_v24 }
 0x208   :  { %v1553_v49 = vadd.f32 %v1532_v22, %v3978_v4  ;;  %v2044_v15 = vpop.f32.mrf.mxu0 }
 0x209   :  { %v1892_v51 = vadd.f32 %v1870_v61, %v1716_v35 }
 0x20b   :  { %v2064_v50 = vadd.f32 %v2042_v1, %v1892_v51 }
 0x20d   :  { %v1872_v2 = vpop.f32.mrf.mxu3  ;;  %v2131_v55 = vadd.f32 %v2115_v30, %v2064_v50 }
 0x20e   :  { %v1696_v12 = vpop.f32.mrf.mxu2 }
 0x20f   :  { %2147 = vst [vmem:[%s4104_s6 + $0x60] sm:$0xff] %v2131_v55  ;;  %v1717_v46 = vadd.f32 %v1696_v12, %v1553_v49  ;;  %v1535_v42 = vpop.f32.mrf.mxu1 }
 0x210   :  { %v1554_v44 = vadd.f32 %v1535_v42, %v3981_v20  ;;  %v2047_v43 = vpop.f32.mrf.mxu0 }
 0x211   :  { %v1893_v17 = vadd.f32 %v1872_v2, %v1717_v46 }
 0x213   :  { %v2065_v40 = vadd.f32 %v2044_v15, %v1893_v17 }
 0x215   :  { %v2132_v27 = vadd.f32 %v2116_v63, %v2065_v40  ;;  %v1875_v14 = vpop.f32.mrf.mxu3 }
 0x216   :  { %v1699_v31 = vpop.f32.mrf.mxu2 }
 0x217   :  { %2148 = vst [vmem:[%s4104_s6 + $0x68] sm:$0xff] %v2132_v27  ;;  %v1718_v4 = vadd.f32 %v1699_v31, %v1554_v44  ;;  %v1537_v52 = vpop.f32.mrf.mxu1 }
 0x218   :  { %v1555_v59 = vadd.f32 %v1537_v52, %v3984_v18  ;;  %v2049_v39 = vpop.f32.mrf.mxu0 }
 0x219   :  { %v1894_v53 = vadd.f32 %v1875_v14, %v1718_v4 }
 0x21b   :  { %v2066_v41 = vadd.f32 %v2047_v43, %v1894_v53 }
 0x21d   :  { %v2133_v26 = vadd.f32 %v2117_v10, %v2066_v41  ;;  %v1877_v6 = vpop.f32.mrf.mxu3 }
 0x21e   :  { %v1701_v19 = vpop.f32.mrf.mxu2 }
 0x21f   :  { %2149 = vst [vmem:[%s4104_s6 + $0x70] sm:$0xff] %v2133_v26  ;;  %v1719_v20 = vadd.f32 %v1701_v19, %v1555_v59 }
 0x221   :  { %v1895_v36 = vadd.f32 %v1877_v6, %v1719_v20 }
 0x223   :  { %v2067_v45 = vadd.f32 %v2049_v39, %v1895_v36 }
 0x225   :  { %v2134_v62 = vadd.f32 %v2118_v48, %v2067_v45 }
 0x227   :  { %2150 = vst [vmem:[%s4104_s6 + $0x78] sm:$0xff] %v2134_v62 }

// kernel: a_call__.5
= control target key start
LH: loop header
LB: loop body
LE: loop exit
PB: predicated region body
PF: predicated region fallthrough
CT: control target
= control target key end

     0   :  { %v3349_v0 = vmov 0   ;;  %vm1244_vm0 = vcmask 1046528   ;;  %s5337_s3 = inlined_call_operand.vmem [shape: f32[4,9,9,1], index: 3, kind: input, shape index: {}]   ;;  %s5338_s1 = inlined_call_operand.vmem [shape: f32[1,128], index: 1, kind: input, shape index: {}]   ;;  %s5339_s2 = inlined_call_operand.vmem [shape: f32[1,128], index: 2, kind: input, shape index: {}]   ;;  %s5340_s4 = inlined_call_operand.vmem [shape: bf16[9,128,128], index: 4, kind: input, shape index: {}]   ;;  %s5341_s0 = inlined_call_operand.vmem [shape: f32[4,2,9,9,128], index: 0, kind: input, shape index: {}]   ;;  %s5342_s5 = inlined_call_operand.vmem [shape: f32[2,8,8,128], index: 5, kind: output, shape index: {0}]   ;;  %s5343_s6 = inlined_call_operand.vmem [shape: f32[2,1,128], index: 6, kind: output, shape index: {1}]   ;;  %s5344_s7 = inlined_call_operand.vmem [shape: f32[2,1,128], index: 7, kind: output, shape index: {2}]  }
   0x1   :  { %3344 = vset.pattern.permute.xlu2 %v3349_v0  ;;  %3343 = vset.pattern.permute.xlu1 %v3349_v0  ;;  %v203_v1 = vld [vmem:[%s5337_s3 + $0x40] sm:$0xff]  ;;  %v205_v4 = vld [vmem:[%s5337_s3 + $0x50] sm:$0xff]  ;;  %v196_v8 = vld [vmem:[%s5337_s3 + $0x8] sm:$0x1] }
   0x2   :  { %v199_v2 = vld [vmem:[%s5337_s3 + $0x20] sm:$0xff]  ;;  %3342 = vset.pattern.permute.xlu0 %v3349_v0  ;;  %255 = vperm.xlu1 %3343, %v203_v1   ;;  %v201_v5 = vld [vmem:[%s5337_s3 + $0x30] sm:$0xff]  ;;  %v198_v12 = vld [vmem:[%s5337_s3 + $0x18] sm:$0x1] }
   0x3   :  { %v195_v3 = vld [vmem:[%s5337_s3] sm:$0xff]  ;;  %235 = vperm.xlu2 %3344, %v199_v2   ;;  %v197_v6 = vld [vmem:[%s5337_s3 + $0x10] sm:$0xff]  ;;  %v200_v16 = vld [vmem:[%s5337_s3 + $0x28] sm:$0x1] }
   0x4   :  { %215 = vperm.xlu0 %3342, %v195_v3   ;;  %v209_v7 = vld [vmem:[%s5337_s3 + $0x70] sm:$0xff]  ;;  %v207_v9 = vld [vmem:[%s5337_s3 + $0x60] sm:$0xff]  ;;  %v202_v17 = vld [vmem:[%s5337_s3 + $0x38] sm:$0x1] }
   0x5   :  { %v2787_v10 = vld [vmem:[%s5337_s3 + $0x120] sm:$0xff]  ;;  %v2789_v11 = vld [vmem:[%s5337_s3 + $0x130] sm:$0xff]  ;;  %v206_v25 = vld [vmem:[%s5337_s3 + $0x58] sm:$0x1] }
   0x6   :  { %v2747_v13 = vld [vmem:[%s5337_s3 + $0xa0] sm:$0xff]  ;;  %v2819_v14 = vld [vmem:[%s5337_s3 + $0x1b0] sm:$0xff]  ;;  %v204_v27 = vld [vmem:[%s5337_s3 + $0x48] sm:$0x1] }
   0x7   :  { %v2746_v15 = vld [vmem:[%s5337_s3 + $0x90] sm:$0xff]  ;;  %v2820_v18 = vld [vmem:[%s5337_s3 + $0x1c0] sm:$0xff]  ;;  %v3252_v28 = vld [vmem:[%s5340_s4 + $0x38] sm:$0xff] }
   0x8   :  { %v2793_v19 = vld [vmem:[%s5337_s3 + $0x150] sm:$0xff]  ;;  %v2791_v21 = vld [vmem:[%s5337_s3 + $0x140] sm:$0xff]  ;;  %961 = vmatpush.bf16.msra.mxu0 %v3252_v28  ;;  %3317 = vmatpush.bf16.msra.mxu1 %v3252_v28  ;;  %v3250_v33 = vld [vmem:[%s5340_s4 + $0x28] sm:$0xff] }
   0x9   :  { %v2748_v20 = vld [vmem:[%s5337_s3 + $0xb0] sm:$0xff]  ;;  %v2822_v23 = vld [vmem:[%s5337_s3 + $0x1e0] sm:$0xff]  ;;  %3318 = vmatpush.bf16.msra.mxu2 %v3252_v28  ;;  %3319 = vmatpush.bf16.msra.mxu3 %v3252_v28  ;;  %v208_v36 = vld [vmem:[%s5337_s3 + $0x68] sm:$0x1] }
   0xa   :  { %265 = vperm.xlu1 %3343, %v205_v4   ;;  %v2821_v22 = vld [vmem:[%s5337_s3 + $0x1d0] sm:$0xff]  ;;  %v2749_v24 = vld [vmem:[%s5337_s3 + $0xc0] sm:$0xff]  ;;  %v3248_v38 = vld [vmem:[%s5340_s4 + $0x18] sm:$0xff] }
   0xb   :  { %245 = vperm.xlu2 %3344, %v201_v5   ;;  %v2795_v26 = vld [vmem:[%s5337_s3 + $0x160] sm:$0xff]  ;;  %v3251_v29 = vld [vmem:[%s5340_s4 + $0x30] sm:$0xff]  ;;  %v210_v42 = vld [vmem:[%s5337_s3 + $0x78] sm:$0x1] }
   0xc   :  { %225 = vperm.xlu0 %3342, %v197_v6   ;;  %v2750_v30 = vld [vmem:[%s5337_s3 + $0xd0] sm:$0xff]  ;;  %962 = vmatpush.bf16.msra.mxu0 %v3251_v29  ;;  %v2751_v31 = vld [vmem:[%s5337_s3 + $0xe0] sm:$0xff]  ;;  %v3246_v43 = vld [vmem:[%s5340_s4 + $0x8] sm:$0xff] }
   0xd   :  { %v2797_v32 = vld [vmem:[%s5337_s3 + $0x170] sm:$0xff]  ;;  %3320 = vmatpush.bf16.msra.mxu1 %v3251_v29  ;;  %3321 = vmatpush.bf16.msra.mxu2 %v3251_v29  ;;  %v3249_v34 = vld [vmem:[%s5340_s4 + $0x20] sm:$0xff]  ;;  %v3260_v52 = vld [vmem:[%s5340_s4 + $0x78] sm:$0xff] }
   0xe   :  { %3322 = vmatpush.bf16.msra.mxu3 %v3251_v29  ;;  %v2824_v35 = vld [vmem:[%s5337_s3 + $0x200] sm:$0xff]  ;;  %v2823_v37 = vld [vmem:[%s5337_s3 + $0x1f0] sm:$0xff]  ;;  %v3268_v53 = vld [vmem:[%s5340_s4 + $0xb8] sm:$0xff] }
   0xf   :  { %v3247_v39 = vld [vmem:[%s5340_s4 + $0x10] sm:$0xff]  ;;  %v2799_v40 = vld [vmem:[%s5337_s3 + $0x180] sm:$0xff]  ;;  %v3276_v54 = vld [vmem:[%s5340_s4 + $0xf8] sm:$0xff] }
  0x10   :  { %963 = vmatpush.bf16.msra.mxu0 %v3250_v33  ;;  %v2801_v41 = vld [vmem:[%s5337_s3 + $0x190] sm:$0xff]  ;;  %v3245_v45 = vld [vmem:[%s5340_s4] sm:$0xff]  ;;  %v64_v55 = vld [vmem:[%s5341_s0 + $0x98] sm:$0x1] }
  0x11   :  { %3323 = vmatpush.bf16.msra.mxu1 %v3250_v33  ;;  %3324 = vmatpush.bf16.msra.mxu2 %v3250_v33  ;;  %v2753_v46 = vld [vmem:[%s5337_s3 + $0x100] sm:$0xff]  ;;  %v2825_v47 = vld [vmem:[%s5337_s3 + $0x210] sm:$0xff]  ;;  %v3284_v56 = vld [vmem:[%s5340_s4 + $0x138] sm:$0xff] }
  0x12   :  { %285 = vperm.xlu1 %3343, %v209_v7   ;;  %3325 = vmatpush.bf16.msra.mxu3 %v3250_v33  ;;  %v2752_v48 = vld [vmem:[%s5337_s3 + $0xf0] sm:$0xff]  ;;  %v49_v49 = vld [vmem:[%s5341_s0 + $0x20] sm:$0xff]  ;;  %v2788_v63 = vld [vmem:[%s5337_s3 + $0x128] sm:$0x1] }
  0x13   :  { %220 = vperm.xlu2 %3344, %v196_v8   ;;  %v67_v50 = vld [vmem:[%s5341_s0 + $0xb0] sm:$0xff]  ;;  %v3542_v51 = vld [vmem:[%s5338_s1] ss:$0 sm:$0xff]  ;;  %v46_v0 = vld [vmem:[%s5341_s0 + $0x8] sm:$0x1] }
  0x14   :  { %275 = vperm.xlu0 %3342, %v207_v9   ;;  %964 = vmatpush.bf16.msra.mxu0 %v3249_v34  ;;  %v3562_v57 = vld [vmem:[%s5339_s2] ss:$0 sm:$0xff]  ;;  %v51_v58 = vld [vmem:[%s5341_s0 + $0x30] sm:$0xff]  ;;  %v88_v60 = vmul.f32 %v3542_v51, %v49_v49  ;;  %v106_v61 = vmul.f32 %v3542_v51, %v67_v50  ;;  %v2790_v3 = vld [vmem:[%s5337_s3 + $0x138] sm:$0x1]  ;;  %v103_v5 = vmul.f32 %v3542_v51, %v64_v55 }
  0x15   :  { %3326 = vmatpush.bf16.msra.mxu1 %v3249_v34  ;;  %3327 = vmatpush.bf16.msra.mxu2 %v3249_v34  ;;  %v69_v59 = vld [vmem:[%s5341_s0 + $0xc0] sm:$0xff]  ;;  %v63_v2 = vld [vmem:[%s5341_s0 + $0x90] sm:$0xff]  ;;  %v90_v9 = vmul.f32 %v3542_v51, %v51_v58  ;;  %v2796_v58 = vld [vmem:[%s5337_s3 + $0x168] sm:$0x1] }
  0x16   :  { %3328 = vmatpush.bf16.msra.mxu3 %v3249_v34  ;;  %v45_v1 = vld [vmem:[%s5341_s0] sm:$0xff]  ;;  %v3259_v6 = vld [vmem:[%s5340_s4 + $0x70] sm:$0xff] }
  0x17   :  { %v2826_v4 = vld [vmem:[%s5337_s3 + $0x220] sm:$0xff]  ;;  %v3267_v7 = vld [vmem:[%s5340_s4 + $0xb0] sm:$0xff]  ;;  %v3646_v28 = vadd.f32 %v3562_v57, %v90_v9 }
  0x18   :  { %965 = vmatpush.bf16.msra.mxu0 %v3248_v38  ;;  %v3275_v8 = vld [vmem:[%s5340_s4 + $0xf0] sm:$0xff]  ;;  %v73_v33 = vld [vmem:[%s5341_s0 + $0xe0] sm:$0xff] }
  0x19   :  { %3329 = vmatpush.bf16.msra.mxu1 %v3248_v38  ;;  %3330 = vmatpush.bf16.msra.mxu2 %v3248_v38  ;;  %v165_v50 = vmax.f32 %v3646_v28, 0.0  ;;  %v3281_v55 = vld [vmem:[%s5340_s4 + $0x120] sm:$0xff] }
  0x1a   :  { %633 = vperm.xlu1 %3343, %v2787_v10   ;;  %3331 = vmatpush.bf16.msra.mxu3 %v3248_v38  ;;  %v53_v10 = vld [vmem:[%s5341_s0 + $0x40] sm:$0xff] }
  0x1b   :  { %643 = vperm.xlu2 %3344, %v2789_v11   ;;  %v71_v11 = vld [vmem:[%s5341_s0 + $0xd0] sm:$0xff]  ;;  %v2803_v38 = vld [vmem:[%s5341_s0 + $0x360] sm:$0xff] }
  0x1c   :  { %230 = vperm.xlu0 %3342, %v198_v12   ;;  %966 = vmatpush.bf16.msra.mxu0 %v3247_v39  ;;  %v3283_v12 = vld [vmem:[%s5340_s4 + $0x130] sm:$0xff]  ;;  %v110_v29 = vmul.f32 %v3542_v51, %v71_v11  ;;  %v3264_v11 = vld [vmem:[%s5340_s4 + $0x98] sm:$0xff] }
  0x1d   :  { %3332 = vmatpush.bf16.msra.mxu1 %v3247_v39  ;;  %3333 = vmatpush.bf16.msra.mxu2 %v3247_v39 }
  0x1e   :  { %3334 = vmatpush.bf16.msra.mxu3 %v3247_v39  ;;  %v47_v39 = vld [vmem:[%s5341_s0 + $0x10] sm:$0xff] }
  0x20   :  { %967 = vmatpush.bf16.msra.mxu0 %v3246_v43 }
  0x21   :  { %3335 = vmatpush.bf16.msra.mxu1 %v3246_v43  ;;  %3336 = vmatpush.bf16.msra.mxu2 %v3246_v43 }
  0x22   :  { %429 = vperm.xlu1 %3343, %v2747_v13   ;;  %3337 = vmatpush.bf16.msra.mxu3 %v3246_v43  ;;  %v108_v13 = vmul.f32 %v3542_v51, %v69_v59  ;;  %v2792_v59 = vld [vmem:[%s5337_s3 + $0x148] sm:$0x1] }
  0x23   :  { %819 = vperm.xlu2 %3344, %v2819_v14   ;;  %v2757_v14 = vld [vmem:[%s5341_s0 + $0x250] sm:$0xff] }
  0x24   :  { %424 = vperm.xlu0 %3342, %v2746_v15   ;;  %968 = vmatpush.bf16.msra.mxu0 %v3245_v45  ;;  %v3258_v15 = vld [vmem:[%s5340_s4 + $0x68] sm:$0xff] }
  0x25   :  { %3338 = vmatpush.bf16.msra.mxu1 %v3245_v45  ;;  %3339 = vmatpush.bf16.msra.mxu2 %v3245_v45 }
  0x26   :  { %3340 = vmatpush.bf16.msra.mxu3 %v3245_v45 }
  0x28   :  { %1738 = vmatpush.bf16.msrb.mxu0 %v3284_v56 }
  0x29   :  { %1131 = vmatpush.bf16.msrb.mxu1 %v3260_v52  ;;  %1398 = vmatpush.bf16.msrb.mxu2 %v3268_v53  ;;  %v2794_v52 = vld [vmem:[%s5337_s3 + $0x158] sm:$0x1]  ;;  %v3697_v53 = vadd.f32 %v3562_v57, %v110_v29 }
  0x2a   :  { %240 = vperm.xlu1 %3343, %v200_v16   ;;  %1568 = vmatpush.bf16.msrb.mxu3 %v3276_v54  ;;  %v3266_v16 = vld [vmem:[%s5340_s4 + $0xa8] sm:$0xff] }
  0x2b   :  { %250 = vperm.xlu2 %3344, %v202_v17   ;;  %v3623_v17 = vadd.f32 %v3562_v57, %v88_v60 }
  0x2c   :  { %824 = vperm.xlu0 %3342, %v2820_v18   ;;  %v3626_v18 = vadd.f32 %v3562_v57, %v106_v61  ;;  %1739 = vmatpush.bf16.msrb.mxu0 %v3283_v12  ;;  %v112_v61 = vmul.f32 %v3542_v51, %v73_v33  ;;  %v3272_v12 = vld [vmem:[%s5340_s4 + $0xd8] sm:$0xff]  ;;  %v57_v33 = vld [vmem:[%s5341_s0 + $0x60] sm:$0xff] }
  0x2d   :  { %1132 = vmatpush.bf16.msrb.mxu1 %v3259_v6  ;;  %1399 = vmatpush.bf16.msrb.mxu2 %v3267_v7  ;;  %v163_v34 = vmax.f32 %v3623_v17, 0.0  ;;  %v3262_v17 = vld [vmem:[%s5340_s4 + $0x88] sm:$0xff] }
  0x2e   :  { %1569 = vmatpush.bf16.msrb.mxu3 %v3275_v8  ;;  %v181_v49 = vmax.f32 %v3626_v18, 0.0 }
  0x31   :  { %1133 = vmatpush.bf16.msrb.mxu1 %v3258_v15  ;;  %1400 = vmatpush.bf16.msrb.mxu2 %v3266_v16  ;;  %v3280_v16 = vld [vmem:[%s5340_s4 + $0x118] sm:$0xff] }
  0x32   :  { %663 = vperm.xlu1 %3343, %v2793_v19   ;;  %v85_v19 = vmul.f32 %v3542_v51, %v46_v0  ;;  %v760_v0 = vmul.f32 %v3542_v51, %v2803_v38 }
  0x33   :  { %434 = vperm.xlu2 %3344, %v2748_v20   ;;  %v2773_v20 = vld [vmem:[%s5341_s0 + $0x2e0] sm:$0xff] }
  0x34   :  { %653 = vperm.xlu0 %3342, %v2791_v21   ;;  %v3274_v21 = vld [vmem:[%s5340_s4 + $0xe8] sm:$0xff] }
  0x35   :  { %1570 = vmatpush.bf16.msrb.mxu3 %v3274_v21  ;;  %v3754_v21 = vadd.f32 %v3562_v57, %v112_v61 }
  0x3a   :  { %829 = vperm.xlu1 %3343, %v2821_v22   ;;  %v3282_v22 = vld [vmem:[%s5340_s4 + $0x128] sm:$0xff] }
  0x3b   :  { %834 = vperm.xlu2 %3344, %v2822_v23   ;;  %v142_v23 = vadd.f32 %v3562_v57, %v103_v5  ;;  %1740 = vmatpush.bf16.msrb.mxu0 %v3282_v22  ;;  %v59_v5 = vld [vmem:[%s5341_s0 + $0x70] sm:$0xff]  ;;  %v3757_v22 = vadd.f32 %v3562_v57, %v760_v0  ;;  %v2798_v0 = vld [vmem:[%s5337_s3 + $0x178] sm:$0x1] }
  0x3c   :  { %439 = vperm.xlu0 %3342, %v2749_v24   ;;  %v92_v24 = vmul.f32 %v3542_v51, %v53_v10  ;;  %v3256_v10 = vld [vmem:[%s5340_s4 + $0x58] sm:$0xff] }
  0x3f   :  { %1741 = vmatpush.bf16.msrb.mxu0 %v3281_v55 }
  0x42   :  { %270 = vperm.xlu1 %3343, %v206_v25   ;;  %v84_v25 = vmul.f32 %v3542_v51, %v45_v1 }
  0x43   :  { %673 = vperm.xlu2 %3344, %v2795_v26   ;;  %v102_v26 = vmul.f32 %v3542_v51, %v63_v2  ;;  %1742 = vmatpush.bf16.msrb.mxu0 %v3280_v16 }
  0x44   :  { %260 = vperm.xlu0 %3342, %v204_v27   ;;  %v55_v27 = vld [vmem:[%s5341_s0 + $0x50] sm:$0xff]  ;;  %v3677_v43 = vadd.f32 %v3562_v57, %v84_v25  ;;  %v70_v25 = vld [vmem:[%s5341_s0 + $0xc8] sm:$0x1] }
  0x45   :  { %v3680_v45 = vadd.f32 %v3562_v57, %v102_v26 }
  0x46   :  { %v159_v8 = vmax.f32 %v3677_v43, 0.0 }
  0x47   :  { %v177_v9 = vmax.f32 %v3680_v45, 0.0  ;;  %v3263_v45 = vld [vmem:[%s5340_s4 + $0x90] sm:$0xff] }
  0x4a   :  { %444 = vperm.xlu1 %3343, %v2750_v30   ;;  %v520_v30 = vmul.f32 %v3542_v51, %v2757_v14 }
  0x4b   :  { %449 = vperm.xlu2 %3344, %v2751_v31   ;;  %v3651_v31 = vadd.f32 %v3562_v57, %v108_v13  ;;  %v185_v13 = vmax.f32 %v3697_v53, 0.0 }
  0x4c   :  { %683 = vperm.xlu0 %3342, %v2797_v32   ;;  %v536_v32 = vmul.f32 %v3542_v51, %v2773_v20  ;;  %v3700_v54 = vadd.f32 %v3562_v57, %v520_v30 }
  0x4d   :  { %v183_v56 = vmax.f32 %v3651_v31, 0.0  ;;  %v2738_v31 = vld [vmem:[%s5341_s0 + $0x1c0] sm:$0xff] }
  0x4e   :  { %v3713_v60 = vadd.f32 %v3562_v57, %v536_v32  ;;  %v584_v14 = vmax.f32 %v3700_v54, 0.0  ;;  %v98_v32 = vmul.f32 %v3542_v51, %v59_v5  ;;  %v3254_v5 = vld [vmem:[%s5340_s4 + $0x48] sm:$0xff] }
  0x50   :  { %v600_v20 = vmax.f32 %v3713_v60, 0.0  ;;  %v50_v60 = vld [vmem:[%s5341_s0 + $0x28] sm:$0x1] }
  0x52   :  { %844 = vperm.xlu1 %3343, %v2824_v35  }
  0x53   :  { %280 = vperm.xlu2 %3344, %v208_v36   ;;  %v3661_v36 = vadd.f32 %v3562_v57, %v85_v19 }
  0x54   :  { %839 = vperm.xlu0 %3342, %v2823_v37   ;;  %v94_v37 = vmul.f32 %v3542_v51, %v55_v27 }
  0x55   :  { %v160_v1 = vmax.f32 %v3661_v36, 0.0 }
  0x56   :  { %v3722_v2 = vadd.f32 %v3562_v57, %v94_v37  ;;  %v75_v37 = vld [vmem:[%s5341_s0 + $0xf0] sm:$0xff] }
  0x58   :  { %v169_v28 = vmax.f32 %v3722_v2, 0.0 }
  0x5a   :  { %693 = vperm.xlu1 %3343, %v2799_v40   ;;  %v65_v40 = vld [vmem:[%s5341_s0 + $0xa0] sm:$0xff] }
  0x5b   :  { %703 = vperm.xlu2 %3344, %v2801_v41   ;;  %v178_v41 = vmax.f32 %v142_v23, 0.0  ;;  %v77_v23 = vld [vmem:[%s5341_s0 + $0x100] sm:$0xff] }
  0x5c   :  { %290 = vperm.xlu0 %3342, %v210_v42   ;;  %v3674_v42 = vadd.f32 %v3562_v57, %v92_v24  ;;  %v52_v24 = vld [vmem:[%s5341_s0 + $0x38] sm:$0x1] }
  0x5d   :  { %v3519_v44 = vpop.permute.xlu2 %235  ;;  %v91_v55 = vmul.f32 %v3542_v51, %v52_v24 }
  0x5e   :  { %v167_v7 = vmax.f32 %v3674_v42, 0.0  ;;  %v3255_v42 = vld [vmem:[%s5340_s4 + $0x50] sm:$0xff]  ;;  %v3823_v61 = vmul.f32 %v3519_v44, %v163_v34  ;;  %v3840_v34 = vmul.f32 %v3519_v44, %v181_v49  ;;  %v3278_v44 = vld [vmem:[%s5340_s4 + $0x108] sm:$0xff]  ;;  %v3856_v49 = vadd.f32 %v3562_v57, %v98_v32 }
  0x60   :  { %5403 = vst [vmem:[#allocation5_spill] sm:$0xff] %v3823_v61 }
  0x61   :  { %5404 = vst [vmem:[#allocation6_spill] sm:$0xff] %v3840_v34 }
  0x62   :  { %459 = vperm.xlu1 %3343, %v2753_v46   ;;  %v3257_v46 = vld [vmem:[%s5340_s4 + $0x60] sm:$0xff] }
  0x63   :  { %849 = vperm.xlu2 %3344, %v2825_v47   ;;  %v3265_v47 = vld [vmem:[%s5340_s4 + $0xa0] sm:$0xff]  ;;  %1134 = vmatpush.bf16.msrb.mxu1 %v3257_v46  ;;  %v3271_v46 = vld [vmem:[%s5340_s4 + $0xd0] sm:$0xff] }
  0x64   :  { %454 = vperm.xlu0 %3342, %v2752_v48   ;;  %v3273_v48 = vld [vmem:[%s5340_s4 + $0xe0] sm:$0xff]  ;;  %1401 = vmatpush.bf16.msrb.mxu2 %v3265_v47 }
  0x65   :  { %v3572_v62 = vpop.permute.xlu2 %245  ;;  %1571 = vmatpush.bf16.msrb.mxu3 %v3273_v48  ;;  %v211_v47 = vld [vmem:[%s5337_s3 + $0x80] sm:$0xff]  ;;  %v2800_v48 = vld [vmem:[%s5337_s3 + $0x188] sm:$0x1] }
  0x66   :  { %v3787_v38 = vmul.f32 %v3572_v62, %v165_v50 }
  0x67   :  { %1135 = vmatpush.bf16.msrb.mxu1 %v3256_v10  ;;  %v2755_v10 = vld [vmem:[%s5341_s0 + $0x240] sm:$0xff] }
  0x68   :  { %1402 = vmatpush.bf16.msrb.mxu2 %v3264_v11  ;;  %5401 = vst [vmem:[#allocation3_spill] sm:$0xff] %v3787_v38  ;;  %v3270_v11 = vld [vmem:[%s5340_s4 + $0xc8] sm:$0xff]  ;;  %v890_v36 = vpack.c.bf16 %v3787_v38, %v3823_v61 }
  0x69   :  { %1572 = vmatpush.bf16.msrb.mxu3 %v3272_v12 }
  0x6a   :  { %638 = vperm.xlu1 %3343, %v2788_v63   ;;  %v2811_v63 = vld [vmem:[%s5341_s0 + $0x3f0] sm:$0xff] }
  0x6b   :  { %648 = vperm.xlu2 %3344, %v2790_v3   ;;  %v86_v3 = vmul.f32 %v3542_v51, %v47_v39  ;;  %v768_v15 = vmul.f32 %v3542_v51, %v2811_v63  ;;  %1136 = vmatpush.bf16.msrb.mxu1 %v3255_v42  ;;  %v2739_v42 = vld [vmem:[%s5341_s0 + $0x1d0] sm:$0xff] }
  0x6c   :  { %854 = vperm.xlu0 %3342, %v2826_v4   ;;  %v104_v4 = vmul.f32 %v3542_v51, %v65_v40  ;;  %1403 = vmatpush.bf16.msrb.mxu2 %v3263_v45 }
  0x6d   :  { %v3658_v35 = vpop.permute.xlu2 %220  ;;  %v3774_v29 = vadd.f32 %v3562_v57, %v86_v3  ;;  %v3812_v50 = vadd.f32 %v3562_v57, %v768_v15  ;;  %v96_v3 = vmul.f32 %v3542_v51, %v57_v33  ;;  %1573 = vmatpush.bf16.msrb.mxu3 %v3271_v46 }
  0x6e   :  { %v3730_v6 = vmul.f32 %v3658_v35, %v178_v41  ;;  %v3777_v30 = vadd.f32 %v3562_v57, %v104_v4  ;;  %v114_v4 = vmul.f32 %v3542_v51, %v75_v37  ;;  %v518_v37 = vmul.f32 %v3542_v51, %v2755_v10 }
  0x6f   :  { %v800_v16 = vmax.f32 %v3812_v50, 0.0  ;;  %v3878_v32 = vadd.f32 %v3562_v57, %v96_v3  ;;  %1137 = vmatpush.bf16.msrb.mxu1 %v3254_v5  ;;  %v66_v3 = vld [vmem:[%s5341_s0 + $0xa8] sm:$0x1] }
  0x70   :  { %v1270_v39 = vrot.slane %v3730_v6, 1  ;;  %v187_v6 = vmax.f32 %v3754_v21, 0.0  ;;  %v179_v18 = vmax.f32 %v3777_v30, 0.0  ;;  %v3881_v33 = vadd.f32 %v3562_v57, %v114_v4  ;;  %1404 = vmatpush.bf16.msrb.mxu2 %v3262_v17  ;;  %v212_v17 = vld [vmem:[%s5337_s3 + $0x88] sm:$0x1] }
  0x71   :  { %1574 = vmatpush.bf16.msrb.mxu3 %v3270_v11  ;;  %v3269_v11 = vld [vmem:[%s5340_s4 + $0xc0] sm:$0xff] }
  0x72   :  { %668 = vperm.xlu1 %3343, %v2794_v52   ;;  %v116_v52 = vmul.f32 %v3542_v51, %v77_v23  ;;  %v3868_v23 = vadd.f32 %v3562_v57, %v91_v55 }
  0x73   :  { %678 = vperm.xlu2 %3344, %v2796_v58   ;;  %v109_v58 = vmul.f32 %v3542_v51, %v70_v25  ;;  %v2771_v25 = vld [vmem:[%s5341_s0 + $0x2d0] sm:$0xff] }
  0x74   :  { %658 = vperm.xlu0 %3342, %v2792_v59   ;;  %v3750_v19 = vpop.permute.xlu1 %255  ;;  %v3279_v59 = vld [vmem:[%s5340_s4 + $0x110] sm:$0xff]  ;;  %v3865_v21 = vadd.f32 %v3562_v57, %v116_v52 }
  0x75   :  { %v3768_v26 = vpop.permute.xlu2 %643  ;;  %v3791_v40 = vmul.f32 %v3750_v19, %v167_v7  ;;  %v792_v7 = vmax.f32 %v3757_v22, 0.0  ;;  %1743 = vmatpush.bf16.msrb.mxu0 %v3279_v59  ;;  %v3871_v24 = vadd.f32 %v3562_v57, %v109_v58  ;;  %v3894_v46 = vmul.f32 %v3750_v19, %v185_v13  ;;  %v48_v58 = vld [vmem:[%s5341_s0 + $0x18] sm:$0x1]  ;;  %v3261_v59 = vld [vmem:[%s5340_s4 + $0x80] sm:$0xff]  ;;  %1575 = vmatpush.bf16.msrb.mxu3 %v3269_v11 }
  0x76   :  { %v3770_v27 = vpop.permute.xlu0 %215  ;;  %v534_v19 = vmul.f32 %v3542_v51, %v2771_v25  ;;  %v87_v10 = vmul.f32 %v3542_v51, %v48_v58  ;;  %1405 = vmatpush.bf16.msrb.mxu2 %v3261_v59  ;;  %v191_v25 = vmax.f32 %v3865_v21, 0.0  ;;  %v3971_v21 = vadd.f32 %v3562_v57, %v518_v37  ;;  %v2814_v58 = vld [vmem:[%s5341_s0 + $0x420] sm:$0xff] }
  0x77   :  { %5402 = vst [vmem:[#allocation4_spill] sm:$0xff] %v3791_v40  ;;  %v3794_v41 = vmul.f32 %v3770_v27, %v177_v9  ;;  %v161_v9 = vmax.f32 %v3774_v29, 0.0  ;;  %v3910_v53 = vmul.f32 %v3770_v27, %v159_v8  ;;  %v2754_v27 = vld [vmem:[%s5337_s3 + $0x110] sm:$0xff]  ;;  %v4052_v45 = vmul.f32 %v3768_v26, %v584_v14 }
  0x78   :  { %5406 = vst [vmem:[#allocation8_spill] sm:$0xff] %v3894_v46 }
  0x79   :  { %v1269_v63 = vrot.slane %v3794_v41, 1  ;;  %1744 = vmatpush.bf16.msrb.mxu0 %v3278_v44  ;;  %v3953_v44 = vmul.f32 %v3572_v62, %v183_v56  ;;  %v3277_v62 = vld [vmem:[%s5340_s4 + $0x100] sm:$0xff]  ;;  %v184_v56 = vmax.f32 %v3871_v24, 0.0  ;;  %v189_v24 = vmax.f32 %v3881_v33, 0.0 }
  0x7a   :  { %295 = vperm.xlu1 %3343, %v211_v47  }
  0x7b   :  { %v3859_v12 = vsel %vm1244_vm0, %v1269_v63, %v1270_v39  ;;  %698 = vperm.xlu2 %3344, %v2800_v48   ;;  %v2730_v39 = vld [vmem:[%s5341_s0 + $0x140] sm:$0xff]  ;;  %5411 = vst [vmem:[#allocation13_spill] sm:$0xff] %v3953_v44 }
  0x7c   :  { %5405 = vst [vmem:[#allocation7_spill] sm:$0xff] %v3859_v12  ;;  %688 = vperm.xlu0 %3342, %v2798_v0   ;;  %v266_v30 = vpop.permute.xlu1 %265  ;;  %v360_v63 = vmul.f32 %v3542_v51, %v2730_v39  ;;  %v369_v0 = vmul.f32 %v3542_v51, %v2739_v42  ;;  %v2729_v39 = vld [vmem:[%s5341_s0 + $0x130] sm:$0xff]  ;;  %v105_v42 = vmul.f32 %v3542_v51, %v66_v3 }
  0x7d   :  { %v3898_v47 = vmul.f32 %v266_v30, %v169_v28  ;;  %v3900_v48 = vmul.f32 %v266_v30, %v187_v6  ;;  %v3902_v52 = vpop.permute.xlu2 %819  ;;  %v3253_v28 = vld [vmem:[%s5340_s4 + $0x40] sm:$0xff]  ;;  %v2802_v6 = vld [vmem:[%s5337_s3 + $0x198] sm:$0x1]  ;;  %v3998_v3 = vadd.f32 %v3562_v57, %v87_v10  ;;  %v359_v33 = vmul.f32 %v3542_v51, %v2729_v39  ;;  %1745 = vmatpush.bf16.msrb.mxu0 %v3277_v62 }
  0x7e   :  { %v226_v55 = vpop.permute.xlu0 %225  ;;  %1138 = vmatpush.bf16.msrb.mxu1 %v3253_v28  ;;  %v2728_v28 = vld [vmem:[%s5341_s0 + $0x120] sm:$0xff]  ;;  %v3988_v37 = vadd.f32 %v3562_v57, %v360_v63  ;;  %v3991_v59 = vadd.f32 %v3562_v57, %v369_v0  ;;  %v4005_v63 = vmul.f32 %v3658_v35, %v160_v1  ;;  %v144_v39 = vadd.f32 %v3562_v57, %v105_v42 }
  0x7f   :  { %5407 = vst [vmem:[#allocation9_spill] sm:$0xff] %v3898_v47  ;;  %v3912_v13 = vmul.f32 %v226_v55, %v161_v9  ;;  %v3914_v2 = vmul.f32 %v226_v55, %v179_v18  ;;  %v891_v43 = vpack.c.bf16 %v3898_v47, %v3791_v40  ;;  %v895_v8 = vpack.c.bf16 %v3900_v48, %v3894_v46  ;;  %v2806_v55 = vld [vmem:[%s5341_s0 + $0x390] sm:$0xff] }
  0x80   :  { %5408 = vst [vmem:[#allocation10_spill] sm:$0xff] %v3900_v48  ;;  %v173_v9 = vmax.f32 %v3856_v49, 0.0  ;;  %v358_v10 = vmul.f32 %v3542_v51, %v2728_v28  ;;  %v4025_v42 = vadd.f32 %v3562_v57, %v359_v33  ;;  %v1246_v15 = vrot.slane %v4005_v63, 1 }
  0x81   :  { %5409 = vst [vmem:[#allocation11_spill] sm:$0xff] %v3912_v13  ;;  %v889_v5 = vpack.c.bf16 %v3912_v13, %v3910_v53  ;;  %979 = vmatmul.bf16.vlgmr.msra.gmra.mxu1 %v891_v43  ;;  %v893_v18 = vpack.c.bf16 %v3914_v2, %v3794_v41  ;;  %999 = vmatmul.bf16.vlgmr.msra.gmra.mxu3 %v895_v8  ;;  %v171_v41 = vmax.f32 %v3878_v32, 0.0  ;;  %v2737_v43 = vld [vmem:[%s5341_s0 + $0x1b0] sm:$0xff]  ;;  %v1272_v1 = vrot.slane %v3914_v2, 1 }
  0x82   :  { %5410 = vst [vmem:[#allocation12_spill] sm:$0xff] %v3914_v2  ;;  %464 = vperm.xlu1 %3343, %v2754_v27   ;;  %v3985_v32 = vadd.f32 %v3562_v57, %v534_v19  ;;  %v368_v19 = vmul.f32 %v3542_v51, %v2738_v31  ;;  %v367_v35 = vmul.f32 %v3542_v51, %v2737_v43  ;;  %v396_v31 = vmax.f32 %v3988_v37, 0.0  ;;  %v3300_v43 = vld [vmem:[%s5340_s4 + $0x1b8] sm:$0xff] }
  0x83   :  { %969 = vmatmul.bf16.vlgmr.msra.gmra.mxu0 %v889_v5  ;;  %989 = vmatmul.bf16.vlgmr.msra.gmra.mxu2 %v893_v18  ;;  %v1278_v18 = vrot.slane %v3953_v44, 1  ;;  %v4044_v33 = vadd.f32 %v3562_v57, %v358_v10  ;;  %v4057_v63 = vmul.f32 %v3768_v26, %v600_v20  ;;  %v395_v49 = vmax.f32 %v4025_v42, 0.0  ;;  %v2763_v42 = vld [vmem:[%s5341_s0 + $0x280] sm:$0xff] }
  0x84   :  { %300 = vperm.xlu2 %3344, %v212_v17   ;;  %708 = vperm.xlu0 %3342, %v2802_v6   ;;  %v286_v27 = vpop.permute.xlu1 %285  ;;  %v763_v17 = vmul.f32 %v3542_v51, %v2806_v55  ;;  %v771_v6 = vmul.f32 %v3542_v51, %v2814_v58  ;;  %v598_v11 = vmax.f32 %v3985_v32, 0.0  ;;  %v894_v55 = vpack.c.bf16 %v3953_v44, %v3840_v34  ;;  %v3308_v32 = vld [vmem:[%s5340_s4 + $0x1f8] sm:$0xff] }
  0x85   :  { %v4007_v0 = vpop.permute.xlu2 %250  ;;  %v4028_v28 = vadd.f32 %v3562_v57, %v368_v19  ;;  %v3292_v19 = vld [vmem:[%s5340_s4 + $0x178] sm:$0xff]  ;;  %2174 = vmatpush.bf16.msra.mxu2 %v3300_v43  ;;  %2344 = vmatpush.bf16.msra.mxu3 %v3308_v32  ;;  %v4064_v10 = vmul.f32 %v286_v27, %v173_v9  ;;  %v4066_v29 = vmul.f32 %v286_v27, %v191_v25 }
  0x86   :  { %v276_v5 = vpop.permute.xlu0 %275  ;;  %v4038_v4 = vadd.f32 %v3562_v57, %v763_v17  ;;  %v4041_v8 = vadd.f32 %v3562_v57, %v771_v6  ;;  %v180_v17 = vmax.f32 %v144_v39, 0.0  ;;  %v4060_v6 = vadd.f32 %v3562_v57, %v367_v35  ;;  %2004 = vmatpush.bf16.msra.mxu1 %v3292_v19  ;;  %v68_v25 = vld [vmem:[%s5341_s0 + $0xb8] sm:$0x1] }
  0x87   :  { %5412 = vst [vmem:[#allocation14_spill] sm:$0xff] %v4064_v10  ;;  %v4068_v54 = vmul.f32 %v276_v5, %v171_v41  ;;  %v4070_v14 = vmul.f32 %v276_v5, %v189_v24  ;;  %v328_v26 = vmul.f32 %v4007_v0, %v184_v56  ;;  %v404_v9 = vmax.f32 %v4028_v28, 0.0 }
  0x88   :  { %5413 = vst [vmem:[#allocation15_spill] sm:$0xff] %v4066_v29  ;;  %v1245_v24 = vrot.slane %v3910_v53, 1  ;;  %v89_v19 = vmul.f32 %v3542_v51, %v50_v60  ;;  %v2779_v53 = vld [vmem:[%s5341_s0 + $0x310] sm:$0xff]  ;;  %v107_v28 = vmul.f32 %v3542_v51, %v68_v25  ;;  %v394_v41 = vmax.f32 %v4044_v33, 0.0 }
  0x89   :  { %5414 = vst [vmem:[#allocation16_spill] sm:$0xff] %v4068_v54  ;;  %v892_v20 = vpack.c.bf16 %v4064_v10, %v4068_v54  ;;  %v896_v56 = vpack.c.bf16 %v4066_v29, %v4070_v14  ;;  %v1279_v60 = vrot.slane %v328_v26, 1  ;;  %v526_v30 = vmul.f32 %v3542_v51, %v2763_v42 }
  0x8a   :  { %5415 = vst [vmem:[#allocation17_spill] sm:$0xff] %v4070_v14  ;;  %v403_v25 = vmax.f32 %v4060_v6, 0.0  ;;  %v542_v58 = vmul.f32 %v3542_v51, %v2779_v53  ;;  %v4117_v62 = vsel %vm1244_vm0, %v1245_v24, %v1246_v15  ;;  %v4123_v26 = vadd.f32 %v3562_v57, %v89_v19  ;;  %v3316_v24 = vld [vmem:[%s5340_s4 + $0x238] sm:$0xff] }
  0x8b   :  { %v4132_v6 = vmul.f32 %v3902_v52, %v792_v7  ;;  %v4137_v15 = vmul.f32 %v3902_v52, %v800_v16  ;;  %v4157_v16 = vsel %vm1244_vm0, %v1278_v18, %v1279_v60  ;;  %2526 = vmatpush.bf16.msra.mxu0 %v3316_v24  ;;  %v5423_v53 = vmax.f32 %v3998_v3, 0.0 }
  0x8c   :  { %v4077_v39 = vpop.permute.xlu1 %633  ;;  %v164_v60 = vmax.f32 %v4123_v26, 0.0 }
  0x8d   :  { %v435_v27 = vpop.permute.xlu2 %434  ;;  %v4093_v43 = vmul.f32 %v4077_v39, %v598_v11  ;;  %v2804_v11 = vld [vmem:[%s5341_s0 + $0x370] sm:$0xff]  ;;  %5416 = vst [vmem:[#allocation18_spill] sm:$0xff] %v4137_v15 }
  0x8e   :  { %v231_v5 = vpop.permute.xlu0 %230  ;;  %v761_v33 = vmul.f32 %v3542_v51, %v2804_v11 }
  0x8f   :  { %v324_v32 = vmul.f32 %v231_v5, %v180_v17  ;;  %v2812_v17 = vld [vmem:[%s5341_s0 + $0x400] sm:$0xff]  ;;  %v306_v11 = vmul.f32 %v231_v5, %v5423_v53  ;;  %v3307_v53 = vld [vmem:[%s5340_s4 + $0x1f0] sm:$0xff] }
  0x90   :  { %v769_v42 = vmul.f32 %v3542_v51, %v2812_v17  ;;  %v2775_v17 = vld [vmem:[%s5341_s0 + $0x2f0] sm:$0xff]  ;;  %2345 = vmatpush.bf16.msra.mxu3 %v3307_v53 }
  0x91   :  { %v1273_v35 = vrot.slane %v324_v32, 1  ;;  %984 = vmatmul.bf16.gmra.mxu1 %v892_v20  ;;  %1004 = vmatmul.bf16.gmra.mxu3 %v896_v56  ;;  %v4150_v56 = vadd.f32 %v3562_v57, %v526_v30  ;;  %v3291_v5 = vld [vmem:[%s5340_s4 + $0x170] sm:$0xff]  ;;  %v1249_v3 = vrot.slane %v306_v11, 1  ;;  %v538_v20 = vmul.f32 %v3542_v51, %v2775_v17 }
  0x92   :  { %v785_v24 = vadd.f32 %v3562_v57, %v769_v42  ;;  %v2742_v42 = vld [vmem:[%s5341_s0 + $0x200] sm:$0xff]  ;;  %2005 = vmatpush.bf16.msra.mxu1 %v3291_v5 }
  0x93   :  { %974 = vmatmul.bf16.gmra.mxu0 %v890_v36  ;;  %994 = vmatmul.bf16.gmra.mxu2 %v894_v55  ;;  %v146_v36 = vadd.f32 %v3562_v57, %v107_v28  ;;  %v4147_v22 = vsel %vm1244_vm0, %v1272_v1, %v1273_v35  ;;  %v4163_v55 = vmul.f32 %v435_v27, %v396_v31  ;;  %v5419_v1 = vmax.f32 %v3991_v59, 0.0  ;;  %v2761_v59 = vld [vmem:[%s5341_s0 + $0x270] sm:$0xff] }
  0x94   :  { %5417 = vst [vmem:[#allocation19_spill] sm:$0xff] %v4147_v22  ;;  %v430_v7 = vpop.permute.xlu1 %429  ;;  %v777_v31 = vadd.f32 %v3562_v57, %v761_v33  ;;  %v4198_v33 = vadd.f32 %v3562_v57, %v542_v58  ;;  %v372_v53 = vmul.f32 %v3542_v51, %v2742_v42  ;;  %v5426_v42 = vmax.f32 %v3868_v23, 0.0 }
  0x95   :  { %5418 = vst [vmem:[#allocation20_spill] sm:$0xff] %v4163_v55  ;;  %v4167_v35 = vmul.f32 %v435_v27, %v5419_v1  ;;  %v4169_v30 = vmul.f32 %v430_v7, %v395_v49  ;;  %v4171_v28 = vmul.f32 %v430_v7, %v404_v9  ;;  %v4173_v32 = vpop.permute.xlu2 %834  ;;  %v2777_v49 = vld [vmem:[%s5341_s0 + $0x300] sm:$0xff]  ;;  %v1248_v27 = vrot.slane %v3912_v13, 1  ;;  %v2733_v7 = vld [vmem:[%s5341_s0 + $0x170] sm:$0xff] }
  0x96   :  { %v425_v19 = vpop.permute.xlu0 %424  ;;  %v3299_v1 = vld [vmem:[%s5340_s4 + $0x1b0] sm:$0xff]  ;;  %v540_v58 = vmul.f32 %v3542_v51, %v2777_v49  ;;  %v793_v50 = vmax.f32 %v777_v31, 0.0  ;;  %v5425_v49 = vmax.f32 %v3971_v21, 0.0  ;;  %v363_v26 = vmul.f32 %v3542_v51, %v2733_v7  ;;  %v2759_v21 = vld [vmem:[%s5341_s0 + $0x260] sm:$0xff] }
  0x97   :  { %5420 = vst [vmem:[#allocation21_spill] sm:$0xff] %v4167_v35  ;;  %v4178_v37 = vmul.f32 %v425_v19, %v403_v25  ;;  %v182_v25 = vmax.f32 %v146_v36, 0.0  ;;  %v524_v36 = vmul.f32 %v3542_v51, %v2761_v59  ;;  %2175 = vmatpush.bf16.msra.mxu2 %v3299_v1  ;;  %v467_v18 = vmul.f32 %v425_v19, %v394_v41  ;;  %v2785_v13 = vld [vmem:[%s5341_s0 + $0x340] sm:$0xff] }
  0x98   :  { %5421 = vst [vmem:[#allocation22_spill] sm:$0xff] %v4169_v30  ;;  %v4227_v9 = vmul.f32 %v4077_v39, %v5425_v49  ;;  %v801_v1 = vmax.f32 %v785_v24, 0.0  ;;  %v572_v11 = vadd.f32 %v3562_v57, %v540_v58  ;;  %v2805_v24 = vld [vmem:[%s5341_s0 + $0x380] sm:$0xff]  ;;  %v4251_v59 = vmul.f32 %v4007_v0, %v5426_v42  ;;  %v2731_v0 = vld [vmem:[%s5341_s0 + $0x150] sm:$0xff]  ;;  %v58_v42 = vld [vmem:[%s5341_s0 + $0x68] sm:$0x1] }
  0x99   :  { %5422 = vst [vmem:[#allocation23_spill] sm:$0xff] %v4171_v28  ;;  %v4242_v49 = vadd.f32 %v3562_v57, %v524_v36  ;;  %v2813_v36 = vld [vmem:[%s5341_s0 + $0x410] sm:$0xff]  ;;  %v522_v23 = vmul.f32 %v3542_v51, %v2759_v21 }
  0x9a   :  { %5424 = vst [vmem:[#allocation24_spill] sm:$0xff] %v4178_v37  ;;  %v1495_v58 = vpack.c.bf16 %v4052_v45, %v4227_v9 }
  0x9c   :  { %v241_v31 = vpop.permute.xlu1 %240 }
  0x9d   :  { %v308_v41 = vmul.f32 %v241_v31, %v164_v60  ;;  %v326_v19 = vmul.f32 %v241_v31, %v182_v25  ;;  %v4239_v7 = vpop.permute.xlu2 %673  ;;  %v4254_v60 = vsel %vm1244_vm0, %v1248_v27, %v1249_v3  ;;  %v570_v25 = vadd.f32 %v3562_v57, %v538_v20 }
  0x9e   :  { %v825_v5 = vpop.permute.xlu0 %824  ;;  %5427 = vst [vmem:[#allocation25_spill] sm:$0xff] %v4254_v60  ;;  %v1058_v31 = vpack.c.bf16 %v4169_v30, %v467_v18  ;;  %v762_v3 = vmul.f32 %v3542_v51, %v2805_v24  ;;  %v1325_v21 = vpack.c.bf16 %v4254_v60, %v4117_v62  ;;  %v361_v62 = vmul.f32 %v3542_v51, %v2731_v0 }
  0x9f   :  { %v858_v39 = vmul.f32 %v825_v5, %v793_v50  ;;  %v1252_v52 = vrot.slane %v308_v41, 1  ;;  %v1276_v50 = vrot.slane %v326_v19, 1  ;;  %v4267_v27 = vmul.f32 %v825_v5, %v801_v1  ;;  %v76_v1 = vld [vmem:[%s5341_s0 + $0xf8] sm:$0x1] }
  0xa0   :  { %v770_v41 = vmul.f32 %v3542_v51, %v2813_v36  ;;  %v604_v5 = vmax.f32 %v572_v11, 0.0  ;;  %v602_v24 = vmax.f32 %v570_v25, 0.0  ;;  %v554_v18 = vadd.f32 %v3562_v57, %v522_v23  ;;  %v3315_v11 = vld [vmem:[%s5340_s4 + $0x230] sm:$0xff] }
  0xa1   :  { %5428 = vst [vmem:[#allocation26_spill] sm:$0xff] %v4267_v27  ;;  %v1665_v20 = vpack.c.bf16 %v858_v39, %v4132_v6  ;;  %1139 = vmatmul.bf16.vlgmr.msrb.gmra.mxu1 %v1058_v31  ;;  %1576 = vmatmul.bf16.vlgmr.msrb.gmra.mxu3 %v1495_v58  ;;  %v2740_v6 = vld [vmem:[%s5341_s0 + $0x1e0] sm:$0xff]  ;;  %v5429_v39 = vrot.slane %v3823_v61, 1  ;;  %v4293_v58 = vadd.f32 %v3562_v57, %v363_v26  ;;  %v72_v61 = vld [vmem:[%s5341_s0 + $0xd8] sm:$0x1] }
  0xa2   :  { %v4296_v31 = vadd.f32 %v3562_v57, %v372_v53  ;;  %v115_v0 = vmul.f32 %v3542_v51, %v76_v1  ;;  %v778_v17 = vadd.f32 %v3562_v57, %v762_v3  ;;  %v786_v1 = vadd.f32 %v3562_v57, %v770_v41  ;;  %2527 = vmatpush.bf16.msra.mxu0 %v3315_v11 }
  0xa3   :  { %v4287_v19 = vsel %vm1244_vm0, %v5429_v39, %v1252_v52  ;;  %1746 = vmatmul.bf16.vlgmr.msrb.gmra.mxu0 %v1665_v20  ;;  %1406 = vmatmul.bf16.vlgmr.msrb.gmra.mxu2 %v1325_v21  ;;  %v97_v52 = vmul.f32 %v3542_v51, %v58_v42  ;;  %v370_v20 = vmul.f32 %v3542_v51, %v2740_v6  ;;  %v5431_v21 = vrot.slane %v3840_v34, 1  ;;  %v3306_v34 = vld [vmem:[%s5340_s4 + $0x1e8] sm:$0xff] }
  0xa4   :  { %5430 = vst [vmem:[#allocation27_spill] sm:$0xff] %v4287_v19  ;;  %v664_v25 = vpop.permute.xlu1 %663  ;;  %v588_v42 = vmax.f32 %v4242_v49, 0.0  ;;  %v1255_v6 = vrot.slane %v4251_v59, 1  ;;  %v56_v49 = vld [vmem:[%s5341_s0 + $0x58] sm:$0x1]  ;;  %v586_v3 = vmax.f32 %v554_v18, 0.0  ;;  %2346 = vmatpush.bf16.msra.mxu3 %v3306_v34  ;;  %v548_v34 = vmul.f32 %v3542_v51, %v2785_v13 }
  0xa5   :  { %v4310_v53 = vsel %vm1244_vm0, %v5431_v21, %v1276_v50  ;;  %v4314_v39 = vpop.permute.xlu2 %449  ;;  %v4319_v26 = vmul.f32 %v664_v25, %v604_v5  ;;  %v379_v50 = vadd.f32 %v3562_v57, %v361_v62  ;;  %v4330_v41 = vadd.f32 %v3562_v57, %v97_v52  ;;  %v54_v59 = vld [vmem:[%s5341_s0 + $0x48] sm:$0x1]  ;;  %v2769_v5 = vld [vmem:[%s5341_s0 + $0x2b0] sm:$0xff] }
  0xa6   :  { %5432 = vst [vmem:[#allocation28_spill] sm:$0xff] %v4310_v53  ;;  %v654_v36 = vpop.permute.xlu0 %653  ;;  %v4338_v62 = vadd.f32 %v3562_v57, %v115_v0  ;;  %v388_v11 = vadd.f32 %v3562_v57, %v370_v20  ;;  %v74_v18 = vld [vmem:[%s5341_s0 + $0xe8] sm:$0x1]  ;;  %v794_v23 = vmax.f32 %v778_v17, 0.0  ;;  %v802_v21 = vmax.f32 %v786_v1, 0.0  ;;  %v2765_v13 = vld [vmem:[%s5341_s0 + $0x290] sm:$0xff] }
  0xa7   :  { %v4321_v44 = vmul.f32 %v654_v36, %v602_v24  ;;  %v95_v2 = vmul.f32 %v3542_v51, %v56_v49  ;;  %v397_v24 = vmax.f32 %v379_v50, 0.0  ;;  %v93_v0 = vmul.f32 %v3542_v51, %v54_v59  ;;  %v3298_v20 = vld [vmem:[%s5340_s4 + $0x1a8] sm:$0xff] }
  0xa8   :  { %v3290_v17 = vld [vmem:[%s5340_s4 + $0x168] sm:$0xff]  ;;  %v4363_v49 = vmul.f32 %v664_v25, %v588_v42  ;;  %v4365_v59 = vmul.f32 %v654_v36, %v586_v3  ;;  %v172_v52 = vmax.f32 %v4330_v41, 0.0  ;;  %v113_v60 = vmul.f32 %v3542_v51, %v74_v18  ;;  %v2732_v42 = vld [vmem:[%s5341_s0 + $0x160] sm:$0xff]  ;;  %2176 = vmatpush.bf16.msra.mxu2 %v3298_v20 }
  0xa9   :  { %5433 = vst [vmem:[#allocation29_spill] sm:$0xff] %v4321_v44  ;;  %v406_v50 = vmax.f32 %v388_v11, 0.0  ;;  %v5435_v25 = vrot.slane %v3787_v38, 1  ;;  %v5436_v41 = vmax.f32 %v4038_v4, 0.0  ;;  %2006 = vmatpush.bf16.msra.mxu1 %v3290_v17  ;;  %v111_v20 = vmul.f32 %v3542_v51, %v72_v61  ;;  %v2741_v4 = vld [vmem:[%s5341_s0 + $0x1f0] sm:$0xff] }
  0xaa   :  { %5434 = vst [vmem:[#allocation30_spill] sm:$0xff] %v4365_v59  ;;  %v132_v3 = vadd.f32 %v3562_v57, %v93_v0  ;;  %v5437_v61 = vmax.f32 %v4041_v8, 0.0  ;;  %v371_v8 = vmul.f32 %v3542_v51, %v2741_v4  ;;  %v5441_v4 = vmax.f32 %v4198_v33, 0.0 }
  0xab   :  { %v4379_v36 = vsel %vm1244_vm0, %v5435_v25, %v1255_v6  ;;  %v860_v18 = vmul.f32 %v4173_v32, %v5436_v41  ;;  %v134_v6 = vadd.f32 %v3562_v57, %v95_v2  ;;  %v532_v25 = vmul.f32 %v3542_v51, %v2769_v5 }
  0xac   :  { %v830_v1 = vpop.permute.xlu1 %829  ;;  %v4404_v2 = vadd.f32 %v3562_v57, %v113_v60  ;;  %v362_v5 = vmul.f32 %v3542_v51, %v2732_v42  ;;  %v1326_v60 = vpack.c.bf16 %v4379_v36, %v4287_v19  ;;  %v2817_v51 = vld [vmem:[%s5341_s0 + $0x450] sm:$0xff]  ;;  %v5446_v53 = vrot.slane %v3791_v40, 1 }
  0xad   :  { %v859_v30 = vmul.f32 %v830_v1, %v794_v23  ;;  %v4389_v11 = vpop.permute.xlu2 %280  ;;  %v1496_v23 = vpack.c.bf16 %v4363_v49, %v4365_v59  ;;  %v4415_v0 = vmul.f32 %v830_v1, %v802_v21  ;;  %v170_v42 = vmax.f32 %v134_v6, 0.0  ;;  %v4445_v6 = vld [vmem:[%s5338_s1] ss:$0 sm:$0xff]  ;;  %v2815_v19 = vld [vmem:[%s5341_s0 + $0x430] sm:$0xff] }
  0xae   :  { %v440_v38 = vpop.permute.xlu0 %439  ;;  %v4434_v21 = vadd.f32 %v3562_v57, %v548_v34  ;;  %v4437_v1 = vadd.f32 %v3562_v57, %v111_v20  ;;  %v3314_v34 = vld [vmem:[%s5340_s4 + $0x228] sm:$0xff]  ;;  %v4454_v20 = vmul.f32 %v4239_v7, %v5441_v4 }
  0xaf   :  { %v4393_v15 = vmul.f32 %v440_v38, %v397_v24  ;;  %v1666_v41 = vpack.c.bf16 %v860_v18, %v859_v30  ;;  %v4413_v24 = vmul.f32 %v4173_v32, %v5437_v61  ;;  %5439 = vst [vmem:[#allocation32_spill] sm:$0xff] %v4415_v0  ;;  %v4417_v17 = vmul.f32 %v440_v38, %v406_v50  ;;  %v2809_v32 = vld [vmem:[%s5341_s0 + $0x3c0] sm:$0xff] }
  0xb0   :  { %v4424_v18 = vadd.f32 %v3562_v57, %v532_v25  ;;  %v2781_v38 = vld [vmem:[%s5341_s0 + $0x320] sm:$0xff]  ;;  %v168_v50 = vmax.f32 %v132_v3, 0.0  ;;  %v528_v25 = vmul.f32 %v4445_v6, %v2765_v13  ;;  %v316_v3 = vmul.f32 %v4389_v11, %v172_v52  ;;  %2528 = vmatpush.bf16.msra.mxu0 %v3314_v34 }
  0xb1   :  { %5438 = vst [vmem:[#allocation31_spill] sm:$0xff] %v4413_v24  ;;  %v1059_v30 = vpack.c.bf16 %v4393_v15, %v4163_v55  ;;  %1581 = vmatmul.bf16.gmra.mxu3 %v1496_v23  ;;  %v766_v13 = vmul.f32 %v4445_v6, %v2809_v32  ;;  %v2808_v23 = vld [vmem:[%s5341_s0 + $0x3b0] sm:$0xff] }
  0xb2   :  { %5440 = vst [vmem:[#allocation33_spill] sm:$0xff] %v4417_v17  ;;  %v1264_v55 = vrot.slane %v316_v3, 1 }
  0xb3   :  { %1144 = vmatmul.bf16.gmra.mxu1 %v1059_v30  ;;  %1751 = vmatmul.bf16.gmra.mxu0 %v1666_v41  ;;  %v380_v41 = vadd.f32 %v3562_v57, %v362_v5  ;;  %v544_v30 = vmul.f32 %v4445_v6, %v2781_v38  ;;  %v4476_v5 = vld [vmem:[%s5339_s2] ss:$0 sm:$0xff]  ;;  %v774_v38 = vmul.f32 %v4445_v6, %v2817_v51 }
  0xb4   :  { %1411 = vmatmul.bf16.gmra.mxu2 %v1326_v60  ;;  %v4459_v61 = vpop.permute.xlu1 %270  ;;  %v389_v32 = vadd.f32 %v4476_v5, %v371_v8  ;;  %v560_v33 = vadd.f32 %v4476_v5, %v528_v25  ;;  %v2816_v8 = vld [vmem:[%s5341_s0 + $0x440] sm:$0xff]  ;;  %v4500_v4 = vadd.f32 %v4476_v5, %v766_v13  ;;  %v5444_v13 = vrot.slane %v3898_v47, 1 }
  0xb5   :  { %v314_v52 = vmul.f32 %v4459_v61, %v170_v42  ;;  %v4468_v60 = vpop.permute.xlu2 %703  ;;  %v398_v24 = vmax.f32 %v380_v41, 0.0  ;;  %v2807_v51 = vld [vmem:[%s5341_s0 + $0x3a0] sm:$0xff]  ;;  %v576_v3 = vadd.f32 %v4476_v5, %v544_v30  ;;  %v2758_v41 = vld [vmem:[%s5341_s0 + $0x258] sm:$0x1]  ;;  %v5447_v47 = vrot.slane %v4068_v54, 1 }
  0xb6   :  { %v4471_v57 = vpop.permute.xlu0 %260  ;;  %v592_v35 = vmax.f32 %v560_v33, 0.0 }
  0xb7   :  { %v312_v42 = vmul.f32 %v4471_v57, %v168_v50  ;;  %v1261_v0 = vrot.slane %v314_v52, 1  ;;  %v5442_v50 = vmax.f32 %v4150_v56, 0.0  ;;  %v2774_v52 = vld [vmem:[%s5341_s0 + $0x2e8] sm:$0x1]  ;;  %v3297_v56 = vld [vmem:[%s5340_s4 + $0x1a0] sm:$0xff]  ;;  %v4538_v33 = vsel %vm1244_vm0, %v5447_v47, %v1264_v55 }
  0xb8   :  { %2177 = vmatpush.bf16.msra.mxu2 %v3297_v56  ;;  %5448 = vst [vmem:[#allocation36_spill] sm:$0xff] %v4538_v33  ;;  %v772_v56 = vmul.f32 %v4445_v6, %v2815_v19  ;;  %v5450_v19 = vmax.f32 %v4296_v31, 0.0 }
  0xb9   :  { %v4497_v25 = vmul.f32 %v4239_v7, %v5442_v50  ;;  %v1258_v34 = vrot.slane %v312_v42, 1  ;;  %v407_v7 = vmax.f32 %v389_v32, 0.0  ;;  %v4513_v42 = vadd.f32 %v4476_v5, %v774_v38 }
  0xba   :  { %v4518_v30 = vsel %vm1244_vm0, %v5444_v13, %v1261_v0  ;;  %v765_v50 = vmul.f32 %v4445_v6, %v2808_v23  ;;  %v773_v32 = vmul.f32 %v4445_v6, %v2816_v8  ;;  %v764_v38 = vmul.f32 %v4445_v6, %v2807_v51 }
  0xbb   :  { %5443 = vst [vmem:[#allocation34_spill] sm:$0xff] %v4497_v25  ;;  %v4527_v27 = vsel %vm1244_vm0, %v5446_v53, %v1258_v34  ;;  %v521_v23 = vmul.f32 %v4445_v6, %v2758_v41  ;;  %v537_v13 = vmul.f32 %v4445_v6, %v2774_v52  ;;  %v3305_v53 = vld [vmem:[%s5340_s4 + $0x1e0] sm:$0xff]  ;;  %v5449_v8 = vmax.f32 %v4293_v58, 0.0 }
  0xbc   :  { %5445 = vst [vmem:[#allocation35_spill] sm:$0xff] %v4518_v30  ;;  %v1327_v0 = vpack.c.bf16 %v4518_v30, %v4527_v27  ;;  %v3289_v34 = vld [vmem:[%s5340_s4 + $0x160] sm:$0xff]  ;;  %v445_v41 = vpop.permute.xlu1 %444  ;;  %v608_v52 = vmax.f32 %v576_v3, 0.0  ;;  %v781_v58 = vadd.f32 %v4476_v5, %v765_v50  ;;  %2347 = vmatpush.bf16.msra.mxu3 %v3305_v53  ;;  %v2783_v50 = vld [vmem:[%s5341_s0 + $0x330] sm:$0xff]  ;;  %v60_v53 = vld [vmem:[%s5341_s0 + $0x78] sm:$0x1] }
  0xbd   :  { %v4549_v51 = vmul.f32 %v4314_v39, %v5449_v8  ;;  %v4554_v55 = vmul.f32 %v445_v41, %v398_v24  ;;  %v4556_v54 = vmul.f32 %v445_v41, %v407_v7  ;;  %v4558_v40 = vpop.permute.xlu2 %849  ;;  %v2767_v3 = vld [vmem:[%s5341_s0 + $0x2a0] sm:$0xff]  ;;  %2007 = vmatpush.bf16.msra.mxu1 %v3289_v34  ;;  %v4568_v24 = vmul.f32 %v4314_v39, %v5450_v19 }
  0xbe   :  { %v684_v28 = vpop.permute.xlu0 %683  ;;  %v4573_v8 = vadd.f32 %v4476_v5, %v773_v32  ;;  %v780_v41 = vadd.f32 %v4476_v5, %v764_v38  ;;  %v4587_v39 = vadd.f32 %v4476_v5, %v521_v23  ;;  %v4590_v32 = vadd.f32 %v4476_v5, %v537_v13  ;;  %v78_v38 = vld [vmem:[%s5341_s0 + $0x108] sm:$0x1] }
  0xbf   :  { %v4570_v7 = vmul.f32 %v684_v28, %v592_v35  ;;  %v1060_v35 = vpack.c.bf16 %v4549_v51, %v4554_v55  ;;  %v5452_v34 = vmax.f32 %v4338_v62, 0.0  ;;  %v4600_v47 = vmul.f32 %v684_v28, %v608_v52  ;;  %v2780_v62 = vld [vmem:[%s5341_s0 + $0x318] sm:$0x1] }
  0xc0   :  { %v530_v23 = vmul.f32 %v4445_v6, %v2767_v3  ;;  %v797_v37 = vmax.f32 %v781_v58, 0.0  ;;  %v4606_v13 = vadd.f32 %v4476_v5, %v772_v56  ;;  %v546_v30 = vmul.f32 %v4445_v6, %v2783_v50  ;;  %v3313_v3 = vld [vmem:[%s5340_s4 + $0x220] sm:$0xff] }
  0xc1   :  { %5451 = vst [vmem:[#allocation37_spill] sm:$0xff] %v4570_v7  ;;  %v4598_v19 = vmul.f32 %v4389_v11, %v5452_v34  ;;  %v1497_v31 = vpack.c.bf16 %v4570_v7, %v4497_v25  ;;  %v99_v11 = vmul.f32 %v4445_v6, %v60_v53  ;;  %v5454_v28 = vmax.f32 %v4437_v1, 0.0  ;;  %2529 = vmatpush.bf16.msra.mxu0 %v3313_v3 }
  0xc2   :  { %5453 = vst [vmem:[#allocation38_spill] sm:$0xff] %v4600_v47  ;;  %v796_v58 = vmax.f32 %v780_v41, 0.0  ;;  %v117_v56 = vmul.f32 %v4445_v6, %v78_v38  ;;  %v5455_v50 = vmax.f32 %v4404_v2, 0.0  ;;  %v2735_v41 = vld [vmem:[%s5341_s0 + $0x190] sm:$0xff]  ;;  %v562_v38 = vadd.f32 %v4476_v5, %v530_v23 }
  0xc3   :  { %v330_v52 = vmul.f32 %v4471_v57, %v5454_v28  ;;  %1149 = vmatmul.bf16.gmra.mxu1 %v1060_v35  ;;  %1586 = vmatmul.bf16.gmra.mxu3 %v1497_v31  ;;  %v543_v2 = vmul.f32 %v4445_v6, %v2780_v62  ;;  %v2734_v28 = vld [vmem:[%s5341_s0 + $0x180] sm:$0xff]  ;;  %v804_v57 = vmax.f32 %v4606_v13, 0.0  ;;  %v578_v53 = vadd.f32 %v4476_v5, %v546_v30  ;;  %v2764_v31 = vld [vmem:[%s5341_s0 + $0x288] sm:$0x1] }
  0xc4   :  { %v332_v17 = vmul.f32 %v4459_v61, %v5455_v50  ;;  %1416 = vmatmul.bf16.gmra.mxu2 %v1327_v0  ;;  %v845_v35 = vpop.permute.xlu1 %844  ;;  %v2744_v61 = vld [vmem:[%s5341_s0 + $0x220] sm:$0xff]  ;;  %v2784_v0 = vld [vmem:[%s5341_s0 + $0x338] sm:$0x1]  ;;  %v138_v1 = vadd.f32 %v4476_v5, %v99_v11  ;;  %v156_v3 = vadd.f32 %v4476_v5, %v117_v56  ;;  %v365_v50 = vmul.f32 %v4445_v6, %v2735_v41 }
  0xc5   :  { %v862_v34 = vmul.f32 %v845_v35, %v797_v37  ;;  %v4644_v23 = vpop.permute.xlu2 %648  ;;  %v1282_v7 = vrot.slane %v330_v52, 1  ;;  %v2743_v37 = vld [vmem:[%s5341_s0 + $0x210] sm:$0xff]  ;;  %v374_v13 = vmul.f32 %v4445_v6, %v2744_v61  ;;  %v547_v30 = vmul.f32 %v4445_v6, %v2784_v0  ;;  %v2772_v0 = vld [vmem:[%s5341_s0 + $0x2d8] sm:$0x1] }
  0xc6   :  { %v840_v62 = vpop.permute.xlu0 %839  ;;  %v1285_v47 = vrot.slane %v332_v17, 1  ;;  %v364_v44 = vmul.f32 %v4445_v6, %v2734_v28  ;;  %v594_v12 = vmax.f32 %v562_v38, 0.0  ;;  %v4661_v11 = vmul.f32 %v4445_v6, %v2764_v31  ;;  %v2756_v31 = vld [vmem:[%s5341_s0 + $0x248] sm:$0x1] }
  0xc7   :  { %v861_v25 = vmul.f32 %v840_v62, %v796_v58  ;;  %v575_v52 = vadd.f32 %v4476_v5, %v543_v2  ;;  %v3296_v58 = vld [vmem:[%s5340_s4 + $0x198] sm:$0xff]  ;;  %v5456_v56 = vmax.f32 %v4424_v18, 0.0  ;;  %v5457_v41 = vmax.f32 %v4434_v21, 0.0 }
  0xc8   :  { %v174_v38 = vmax.f32 %v138_v1, 0.0  ;;  %v192_v2 = vmax.f32 %v156_v3, 0.0  ;;  %v383_v18 = vadd.f32 %v4476_v5, %v365_v50  ;;  %2178 = vmatpush.bf16.msra.mxu2 %v3296_v58  ;;  %v5458_v21 = vrot.slane %v3894_v46, 1  ;;  %v3304_v1 = vld [vmem:[%s5340_s4 + $0x1d8] sm:$0xff] }
  0xc9   :  { %v1667_v59 = vpack.c.bf16 %v862_v34, %v861_v25  ;;  %v4670_v17 = vmul.f32 %v4468_v60, %v5456_v56  ;;  %v4675_v61 = vmul.f32 %v4468_v60, %v5457_v41  ;;  %v610_v25 = vmax.f32 %v578_v53, 0.0  ;;  %v3288_v50 = vld [vmem:[%s5340_s4 + $0x158] sm:$0xff]  ;;  %2348 = vmatpush.bf16.msra.mxu3 %v3304_v1 }
  0xca   :  { %v373_v34 = vmul.f32 %v4445_v6, %v2743_v37  ;;  %v4688_v60 = vsel %vm1244_vm0, %v5458_v21, %v1282_v7  ;;  %v4691_v53 = vadd.f32 %v4476_v5, %v374_v13  ;;  %v4694_v28 = vadd.f32 %v4476_v5, %v547_v30  ;;  %2008 = vmatpush.bf16.msra.mxu1 %v3288_v50 }
  0xcb   :  { %1756 = vmatmul.bf16.gmra.mxu0 %v1667_v59  ;;  %5459 = vst [vmem:[#allocation39_spill] sm:$0xff] %v4688_v60  ;;  %v4697_v59 = vadd.f32 %v4476_v5, %v364_v44  ;;  %v5460_v7 = vrot.slane %v3900_v48, 1  ;;  %v519_v13 = vmul.f32 %v4445_v6, %v2756_v31  ;;  %v2810_v44 = vld [vmem:[%s5341_s0 + $0x3d0] sm:$0xff]  ;;  %v607_v21 = vmax.f32 %v575_v52, 0.0  ;;  %v2818_v52 = vld [vmem:[%s5341_s0 + $0x460] sm:$0xff] }
  0xcc   :  { %v694_v37 = vpop.permute.xlu1 %693  ;;  %v391_v31 = vadd.f32 %v4476_v5, %v373_v34  ;;  %v535_v48 = vmul.f32 %v4445_v6, %v2772_v0  ;;  %v5462_v30 = vmax.f32 %v4573_v8, 0.0  ;;  %v4730_v58 = vmul.f32 %v840_v62, %v804_v57 }
  0xcd   :  { %v4708_v3 = vsel %vm1244_vm0, %v5460_v7, %v1285_v47  ;;  %v4720_v41 = vmul.f32 %v694_v37, %v594_v12  ;;  %v4722_v47 = vpop.permute.xlu2 %678  ;;  %v4732_v60 = vmul.f32 %v694_v37, %v610_v25  ;;  %v401_v0 = vmax.f32 %v383_v18, 0.0 }
  0xce   :  { %5461 = vst [vmem:[#allocation40_spill] sm:$0xff] %v4708_v3  ;;  %v291_v7 = vpop.permute.xlu0 %290  ;;  %v4728_v46 = vmul.f32 %v845_v35, %v5462_v30  ;;  %v767_v1 = vmul.f32 %v4445_v6, %v2810_v44  ;;  %v410_v8 = vmax.f32 %v4691_v53, 0.0  ;;  %v611_v57 = vmax.f32 %v4694_v28, 0.0  ;;  %v3312_v53 = vld [vmem:[%s5340_s4 + $0x218] sm:$0xff] }
  0xcf   :  { %v318_v12 = vmul.f32 %v291_v7, %v174_v38  ;;  %v336_v56 = vmul.f32 %v291_v7, %v192_v2  ;;  %v1498_v34 = vpack.c.bf16 %v4670_v17, %v4720_v41  ;;  %v4743_v35 = vadd.f32 %v4476_v5, %v519_v13  ;;  %2530 = vmatpush.bf16.msra.mxu0 %v3312_v53 }
  0xd0   :  { %v400_v62 = vmax.f32 %v4697_v59, 0.0  ;;  %v409_v25 = vmax.f32 %v391_v31, 0.0  ;;  %v4747_v38 = vadd.f32 %v4476_v5, %v535_v48  ;;  %v775_v2 = vmul.f32 %v4445_v6, %v2818_v52  ;;  %v2776_v59 = vld [vmem:[%s5341_s0 + $0x2f8] sm:$0x1] }
  0xd1   :  { %v1267_v50 = vrot.slane %v318_v12, 1  ;;  %v5463_v18 = vrot.slane %v4064_v10, 1  ;;  %v5465_v48 = vrot.slane %v4598_v19, 1  ;;  %v5466_v13 = vrot.slane %v4070_v14, 1 }
  0xd2   :  { %v5468_v30 = vmax.f32 %v4590_v32, 0.0  ;;  %v1291_v31 = vrot.slane %v336_v56, 1  ;;  %v783_v52 = vadd.f32 %v4476_v5, %v767_v1  ;;  %v583_v19 = vmax.f32 %v4743_v35, 0.0  ;;  %v2778_v32 = vld [vmem:[%s5341_s0 + $0x308] sm:$0x1] }
  0xd3   :  { %1591 = vmatmul.bf16.gmra.mxu3 %v1498_v34  ;;  %v4753_v37 = vsel %vm1244_vm0, %v5463_v18, %v1267_v50  ;;  %v4767_v44 = vsel %vm1244_vm0, %v5466_v13, %v5465_v48  ;;  %v736_v34 = vmul.f32 %v4722_v47, %v607_v21  ;;  %v2762_v18 = vld [vmem:[%s5341_s0 + $0x278] sm:$0x1]  ;;  %v5469_v48 = vmax.f32 %v4587_v39, 0.0 }
  0xd4   :  { %5464 = vst [vmem:[#allocation41_spill] sm:$0xff] %v4753_v37  ;;  %v730_v7 = vmul.f32 %v4644_v23, %v5468_v30  ;;  %v1328_v12 = vpack.c.bf16 %v4753_v37, %v4538_v33  ;;  %v460_v50 = vpop.permute.xlu1 %459  ;;  %v599_v30 = vmax.f32 %v4747_v38, 0.0  ;;  %v791_v53 = vadd.f32 %v4476_v5, %v775_v2 }
  0xd5   :  { %5467 = vst [vmem:[#allocation42_spill] sm:$0xff] %v4767_v44  ;;  %v4787_v1 = vmul.f32 %v4644_v23, %v5469_v48  ;;  %v4789_v21 = vmul.f32 %v460_v50, %v401_v0  ;;  %v4791_v13 = vpop.permute.xlu2 %698  ;;  %v4798_v56 = vmul.f32 %v460_v50, %v410_v8  ;;  %v799_v38 = vmax.f32 %v783_v52, 0.0  ;;  %v3303_v50 = vld [vmem:[%s5340_s4 + $0x1d0] sm:$0xff] }
  0xd6   :  { %v455_v35 = vpop.permute.xlu0 %454  ;;  %1421 = vmatmul.bf16.gmra.mxu2 %v1328_v12  ;;  %v740_v39 = vmul.f32 %v4791_v13, %v611_v57  ;;  %v2760_v12 = vld [vmem:[%s5341_s0 + $0x268] sm:$0x1]  ;;  %v1879_v48 = vrot.slane %v730_v7, 1  ;;  %v525_v2 = vmul.f32 %v4445_v6, %v2762_v18  ;;  %v5470_v8 = vrot.slane %v4066_v29, 1  ;;  %2349 = vmatpush.bf16.msra.mxu3 %v3303_v50 }
  0xd7   :  { %v4801_v23 = vmul.f32 %v455_v35, %v400_v62  ;;  %v4803_v0 = vmul.f32 %v455_v35, %v409_v25  ;;  %v1888_v62 = vrot.slane %v736_v34, 1  ;;  %v541_v7 = vmul.f32 %v4445_v6, %v2778_v32 }
  0xd8   :  { %v4815_v57 = vsel %vm1244_vm0, %v5470_v8, %v1291_v31  ;;  %v1894_v52 = vrot.slane %v740_v39, 1  ;;  %v807_v35 = vmax.f32 %v791_v53, 0.0  ;;  %v523_v28 = vmul.f32 %v4445_v6, %v2760_v12  ;;  %v3295_v31 = vld [vmem:[%s5340_s4 + $0x190] sm:$0xff] }
  0xd9   :  { %5471 = vst [vmem:[#allocation43_spill] sm:$0xff] %v4815_v57  ;;  %v1061_v18 = vpack.c.bf16 %v4789_v21, %v4801_v23  ;;  %v539_v34 = vmul.f32 %v4445_v6, %v2776_v59  ;;  %v5472_v39 = vmax.f32 %v4500_v4, 0.0  ;;  %v5473_v12 = vmax.f32 %v4513_v42, 0.0  ;;  %2179 = vmatpush.bf16.msra.mxu2 %v3295_v31  ;;  %v3287_v4 = vld [vmem:[%s5340_s4 + $0x150] sm:$0xff] }
  0xda   :  { %v1855_v59 = vrot.slane %v4787_v1, 1  ;;  %v1893_v29 = vrot.slane %v4732_v60, 1  ;;  %v557_v42 = vadd.f32 %v4476_v5, %v525_v2  ;;  %v573_v1 = vadd.f32 %v4476_v5, %v541_v7  ;;  %2009 = vmatpush.bf16.msra.mxu1 %v3287_v4 }
  0xdb   :  { %v863_v53 = vmul.f32 %v4558_v40, %v5472_v39  ;;  %v4841_v25 = vmul.f32 %v4558_v40, %v5473_v12  ;;  %1154 = vmatmul.bf16.gmra.mxu1 %v1061_v18  ;;  %v80_v40 = vld [vmem:[%s5341_s0 + $0x118] sm:$0x1]  ;;  %v5474_v18 = vrot.slane %v4057_v63, 1  ;;  %v5476_v12 = vrot.slane %v4454_v20, 1 }
  0xdc   :  { %v639_v39 = vpop.permute.xlu1 %638  ;;  %v1875_v8 = vrot.slane %v4093_v43, 1  ;;  %v4868_v2 = vsel %vm1244_vm0, %v1893_v29, %v1894_v52 }
  0xdd   :  { %v4859_v31 = vsel %vm1244_vm0, %v5474_v18, %v1879_v48  ;;  %v4864_v32 = vsel %vm1244_vm0, %v5476_v12, %v1888_v62  ;;  %v712_v14 = vmul.f32 %v639_v39, %v583_v19  ;;  %v728_v37 = vmul.f32 %v639_v39, %v599_v30  ;;  %5477 = vst [vmem:[#allocation45_spill] sm:$0xff] %v4868_v2  ;;  %v79_v62 = vld [vmem:[%s5341_s0 + $0x110] sm:$0xff]  ;;  %v2766_v19 = vld [vmem:[%s5341_s0 + $0x298] sm:$0x1] }
  0xde   :  { %5475 = vst [vmem:[#allocation44_spill] sm:$0xff] %v4859_v31  ;;  %v855_v10 = vpop.permute.xlu0 %854  ;;  %v555_v48 = vadd.f32 %v4476_v5, %v523_v28  ;;  %v571_v18 = vadd.f32 %v4476_v5, %v539_v34  ;;  %v559_v30 = vadd.f32 %v4476_v5, %v4661_v11  ;;  %v2782_v28 = vld [vmem:[%s5341_s0 + $0x328] sm:$0x1]  ;;  %v589_v34 = vmax.f32 %v557_v42, 0.0  ;;  %v5523_v2 = vld [vmem:[#allocation5_spill] sm:$0xff] }
  0xdf   :  { %v864_v7 = vmul.f32 %v855_v10, %v799_v38  ;;  %v4870_v33 = vmul.f32 %v855_v10, %v807_v35  ;;  %v1852_v29 = vrot.slane %v712_v14, 1  ;;  %v1876_v50 = vrot.slane %v728_v37, 1  ;;  %v2768_v14 = vld [vmem:[%s5341_s0 + $0x2a8] sm:$0x1] }
  0xe0   :  { %v119_v10 = vmul.f32 %v4445_v6, %v80_v40  ;;  %v5478_v38 = vrot.slane %v4052_v45, 1  ;;  %v5479_v11 = vrot.slane %v4227_v9, 1  ;;  %v605_v39 = vmax.f32 %v573_v1, 0.0  ;;  %v3311_v9 = vld [vmem:[%s5340_s4 + $0x210] sm:$0xff] }
  0xe1   :  { %v1668_v35 = vpack.c.bf16 %v864_v7, %v863_v53  ;;  %v118_v45 = vmul.f32 %v4445_v6, %v79_v62  ;;  %v5480_v53 = vpack.c.bf16 %v4057_v63, %v4093_v43  ;;  %v587_v40 = vmax.f32 %v555_v48, 0.0  ;;  %2531 = vmatpush.bf16.msra.mxu0 %v3311_v9 }
  0xe2   :  { %v4889_v52 = vsel %vm1244_vm0, %v5478_v38, %v1855_v59  ;;  %v4899_v37 = vsel %vm1244_vm0, %v5479_v11, %v1852_v29  ;;  %v529_v59 = vmul.f32 %v4445_v6, %v2766_v19  ;;  %v603_v42 = vmax.f32 %v571_v18, 0.0 }
  0xe3   :  { %1596 = vmatmul.bf16.gmra.mxu3 %v5480_v53  ;;  %1761 = vmatmul.bf16.gmra.mxu0 %v1668_v35  ;;  %v545_v12 = vmul.f32 %v4445_v6, %v2782_v28  ;;  %v4911_v7 = vsel %vm1244_vm0, %v1875_v8, %v1876_v50  ;;  %v1860_v1 = vrot.slane %v4363_v49, 1  ;;  %v1884_v43 = vrot.slane %v4319_v26, 1  ;;  %v5482_v49 = vld [vmem:[#allocation7_spill] sm:$0xff]  ;;  %v5484_v53 = vld [vmem:[#allocation30_spill] sm:$0xff] }
  0xe4   :  { %5481 = vst [vmem:[#allocation46_spill] sm:$0xff] %v4911_v7  ;;  %v591_v48 = vmax.f32 %v559_v30, 0.0  ;;  %v531_v18 = vmul.f32 %v4445_v6, %v2768_v14  ;;  %v158_v19 = vadd.f32 %v4476_v5, %v119_v10  ;;  %v669_v29 = vpop.permute.xlu1 %668  ;;  %v5483_v38 = vpack.c.bf16 %v4147_v22, %v5482_v49  ;;  %v2745_v10 = vld [vmem:[%s5341_s0 + $0x230] sm:$0xff]  ;;  %v2786_v49 = vld [vmem:[%s5341_s0 + $0x348] sm:$0x1] }
  0xe5   :  { %v718_v28 = vmul.f32 %v669_v29, %v589_v34  ;;  %v734_v8 = vmul.f32 %v669_v29, %v605_v39  ;;  %v157_v35 = vadd.f32 %v4476_v5, %v118_v45  ;;  %v561_v11 = vadd.f32 %v4476_v5, %v529_v59  ;;  %v5485_v34 = vld [vmem:[#allocation29_spill] sm:$0xff]  ;;  %v2770_v45 = vld [vmem:[%s5341_s0 + $0x2b8] sm:$0x1]  ;;  %v3294_v59 = vld [vmem:[%s5340_s4 + $0x188] sm:$0xff] }
  0xe6   :  { %v659_v50 = vpop.permute.xlu0 %658  ;;  %1426 = vmatmul.bf16.gmra.mxu2 %v5483_v38  ;;  %v1857_v63 = vrot.slane %v5484_v53, 1  ;;  %v577_v14 = vadd.f32 %v4476_v5, %v545_v12  ;;  %v1881_v39 = vrot.slane %v5485_v34, 1  ;;  %v375_v4 = vmul.f32 %v4445_v6, %v2745_v10 }
  0xe7   :  { %v716_v30 = vmul.f32 %v659_v50, %v587_v40  ;;  %v732_v62 = vmul.f32 %v659_v50, %v603_v42  ;;  %v1861_v9 = vrot.slane %v718_v28, 1  ;;  %v1885_v29 = vrot.slane %v734_v8, 1  ;;  %v4943_v8 = vpop.permute.xlu2 %300  ;;  %2180 = vmatpush.bf16.msra.mxu2 %v3294_v59 }
  0xe8   :  { %v563_v40 = vadd.f32 %v4476_v5, %v531_v18  ;;  %v194_v42 = vmax.f32 %v158_v19, 0.0  ;;  %v720_v28 = vmul.f32 %v4722_v47, %v591_v48  ;;  %v193_v38 = vmax.f32 %v157_v35, 0.0  ;;  %v5486_v19 = vld [vmem:[#allocation23_spill] sm:$0xff]  ;;  %v3302_v48 = vld [vmem:[%s5340_s4 + $0x1c8] sm:$0xff] }
  0xe9   :  { %v1858_v12 = vrot.slane %v716_v30, 1  ;;  %v1882_v50 = vrot.slane %v732_v62, 1  ;;  %v593_v53 = vmax.f32 %v561_v11, 0.0  ;;  %v609_v22 = vmax.f32 %v577_v14, 0.0  ;;  %v5487_v30 = vld [vmem:[#allocation24_spill] sm:$0xff]  ;;  %2350 = vmatpush.bf16.msra.mxu3 %v3302_v48 }
  0xea   :  { %v533_v7 = vmul.f32 %v4445_v6, %v2770_v45  ;;  %v4951_v62 = vsel %vm1244_vm0, %v1860_v1, %v1861_v9  ;;  %v5488_v31 = vpack.c.bf16 %v5486_v19, %v5487_v30  ;;  %v549_v47 = vmul.f32 %v4445_v6, %v2786_v49  ;;  %v3286_v35 = vld [vmem:[%s5340_s4 + $0x148] sm:$0xff]  ;;  %v5494_v19 = vld [vmem:[#allocation38_spill] sm:$0xff] }
  0xeb   :  { %v4948_v18 = vsel %vm1244_vm0, %v1857_v63, %v1858_v12  ;;  %v4966_v1 = vsel %vm1244_vm0, %v1881_v39, %v1882_v50  ;;  %v4969_v11 = vsel %vm1244_vm0, %v1884_v43, %v1885_v29  ;;  %v595_v9 = vmax.f32 %v563_v40, 0.0  ;;  %2010 = vmatpush.bf16.msra.mxu1 %v3286_v35  ;;  %v5493_v40 = vld [vmem:[#allocation37_spill] sm:$0xff] }
  0xec   :  { %1159 = vmatmul.bf16.gmra.mxu1 %v5488_v31  ;;  %5489 = vst [vmem:[#allocation7_spill] sm:$0xff] %v4966_v1  ;;  %v338_v31 = vmul.f32 %v4943_v8, %v194_v42  ;;  %v4972_v14 = vpop.permute.xlu1 %295  ;;  %v393_v12 = vadd.f32 %v4476_v5, %v375_v4  ;;  %v1864_v39 = vrot.slane %v720_v28, 1  ;;  %v565_v29 = vadd.f32 %v4476_v5, %v533_v7  ;;  %v5492_v42 = vld [vmem:[#allocation34_spill] sm:$0xff] }
  0xed   :  { %5490 = vst [vmem:[#allocation30_spill] sm:$0xff] %v4969_v11  ;;  %v4977_v45 = vmul.f32 %v4972_v14, %v193_v38  ;;  %v1863_v49 = vrot.slane %v5492_v42, 1  ;;  %v581_v10 = vadd.f32 %v4476_v5, %v549_v47  ;;  %v1866_v63 = vrot.slane %v5493_v40, 1  ;;  %v5496_v7 = vld [vmem:[#allocation26_spill] sm:$0xff]  ;;  %v3310_v47 = vld [vmem:[%s5340_s4 + $0x208] sm:$0xff]  ;;  %v3293_v40 = vld [vmem:[%s5340_s4 + $0x180] sm:$0xff] }
  0xee   :  { %v689_v59 = vpop.permute.xlu0 %688  ;;  %v2433_v38 = vrot.slane %v338_v31, 1  ;;  %v1890_v4 = vrot.slane %v5494_v19, 1  ;;  %v724_v48 = vmul.f32 %v4791_v13, %v595_v9  ;;  %v411_v28 = vmax.f32 %v393_v12, 0.0  ;;  %2532 = vmatpush.bf16.msra.mxu0 %v3310_v47  ;;  %2181 = vmatpush.bf16.msra.mxu2 %v3293_v40  ;;  %v3285_v47 = vld [vmem:[%s5340_s4 + $0x140] sm:$0xff]  ;;  %v5521_v9 = vld [vmem:[#allocation22_spill] sm:$0xff] }
  0xef   :  { %5491 = vst [vmem:[#allocation29_spill] sm:$0xff] %v4977_v45  ;;  %v722_v50 = vmul.f32 %v689_v59, %v593_v53  ;;  %v738_v43 = vmul.f32 %v689_v59, %v609_v22  ;;  %v2432_v30 = vrot.slane %v4977_v45, 1  ;;  %v5495_v22 = vpack.c.bf16 %v4319_v26, %v5485_v34  ;;  %v5497_v53 = vld [vmem:[#allocation18_spill] sm:$0xff]  ;;  %2011 = vmatpush.bf16.msra.mxu1 %v3285_v47  ;;  %v5507_v40 = vld [vmem:[#allocation31_spill] sm:$0xff] }
  0xf0   :  { %v5498_v35 = vpack.c.bf16 %v5496_v7, %v5497_v53  ;;  %v597_v59 = vmax.f32 %v565_v29, 0.0  ;;  %v613_v26 = vmax.f32 %v581_v10, 0.0  ;;  %v1870_v42 = vrot.slane %v724_v48, 1  ;;  %v5502_v53 = vld [vmem:[#allocation33_spill] sm:$0xff] }
  0xf1   :  { %v1867_v1 = vrot.slane %v722_v50, 1  ;;  %v1891_v11 = vrot.slane %v738_v43, 1  ;;  %v4997_v31 = vsel %vm1244_vm0, %v2432_v30, %v2433_v38  ;;  %v5000_v50 = vsel %vm1244_vm0, %v1863_v49, %v1864_v39  ;;  %v5503_v48 = vld [vmem:[#allocation21_spill] sm:$0xff] }
  0xf2   :  { %5499 = vst [vmem:[#allocation24_spill] sm:$0xff] %v4997_v31  ;;  %v1872_v38 = vrot.slane %v4670_v17, 1 }
  0xf3   :  { %1601 = vmatmul.bf16.gmra.mxu3 %v5495_v22  ;;  %1766 = vmatmul.bf16.gmra.mxu0 %v5498_v35  ;;  %v5003_v13 = vsel %vm1244_vm0, %v1866_v63, %v1867_v1  ;;  %v5010_v12 = vsel %vm1244_vm0, %v1890_v4, %v1891_v11  ;;  %v5500_v63 = vld [vmem:[#allocation28_spill] sm:$0xff]  ;;  %v1896_v4 = vrot.slane %v4675_v61, 1  ;;  %v5504_v35 = vpack.c.bf16 %v5502_v53, %v5503_v48 }
  0xf4   :  { %v5012_v43 = vpop.permute.xlu1 %464  ;;  %v5501_v1 = vpack.c.bf16 %v4157_v16, %v5500_v63 }
  0xf5   :  { %v5017_v29 = vmul.f32 %v5012_v43, %v411_v28  ;;  %v1869_v28 = vrot.slane %v4720_v41, 1 }
  0xf6   :  { %1431 = vmatmul.bf16.gmra.mxu2 %v5501_v1  ;;  %v709_v10 = vpop.permute.xlu0 %708  ;;  %v5517_v1 = vpack.c.bf16 %v4798_v56, %v4803_v0 }
  0xf7   :  { %v726_v11 = vmul.f32 %v709_v10, %v597_v59  ;;  %v742_v30 = vmul.f32 %v709_v10, %v613_v26  ;;  %v3301_v59 = vld [vmem:[%s5340_s4 + $0x1c0] sm:$0xff]  ;;  %v5040_v17 = vsel %vm1244_vm0, %v1869_v28, %v1870_v42  ;;  %v5506_v42 = vpack.c.bf16 %v5494_v19, %v4454_v20 }
  0xf8   :  { %2351 = vmatpush.bf16.msra.mxu3 %v3301_v59  ;;  %v5512_v19 = vpack.c.bf16 %v4568_v24, %v4556_v54 }
  0xf9   :  { %v1873_v22 = vrot.slane %v726_v11, 1  ;;  %v1897_v7 = vrot.slane %v742_v30, 1 }
  0xfb   :  { %v5043_v41 = vsel %vm1244_vm0, %v1872_v38, %v1873_v22  ;;  %v5046_v26 = vsel %vm1244_vm0, %v1896_v4, %v1897_v7  ;;  %v5508_v38 = vld [vmem:[#allocation32_spill] sm:$0xff]  ;;  %v3309_v4 = vld [vmem:[%s5340_s4 + $0x200] sm:$0xff] }
  0xfc   :  { %1164 = vmatmul.bf16.gmra.mxu1 %v5504_v35  ;;  %5505 = vst [vmem:[#allocation34_spill] sm:$0xff] %v5046_v26  ;;  %v5509_v28 = vpack.c.bf16 %v5507_v40, %v5508_v38  ;;  %2533 = vmatpush.bf16.msra.mxu0 %v3309_v4  ;;  %v5510_v7 = vld [vmem:[#allocation39_spill] sm:$0xff]  ;;  %v5513_v4 = vpack.c.bf16 %v4675_v61, %v4732_v60 }
  0xfd   :  { %v5511_v35 = vpack.c.bf16 %v4708_v3, %v5510_v7  ;;  %v5524_v26 = vld [vmem:[#allocation11_spill] sm:$0xff] }
  0xfe   :  { %v5052_v11 = vpop.f32.mrf.mxu1 }
 0x100   :  { %v970_v30 = vpop.f32.mrf.mxu0 }
 0x103   :  { %1606 = vmatmul.bf16.gmra.mxu3 %v5506_v42  ;;  %1771 = vmatmul.bf16.gmra.mxu0 %v5509_v28 }
 0x104   :  { %v5063_v22 = vpop.f32.mrf.mxu3 }
 0x106   :  { %1436 = vmatmul.bf16.gmra.mxu2 %v5511_v35  ;;  %v5068_v59 = vpop.f32.mrf.mxu2  ;;  %v5070_v47 = vpop.f32.mrf.mxu1  ;;  %v5514_v35 = vpack.c.bf16 %v4728_v46, %v4730_v58 }
 0x108   :  { %v972_v20 = vpop.f32.mrf.mxu0 }
 0x10c   :  { %1169 = vmatmul.bf16.gmra.mxu1 %v5512_v19  ;;  %v5075_v42 = vpop.f32.mrf.mxu3  ;;  %v5516_v19 = vpack.c.bf16 %v4815_v57, %v4767_v44 }
 0x10e   :  { %v5077_v40 = vpop.f32.mrf.mxu2  ;;  %v5079_v38 = vpop.f32.mrf.mxu1 }
 0x110   :  { %v975_v28 = vpop.f32.mrf.mxu0 }
 0x113   :  { %1611 = vmatmul.bf16.gmra.mxu3 %v5513_v4  ;;  %1776 = vmatmul.bf16.gmra.mxu0 %v5514_v35  ;;  %v5519_v35 = vpack.c.bf16 %v4870_v33, %v4841_v25 }
 0x114   :  { %v5087_v34 = vpop.f32.mrf.mxu3 }
 0x115   :  { %5515 = vst [vmem:[#allocation37_spill] sm:$0xff] %v5087_v34  ;;  %v5525_v34 = vpack.c.bf16 %v5523_v2, %v5524_v26  ;;  %v5532_v26 = vld [vmem:[#allocation3_spill] sm:$0xff] }
 0x116   :  { %1441 = vmatmul.bf16.gmra.mxu2 %v5516_v19  ;;  %v5092_v10 = vpop.f32.mrf.mxu2  ;;  %v5094_v49 = vpop.f32.mrf.mxu1  ;;  %v5520_v19 = vld [vmem:[#allocation20_spill] sm:$0xff] }
 0x117   :  { %v5522_v57 = vpack.c.bf16 %v5520_v19, %v5521_v9 }
 0x118   :  { %v977_v39 = vpop.f32.mrf.mxu0 }
 0x11c   :  { %1174 = vmatmul.bf16.gmra.mxu1 %v5517_v1  ;;  %v5099_v61 = vpop.f32.mrf.mxu3 }
 0x11d   :  { %5518 = vst [vmem:[#allocation38_spill] sm:$0xff] %v5099_v61 }
 0x11e   :  { %v5101_v60 = vpop.f32.mrf.mxu2  ;;  %v1140_v46 = vpop.f32.mrf.mxu1 }
 0x11f   :  { %v1180_v58 = vadd.f32 %v1140_v46, %v970_v30  ;;  %v5526_v30 = vpack.c.bf16 %v4889_v52, %v4899_v37  ;;  %v5531_v37 = vld [vmem:[#allocation4_spill] sm:$0xff] }
 0x120   :  { %v1747_v4 = vpop.f32.mrf.mxu0 }
 0x123   :  { %1781 = vmatmul.bf16.gmra.mxu0 %v5519_v35  ;;  %2352 = vmatmul.bf16.vlgmr.msra.gmra.mxu3 %v5522_v57 }
 0x124   :  { %v1577_v31 = vpop.f32.mrf.mxu3 }
 0x126   :  { %2182 = vmatmul.bf16.vlgmr.msra.gmra.mxu2 %v5525_v34  ;;  %v1407_v1 = vpop.f32.mrf.mxu2  ;;  %v1142_v61 = vpop.f32.mrf.mxu1  ;;  %v5527_v34 = vpack.c.bf16 %v4554_v55, %v4393_v15 }
 0x127   :  { %v1447_v45 = vadd.f32 %v1407_v1, %v1180_v58  ;;  %v1181_v9 = vadd.f32 %v1142_v61, %v972_v20  ;;  %v5533_v58 = vpack.c.bf16 %v5531_v37, %v5532_v26 }
 0x128   :  { %v5117_v33 = vpop.f32.mrf.mxu0 }
 0x129   :  { %v1617_v3 = vadd.f32 %v1577_v31, %v1447_v45  ;;  %v5528_v45 = vld [vmem:[#allocation27_spill] sm:$0xff]  ;;  %v5529_v31 = vld [vmem:[#allocation25_spill] sm:$0xff] }
 0x12a   :  { %v5530_v52 = vpack.c.bf16 %v5528_v45, %v5529_v31  ;;  %v5535_v31 = vpack.c.bf16 %v4801_v23, %v4549_v51 }
 0x12b   :  { %v5115_v46 = vadd.f32 %v1747_v4, %v1617_v3 }
 0x12c   :  { %2012 = vmatmul.bf16.vlgmr.msra.gmra.mxu1 %v5526_v30  ;;  %v1579_v25 = vpop.f32.mrf.mxu3  ;;  %v5534_v30 = vpack.c.bf16 %v4951_v62, %v4948_v18 }
 0x12e   :  { %v1409_v57 = vpop.f32.mrf.mxu2 }
 0x12f   :  { %v1448_v35 = vadd.f32 %v1409_v57, %v1181_v9 }
 0x130   :  { %v1145_v19 = vpop.f32.mrf.mxu1  ;;  %v1752_v20 = vpop.f32.mrf.mxu0 }
 0x131   :  { %v1182_v44 = vadd.f32 %v1145_v19, %v975_v28  ;;  %v5119_v2 = vadd.f32 %v1579_v25, %v1448_v35  ;;  %v2736_v25 = vld [vmem:[%s5341_s0 + $0x1a0] sm:$0xff] }
 0x133   :  { %2357 = vmatmul.bf16.gmra.mxu3 %v5527_v34  ;;  %2534 = vmatmul.bf16.vlgmr.msra.gmra.mxu0 %v5530_v52  ;;  %v366_v34 = vmul.f32 %v4445_v6, %v2736_v25 }
 0x134   :  { %v1582_v3 = vpop.f32.mrf.mxu3 }
 0x135   :  { %v384_v37 = vadd.f32 %v4476_v5, %v366_v34 }
 0x136   :  { %2187 = vmatmul.bf16.gmra.mxu2 %v5533_v58  ;;  %v5537_v58 = vld [vmem:[#allocation16_spill] sm:$0xff] }
 0x137   :  { %v1412_v61 = vpop.f32.mrf.mxu2 }
 0x138   :  { %v1449_v4 = vadd.f32 %v1412_v61, %v1182_v44  ;;  %v1147_v1 = vpop.f32.mrf.mxu1  ;;  %v61_v44 = vld [vmem:[%s5341_s0 + $0x80] sm:$0xff]  ;;  %v1754_v45 = vpop.f32.mrf.mxu0 }
 0x139   :  { %v1183_v9 = vadd.f32 %v1147_v1, %v977_v39  ;;  %v5536_v39 = vpack.c.bf16 %v4527_v27, %v4379_v36  ;;  %v100_v52 = vmul.f32 %v4445_v6, %v61_v44  ;;  %v62_v27 = vld [vmem:[%s5341_s0 + $0x88] sm:$0x1]  ;;  %v402_v36 = vmax.f32 %v384_v37, 0.0 }
 0x13a   :  { %v1619_v28 = vadd.f32 %v1582_v3, %v1449_v4 }
 0x13b   :  { %v139_v4 = vadd.f32 %v4476_v5, %v100_v52  ;;  %v5542_v52 = vld [vmem:[#allocation35_spill] sm:$0xff] }
 0x13c   :  { %2017 = vmatmul.bf16.gmra.mxu1 %v5534_v30  ;;  %v5133_v15 = vadd.f32 %v1752_v20, %v1619_v28  ;;  %v1584_v55 = vpop.f32.mrf.mxu3  ;;  %v5538_v20 = vld [vmem:[#allocation9_spill] sm:$0xff]  ;;  %v101_v30 = vmul.f32 %v4445_v6, %v62_v27 }
 0x13d   :  { %v5539_v61 = vpack.c.bf16 %v5537_v58, %v5538_v20 }
 0x13e   :  { %v140_v34 = vadd.f32 %v4476_v5, %v101_v30  ;;  %v5546_v30 = vld [vmem:[#allocation41_spill] sm:$0xff] }
 0x13f   :  { %v1414_v57 = vpop.f32.mrf.mxu2 }
 0x140   :  { %v1450_v35 = vadd.f32 %v1414_v57, %v1183_v9  ;;  %v1150_v19 = vpop.f32.mrf.mxu1  ;;  %v5540_v9 = vpack.c.bf16 %v5003_v13, %v5000_v50  ;;  %v475_v57 = vmul.f32 %v5012_v43, %v402_v36  ;;  %v176_v13 = vmax.f32 %v140_v34, 0.0  ;;  %v5544_v43 = vld [vmem:[#allocation14_spill] sm:$0xff] }
 0x141   :  { %v1184_v18 = vadd.f32 %v1150_v19, %v5052_v11 }
 0x142   :  { %v1620_v62 = vadd.f32 %v1584_v55, %v1450_v35  ;;  %v175_v55 = vmax.f32 %v139_v4, 0.0  ;;  %v2274_v6 = vpack.c.bf16 %v475_v57, %v4789_v21  ;;  %v320_v5 = vmul.f32 %v4943_v8, %v176_v13 }
 0x143   :  { %2362 = vmatmul.bf16.gmra.mxu3 %v5535_v31  ;;  %2539 = vmatmul.bf16.gmra.mxu0 %v5536_v39  ;;  %v5541_v39 = vld [vmem:[#allocation36_spill] sm:$0xff]  ;;  %v5545_v4 = vpack.c.bf16 %v5043_v41, %v5040_v17 }
 0x144   :  { %v5150_v3 = vadd.f32 %v1754_v45, %v1620_v62  ;;  %v319_v45 = vmul.f32 %v4972_v14, %v175_v55  ;;  %v5543_v50 = vpack.c.bf16 %v5541_v39, %v5542_v52  ;;  %v5552_v39 = vld [vmem:[#allocation44_spill] sm:$0xff]  ;;  %v5553_v52 = vld [vmem:[#allocation46_spill] sm:$0xff] }
 0x146   :  { %v1587_v26 = vpop.f32.mrf.mxu3  ;;  %2192 = vmatmul.bf16.gmra.mxu2 %v5539_v61  ;;  %v2104_v37 = vpack.c.bf16 %v319_v45, %v5544_v43  ;;  %v2429_v20 = vrot.slane %v319_v45, 1  ;;  %v2430_v61 = vrot.slane %v320_v5, 1 }
 0x147   :  { %v1417_v11 = vpop.f32.mrf.mxu2 }
 0x148   :  { %v1451_v51 = vadd.f32 %v1417_v11, %v1184_v18  ;;  %v1757_v23 = vpop.f32.mrf.mxu0  ;;  %v1152_v28 = vpop.f32.mrf.mxu1  ;;  %v2431_v36 = vsel %vm1244_vm0, %v2429_v20, %v2430_v61 }
 0x149   :  { %v1185_v35 = vadd.f32 %v1152_v28, %v5070_v47  ;;  %v2456_v55 = vpack.c.bf16 %v2431_v36, %v5546_v30  ;;  %v5562_v30 = vld [vmem:[#allocation7_spill] sm:$0xff] }
 0x14a   :  { %v1621_v1 = vadd.f32 %v1587_v26, %v1451_v51 }
 0x14c   :  { %v5161_v25 = vadd.f32 %v1757_v23, %v1621_v1  ;;  %2022 = vmatmul.bf16.gmra.mxu1 %v5540_v9 }
 0x14e   :  { %v1589_v19 = vpop.f32.mrf.mxu3 }
 0x14f   :  { %v1419_v44 = vpop.f32.mrf.mxu2 }
 0x150   :  { %v1452_v18 = vadd.f32 %v1419_v44, %v1185_v35  ;;  %v1759_v31 = vpop.f32.mrf.mxu0  ;;  %v5549_v35 = vld [vmem:[#allocation6_spill] sm:$0xff] }
 0x152   :  { %v1622_v62 = vadd.f32 %v1589_v19, %v1452_v18  ;;  %v5550_v19 = vld [vmem:[#allocation12_spill] sm:$0xff] }
 0x153   :  { %2367 = vmatmul.bf16.gmra.mxu3 %v2274_v6  ;;  %2544 = vmatmul.bf16.gmra.mxu0 %v5543_v50  ;;  %v5551_v44 = vpack.c.bf16 %v5549_v35, %v5550_v19  ;;  %v5564_v19 = vpack.c.bf16 %v4803_v0, %v4568_v24  ;;  %v5569_v0 = vpack.c.bf16 %v5010_v12, %v4864_v32  ;;  %v5575_v32 = vld [vmem:[#allocation29_spill] sm:$0xff] }
 0x154   :  { %v5175_v47 = vadd.f32 %v1759_v31, %v1622_v62 }
 0x156   :  { %v1592_v26 = vpop.f32.mrf.mxu3  ;;  %2197 = vmatmul.bf16.gmra.mxu2 %v2104_v37 }
 0x158   :  { %v1155_v14 = vpop.f32.mrf.mxu1 }
 0x159   :  { %v1422_v58 = vpop.f32.mrf.mxu2  ;;  %v1186_v21 = vadd.f32 %v1155_v14, %v5079_v38  ;;  %v5547_v38 = vld [vmem:[#allocation23_spill] sm:$0xff] }
 0x15a   :  { %v5548_v57 = vpack.c.bf16 %v5503_v48, %v5547_v38  ;;  %v5554_v48 = vpack.c.bf16 %v5552_v39, %v5553_v52 }
 0x15b   :  { %v1453_v11 = vadd.f32 %v1422_v58, %v1186_v21  ;;  %v5555_v58 = vpack.c.bf16 %v4556_v54, %v5502_v53  ;;  %v5561_v53 = vld [vmem:[#allocation30_spill] sm:$0xff] }
 0x15c   :  { %2027 = vmatmul.bf16.gmra.mxu1 %v5545_v4  ;;  %v5559_v4 = vld [vmem:[#allocation13_spill] sm:$0xff] }
 0x15d   :  { %v1623_v27 = vadd.f32 %v1592_v26, %v1453_v11  ;;  %v5558_v11 = vld [vmem:[#allocation8_spill] sm:$0xff] }
 0x15e   :  { %v1594_v51 = vpop.f32.mrf.mxu3 }
 0x160   :  { %v1762_v23 = vpop.f32.mrf.mxu0  ;;  %v1157_v1 = vpop.f32.mrf.mxu1 }
 0x161   :  { %v5183_v28 = vadd.f32 %v1762_v23, %v1623_v27  ;;  %v1424_v8 = vpop.f32.mrf.mxu2  ;;  %v1187_v9 = vadd.f32 %v1157_v1, %v5094_v49 }
 0x163   :  { %2372 = vmatmul.bf16.gmra.mxu3 %v5548_v57  ;;  %2549 = vmatmul.bf16.gmra.mxu0 %v2456_v55  ;;  %v1454_v17 = vadd.f32 %v1424_v8, %v1187_v9  ;;  %v5563_v55 = vpack.c.bf16 %v5561_v53, %v5562_v30 }
 0x165   :  { %v1624_v34 = vadd.f32 %v1594_v51, %v1454_v17  ;;  %v5560_v51 = vpack.c.bf16 %v5558_v11, %v5559_v4 }
 0x166   :  { %v1597_v41 = vpop.f32.mrf.mxu3  ;;  %2202 = vmatmul.bf16.gmra.mxu2 %v5551_v44 }
 0x168   :  { %v1764_v45 = vpop.f32.mrf.mxu0 }
 0x169   :  { %v1160_v18 = vpop.f32.mrf.mxu1  ;;  %v5193_v6 = vadd.f32 %v1764_v45, %v1624_v34  ;;  %v1427_v62 = vpop.f32.mrf.mxu2  ;;  %v5566_v45 = vld [vmem:[#allocation17_spill] sm:$0xff] }
 0x16a   :  { %v1188_v31 = vadd.f32 %v1160_v18, %v5068_v59  ;;  %v5556_v59 = vld [vmem:[#allocation19_spill] sm:$0xff]  ;;  %v5567_v18 = vld [vmem:[#allocation10_spill] sm:$0xff] }
 0x16b   :  { %v5557_v20 = vpack.c.bf16 %v5500_v63, %v5556_v59 }
 0x16c   :  { %v1455_v49 = vadd.f32 %v1427_v62, %v1188_v31  ;;  %2032 = vmatmul.bf16.gmra.mxu1 %v5554_v48  ;;  %v5568_v62 = vpack.c.bf16 %v5566_v45, %v5567_v18 }
 0x16e   :  { %v1599_v50 = vpop.f32.mrf.mxu3  ;;  %v1625_v13 = vadd.f32 %v1597_v41, %v1455_v49 }
 0x170   :  { %v1767_v43 = vpop.f32.mrf.mxu0 }
 0x171   :  { %v1162_v37 = vpop.f32.mrf.mxu1  ;;  %v5199_v26 = vadd.f32 %v1767_v43, %v1625_v13  ;;  %v1429_v5 = vpop.f32.mrf.mxu2 }
 0x172   :  { %v1189_v14 = vadd.f32 %v1162_v37, %v5077_v40 }
 0x173   :  { %2377 = vmatmul.bf16.gmra.mxu3 %v5555_v58  ;;  %2554 = vmatmul.bf16.gmra.mxu0 %v5557_v20  ;;  %v5571_v58 = vld [vmem:[#allocation42_spill] sm:$0xff]  ;;  %v5574_v20 = vld [vmem:[#allocation15_spill] sm:$0xff] }
 0x174   :  { %v1456_v21 = vadd.f32 %v1429_v5, %v1189_v14  ;;  %v5570_v14 = vpack.c.bf16 %v5017_v29, %v4798_v56  ;;  %v2108_v12 = vpack.c.bf16 %v5575_v32, %v5574_v20  ;;  %v5577_v29 = vld [vmem:[#allocation34_spill] sm:$0xff] }
 0x176   :  { %v1602_v61 = vpop.f32.mrf.mxu3  ;;  %2207 = vmatmul.bf16.gmra.mxu2 %v5560_v51  ;;  %v1626_v27 = vadd.f32 %v1599_v50, %v1456_v21 }
 0x178   :  { %v1769_v36 = vpop.f32.mrf.mxu0 }
 0x179   :  { %v1165_v23 = vpop.f32.mrf.mxu1  ;;  %v5211_v1 = vadd.f32 %v1769_v36, %v1626_v27  ;;  %v1432_v40 = vpop.f32.mrf.mxu2  ;;  %v5576_v36 = vld [vmem:[#allocation37_spill] sm:$0xff] }
 0x17a   :  { %v1190_v8 = vadd.f32 %v1165_v23, %v5092_v10  ;;  %v5565_v10 = vpack.c.bf16 %v5510_v7, %v4157_v16 }
 0x17c   :  { %v1457_v54 = vadd.f32 %v1432_v40, %v1190_v8  ;;  %2037 = vmatmul.bf16.gmra.mxu1 %v5563_v55  ;;  %v5578_v40 = vld [vmem:[#allocation45_spill] sm:$0xff] }
 0x17d   :  { %v5579_v8 = vpack.c.bf16 %v5577_v29, %v5578_v40 }
 0x17e   :  { %v1604_v63 = vpop.f32.mrf.mxu3  ;;  %v1627_v9 = vadd.f32 %v1602_v61, %v1457_v54 }
 0x180   :  { %v1772_v38 = vpop.f32.mrf.mxu0 }
 0x181   :  { %v1167_v57 = vpop.f32.mrf.mxu1  ;;  %v5217_v17 = vadd.f32 %v1772_v38, %v1627_v9  ;;  %v1434_v41 = vpop.f32.mrf.mxu2  ;;  %v5580_v38 = vld [vmem:[#allocation38_spill] sm:$0xff] }
 0x182   :  { %v1191_v35 = vadd.f32 %v1167_v57, %v5101_v60 }
 0x183   :  { %2382 = vmatmul.bf16.gmra.mxu3 %v5564_v19  ;;  %2559 = vmatmul.bf16.gmra.mxu0 %v5565_v10 }
 0x184   :  { %v1458_v44 = vadd.f32 %v1434_v41, %v1191_v35  ;;  %v5581_v41 = vld [vmem:[#allocation24_spill] sm:$0xff]  ;;  %v5582_v35 = vld [vmem:[#allocation43_spill] sm:$0xff] }
 0x185   :  { %v5583_v19 = vpack.c.bf16 %v5581_v41, %v5582_v35 }
 0x186   :  { %v1607_v34 = vpop.f32.mrf.mxu3  ;;  %2212 = vmatmul.bf16.gmra.mxu2 %v5568_v62  ;;  %v1628_v31 = vadd.f32 %v1604_v63, %v1458_v44 }
 0x188   :  { %v1774_v49 = vpop.f32.mrf.mxu0 }
 0x189   :  { %v1170_v39 = vpop.f32.mrf.mxu1  ;;  %v5229_v52 = vadd.f32 %v1774_v49, %v1628_v31  ;;  %v1437_v60 = vpop.f32.mrf.mxu2 }
 0x18a   :  { %v1192_v48 = vadd.f32 %v1170_v39, %v5063_v22  ;;  %v5572_v22 = vld [vmem:[#allocation40_spill] sm:$0xff] }
 0x18b   :  { %v5573_v59 = vpack.c.bf16 %v5571_v58, %v5572_v22 }
 0x18c   :  { %v1459_v24 = vadd.f32 %v1437_v60, %v1192_v48  ;;  %2042 = vmatmul.bf16.gmra.mxu1 %v5569_v0 }
 0x18e   :  { %v1609_v16 = vpop.f32.mrf.mxu3  ;;  %v1629_v7 = vadd.f32 %v1607_v34, %v1459_v24  ;;  %v1788_v24 = vadd.f32 %v5117_v33, %v5119_v2 }
 0x190   :  { %v1777_v50 = vpop.f32.mrf.mxu0 }
 0x191   :  { %v1172_v13 = vpop.f32.mrf.mxu1  ;;  %v5235_v43 = vadd.f32 %v1777_v50, %v1629_v7  ;;  %v1439_v37 = vpop.f32.mrf.mxu2 }
 0x192   :  { %v1193_v5 = vadd.f32 %v1172_v13, %v5075_v42 }
 0x193   :  { %2387 = vmatmul.bf16.gmra.mxu3 %v5570_v14  ;;  %2564 = vmatmul.bf16.gmra.mxu0 %v5573_v59 }
 0x194   :  { %v1460_v21 = vadd.f32 %v1439_v37, %v1193_v5 }
 0x196   :  { %v1612_v61 = vpop.f32.mrf.mxu3  ;;  %2217 = vmatmul.bf16.gmra.mxu2 %v2108_v12  ;;  %v1630_v11 = vadd.f32 %v1609_v16, %v1460_v21 }
 0x198   :  { %v1779_v4 = vpop.f32.mrf.mxu0 }
 0x199   :  { %v1175_v51 = vpop.f32.mrf.mxu1  ;;  %v5246_v27 = vadd.f32 %v1779_v4, %v1630_v11  ;;  %v1442_v42 = vpop.f32.mrf.mxu2 }
 0x19a   :  { %v1194_v23 = vadd.f32 %v1175_v51, %v5576_v36 }
 0x19c   :  { %v1461_v56 = vadd.f32 %v1442_v42, %v1194_v23  ;;  %2047 = vmatmul.bf16.gmra.mxu1 %v5579_v8 }
 0x19e   :  { %v1614_v54 = vpop.f32.mrf.mxu3  ;;  %v1631_v53 = vadd.f32 %v1612_v61, %v1461_v56 }
 0x1a0   :  { %v1782_v30 = vpop.f32.mrf.mxu0 }
 0x1a1   :  { %v1177_v55 = vpop.f32.mrf.mxu1  ;;  %v5252_v63 = vadd.f32 %v1782_v30, %v1631_v53  ;;  %v1444_v9 = vpop.f32.mrf.mxu2 }
 0x1a2   :  { %v1195_v57 = vadd.f32 %v1177_v55, %v5580_v38 }
 0x1a3   :  { %2569 = vmatmul.bf16.gmra.mxu0 %v5583_v19 }
 0x1a4   :  { %v1462_v10 = vadd.f32 %v1444_v9, %v1195_v57 }
 0x1a6   :  { %v2353_v44 = vpop.f32.mrf.mxu3  ;;  %v1632_v34 = vadd.f32 %v1614_v54, %v1462_v10 }
 0x1a8   :  { %v1784_v45 = vpop.f32.mrf.mxu0 }
 0x1a9   :  { %v5258_v18 = vadd.f32 %v1784_v45, %v1632_v34  ;;  %v2013_v62 = vpop.f32.mrf.mxu1  ;;  %v2183_v31 = vpop.f32.mrf.mxu2 }
 0x1aa   :  { %v2053_v49 = vadd.f32 %v2013_v62, %v5115_v46 }
 0x1ac   :  { %v2223_v39 = vadd.f32 %v2183_v31, %v2053_v49 }
 0x1ae   :  { %v2355_v60 = vpop.f32.mrf.mxu3  ;;  %v2393_v48 = vadd.f32 %v2353_v44, %v2223_v39 }
 0x1b0   :  { %v2535_v0 = vpop.f32.mrf.mxu0 }
 0x1b1   :  { %v2015_v16 = vpop.f32.mrf.mxu1  ;;  %v2575_v7 = vadd.f32 %v2535_v0, %v2393_v48  ;;  %v2185_v50 = vpop.f32.mrf.mxu2 }
 0x1b2   :  { %v2054_v13 = vadd.f32 %v2015_v16, %v1788_v24 }
 0x1b3   :  { %2700 = vst [vmem:[%s5342_s5] sm:$0xff] %v2575_v7  ;;  %v2640_v32 = vmul.f32 %v2575_v7, %v2575_v7 }
 0x1b4   :  { %v2224_v37 = vadd.f32 %v2185_v50, %v2054_v13 }
 0x1b6   :  { %v2358_v5 = vpop.f32.mrf.mxu3  ;;  %v2394_v14 = vadd.f32 %v2355_v60, %v2224_v37 }
 0x1b8   :  { %v2537_v58 = vpop.f32.mrf.mxu0 }
 0x1b9   :  { %v2018_v46 = vpop.f32.mrf.mxu1  ;;  %v2576_v22 = vadd.f32 %v2537_v58, %v2394_v14  ;;  %v2188_v59 = vpop.f32.mrf.mxu2 }
 0x1ba   :  { %v2055_v20 = vadd.f32 %v2018_v46, %v5133_v15 }
 0x1bb   :  { %v2626_v33 = vadd.f32 %v2576_v22, %v2575_v7  ;;  %v2641_v2 = vmul.f32 %v2576_v22, %v2576_v22  ;;  %2701 = vst [vmem:[%s5342_s5 + $0x8] sm:$0xff] %v2576_v22 }
 0x1bc   :  { %v2225_v12 = vadd.f32 %v2188_v59, %v2055_v20 }
 0x1bd   :  { %v2648_v21 = vadd.f32 %v2641_v2, %v2640_v32 }
 0x1be   :  { %v2360_v61 = vpop.f32.mrf.mxu3  ;;  %v2395_v11 = vadd.f32 %v2358_v5, %v2225_v12 }
 0x1c0   :  { %v2540_v4 = vpop.f32.mrf.mxu0 }
 0x1c1   :  { %v2020_v51 = vpop.f32.mrf.mxu1  ;;  %v2577_v42 = vadd.f32 %v2540_v4, %v2395_v11  ;;  %v2190_v36 = vpop.f32.mrf.mxu2 }
 0x1c2   :  { %v2056_v23 = vadd.f32 %v2020_v51, %v5150_v3 }
 0x1c3   :  { %v2627_v56 = vadd.f32 %v2626_v33, %v2577_v42  ;;  %v2642_v29 = vmul.f32 %v2577_v42, %v2577_v42  ;;  %2702 = vst [vmem:[%s5342_s5 + $0x10] sm:$0xff] %v2577_v42 }
 0x1c4   :  { %v2226_v15 = vadd.f32 %v2190_v36, %v2056_v23 }
 0x1c5   :  { %v2649_v40 = vadd.f32 %v2648_v21, %v2642_v29 }
 0x1c6   :  { %v2363_v8 = vpop.f32.mrf.mxu3  ;;  %v2396_v54 = vadd.f32 %v2360_v61, %v2226_v15 }
 0x1c8   :  { %v2542_v53 = vpop.f32.mrf.mxu0 }
 0x1c9   :  { %v2023_v30 = vpop.f32.mrf.mxu1  ;;  %v2578_v55 = vadd.f32 %v2542_v53, %v2396_v54  ;;  %v2193_v9 = vpop.f32.mrf.mxu2 }
 0x1ca   :  { %v2057_v38 = vadd.f32 %v2023_v30, %v5161_v25 }
 0x1cb   :  { %v2628_v57 = vadd.f32 %v2627_v56, %v2578_v55  ;;  %v2643_v41 = vmul.f32 %v2578_v55, %v2578_v55  ;;  %2703 = vst [vmem:[%s5342_s5 + $0x18] sm:$0xff] %v2578_v55 }
 0x1cc   :  { %v2227_v3 = vadd.f32 %v2193_v9, %v2057_v38 }
 0x1cd   :  { %v2650_v35 = vadd.f32 %v2649_v40, %v2643_v41 }
 0x1ce   :  { %v2365_v19 = vpop.f32.mrf.mxu3  ;;  %v2397_v10 = vadd.f32 %v2363_v8, %v2227_v3 }
 0x1d0   :  { %v2545_v44 = vpop.f32.mrf.mxu0 }
 0x1d1   :  { %v2025_v34 = vpop.f32.mrf.mxu1  ;;  %v2579_v45 = vadd.f32 %v2545_v44, %v2397_v10  ;;  %v2195_v62 = vpop.f32.mrf.mxu2 }
 0x1d2   :  { %v2058_v31 = vadd.f32 %v2025_v34, %v5175_v47 }
 0x1d3   :  { %v2629_v49 = vadd.f32 %v2628_v57, %v2579_v45  ;;  %v2644_v39 = vmul.f32 %v2579_v45, %v2579_v45  ;;  %2704 = vst [vmem:[%s5342_s5 + $0x20] sm:$0xff] %v2579_v45 }
 0x1d4   :  { %v2228_v25 = vadd.f32 %v2195_v62, %v2058_v31 }
 0x1d5   :  { %v2651_v60 = vadd.f32 %v2650_v35, %v2644_v39 }
 0x1d6   :  { %v2368_v48 = vpop.f32.mrf.mxu3  ;;  %v2398_v24 = vadd.f32 %v2365_v19, %v2228_v25 }
 0x1d8   :  { %v2547_v0 = vpop.f32.mrf.mxu0 }
 0x1d9   :  { %v2028_v16 = vpop.f32.mrf.mxu1  ;;  %v2580_v7 = vadd.f32 %v2547_v0, %v2398_v24  ;;  %v2198_v50 = vpop.f32.mrf.mxu2 }
 0x1da   :  { %v2059_v13 = vadd.f32 %v2028_v16, %v5183_v28 }
 0x1db   :  { %v2630_v37 = vadd.f32 %v2629_v49, %v2580_v7  ;;  %v2645_v5 = vmul.f32 %v2580_v7, %v2580_v7  ;;  %2705 = vst [vmem:[%s5342_s5 + $0x28] sm:$0xff] %v2580_v7 }
 0x1dc   :  { %v2229_v47 = vadd.f32 %v2198_v50, %v2059_v13 }
 0x1dd   :  { %v2652_v14 = vadd.f32 %v2651_v60, %v2645_v5 }
 0x1de   :  { %v2370_v58 = vpop.f32.mrf.mxu3  ;;  %v2399_v46 = vadd.f32 %v2368_v48, %v2229_v47 }
 0x1e0   :  { %v2550_v22 = vpop.f32.mrf.mxu0 }
 0x1e1   :  { %v2030_v59 = vpop.f32.mrf.mxu1  ;;  %v2581_v20 = vadd.f32 %v2550_v22, %v2399_v46  ;;  %v2200_v32 = vpop.f32.mrf.mxu2 }
 0x1e2   :  { %v2060_v33 = vadd.f32 %v2030_v59, %v5193_v6 }
 0x1e3   :  { %v2631_v2 = vadd.f32 %v2630_v37, %v2581_v20  ;;  %v2646_v12 = vmul.f32 %v2581_v20, %v2581_v20  ;;  %2706 = vst [vmem:[%s5342_s5 + $0x30] sm:$0xff] %v2581_v20 }
 0x1e4   :  { %v2230_v28 = vadd.f32 %v2200_v32, %v2060_v33 }
 0x1e5   :  { %v2653_v21 = vadd.f32 %v2652_v14, %v2646_v12 }
 0x1e6   :  { %v2373_v61 = vpop.f32.mrf.mxu3  ;;  %v2400_v11 = vadd.f32 %v2370_v58, %v2230_v28 }
 0x1e8   :  { %v2552_v4 = vpop.f32.mrf.mxu0 }
 0x1e9   :  { %v2033_v51 = vpop.f32.mrf.mxu1  ;;  %v2582_v42 = vadd.f32 %v2552_v4, %v2400_v11  ;;  %v2203_v36 = vpop.f32.mrf.mxu2 }
 0x1ea   :  { %v2061_v23 = vadd.f32 %v2033_v51, %v5199_v26 }
 0x1eb   :  { %v2632_v56 = vadd.f32 %v2631_v2, %v2582_v42  ;;  %v2647_v29 = vmul.f32 %v2582_v42, %v2582_v42  ;;  %2707 = vst [vmem:[%s5342_s5 + $0x38] sm:$0xff] %v2582_v42 }
 0x1ec   :  { %v2231_v6 = vadd.f32 %v2203_v36, %v2061_v23 }
 0x1ed   :  { %v2633_v15 = vrot.slane %v2632_v56, 4  ;;  %v2654_v40 = vadd.f32 %v2653_v21, %v2647_v29 }
 0x1ee   :  { %v2375_v8 = vpop.f32.mrf.mxu3  ;;  %v2401_v30 = vadd.f32 %v2373_v61, %v2231_v6 }
 0x1ef   :  { %v2634_v54 = vadd.f32 %v2633_v15, %v2632_v56  ;;  %v2655_v53 = vrot.slane %v2654_v40, 4 }
 0x1f0   :  { %v2555_v55 = vpop.f32.mrf.mxu0 }
 0x1f1   :  { %v2635_v9 = vrot.slane %v2634_v54, 2  ;;  %v2656_v38 = vadd.f32 %v2655_v53, %v2654_v40  ;;  %v2035_v57 = vpop.f32.mrf.mxu1  ;;  %v2583_v41 = vadd.f32 %v2555_v55, %v2401_v30  ;;  %v2205_v3 = vpop.f32.mrf.mxu2 }
 0x1f2   :  { %v2062_v26 = vadd.f32 %v2035_v57, %v5211_v1 }
 0x1f3   :  { %v2636_v35 = vadd.f32 %v2635_v9, %v2634_v54  ;;  %v2657_v19 = vrot.slane %v2656_v38, 2  ;;  %2708 = vst [vmem:[%s5342_s5 + $0x40] sm:$0xff] %v2583_v41  ;;  %v2677_v0 = vmul.f32 %v2583_v41, %v2583_v41 }
 0x1f4   :  { %v2232_v10 = vadd.f32 %v2205_v3, %v2062_v26 }
 0x1f5   :  { %v2637_v44 = vrot.slane %v2636_v35, 1  ;;  %v2658_v34 = vadd.f32 %v2657_v19, %v2656_v38 }
 0x1f6   :  { %v2378_v45 = vpop.f32.mrf.mxu3  ;;  %v2402_v49 = vadd.f32 %v2375_v8, %v2232_v10 }
 0x1f7   :  { %v2638_v62 = vadd.f32 %v2637_v44, %v2636_v35  ;;  %v2659_v31 = vrot.slane %v2658_v34, 1 }
 0x1f8   :  { %v2557_v39 = vpop.f32.mrf.mxu0 }
 0x1f9   :  { %2639 = vst [vmem:[%s5343_s6] sm:$0x1] %v2638_v62  ;;  %v2660_v25 = vadd.f32 %v2659_v31, %v2658_v34  ;;  %v2038_v1 = vpop.f32.mrf.mxu1  ;;  %v2584_v60 = vadd.f32 %v2557_v39, %v2402_v49  ;;  %v2208_v48 = vpop.f32.mrf.mxu2 }
 0x1fa   :  { %v2063_v24 = vadd.f32 %v2038_v1, %v5217_v17 }
 0x1fb   :  { %2661 = vst [vmem:[%s5344_s7] sm:$0x1] %v2660_v25  ;;  %v2662_v16 = vadd.f32 %v2584_v60, %v2583_v41  ;;  %v2678_v7 = vmul.f32 %v2584_v60, %v2584_v60 }
 0x1fc   :  { %2709 = vst [vmem:[%s5342_s5 + $0x48] sm:$0xff] %v2584_v60  ;;  %v2233_v50 = vadd.f32 %v2208_v48, %v2063_v24 }
 0x1fd   :  { %v2685_v13 = vadd.f32 %v2678_v7, %v2677_v0 }
 0x1fe   :  { %v2380_v37 = vpop.f32.mrf.mxu3  ;;  %v2403_v5 = vadd.f32 %v2378_v45, %v2233_v50 }
 0x200   :  { %v2560_v47 = vpop.f32.mrf.mxu0 }
 0x201   :  { %v2040_v14 = vpop.f32.mrf.mxu1  ;;  %v2585_v58 = vadd.f32 %v2560_v47, %v2403_v5  ;;  %v2210_v46 = vpop.f32.mrf.mxu2 }
 0x202   :  { %v2064_v17 = vadd.f32 %v2040_v14, %v5229_v52 }
 0x203   :  { %v2663_v22 = vadd.f32 %v2662_v16, %v2585_v58  ;;  %v2679_v59 = vmul.f32 %v2585_v58, %v2585_v58  ;;  %2710 = vst [vmem:[%s5342_s5 + $0x50] sm:$0xff] %v2585_v58 }
 0x204   :  { %v2234_v20 = vadd.f32 %v2210_v46, %v2064_v17 }
 0x205   :  { %v2686_v32 = vadd.f32 %v2685_v13, %v2679_v59 }
 0x206   :  { %v2404_v33 = vadd.f32 %v2380_v37, %v2234_v20  ;;  %v2383_v2 = vpop.f32.mrf.mxu3 }
 0x208   :  { %v2562_v12 = vpop.f32.mrf.mxu0 }
 0x209   :  { %v2043_v28 = vpop.f32.mrf.mxu1  ;;  %v2586_v21 = vadd.f32 %v2562_v12, %v2404_v33  ;;  %v2213_v61 = vpop.f32.mrf.mxu2 }
 0x20a   :  { %v2065_v11 = vadd.f32 %v2043_v28, %v5235_v43 }
 0x20b   :  { %v2664_v4 = vadd.f32 %v2663_v22, %v2586_v21  ;;  %v2680_v51 = vmul.f32 %v2586_v21, %v2586_v21  ;;  %2711 = vst [vmem:[%s5342_s5 + $0x58] sm:$0xff] %v2586_v21 }
 0x20c   :  { %v2235_v52 = vadd.f32 %v2213_v61, %v2065_v11 }
 0x20d   :  { %v2687_v42 = vadd.f32 %v2686_v32, %v2680_v51 }
 0x20e   :  { %v2405_v36 = vadd.f32 %v2383_v2, %v2235_v52  ;;  %v2385_v15 = vpop.f32.mrf.mxu3 }
 0x210   :  { %v2565_v23 = vpop.f32.mrf.mxu0 }
 0x211   :  { %v2045_v56 = vpop.f32.mrf.mxu1  ;;  %v2587_v29 = vadd.f32 %v2565_v23, %v2405_v36  ;;  %v2215_v6 = vpop.f32.mrf.mxu2 }
 0x212   :  { %v2066_v40 = vadd.f32 %v2045_v56, %v5246_v27 }
 0x213   :  { %v2665_v8 = vadd.f32 %v2664_v4, %v2587_v29  ;;  %v2681_v54 = vmul.f32 %v2587_v29, %v2587_v29  ;;  %2712 = vst [vmem:[%s5342_s5 + $0x60] sm:$0xff] %v2587_v29 }
 0x214   :  { %v2236_v43 = vadd.f32 %v2215_v6, %v2066_v40 }
 0x215   :  { %v2688_v53 = vadd.f32 %v2687_v42, %v2681_v54 }
 0x216   :  { %v2406_v30 = vadd.f32 %v2385_v15, %v2236_v43  ;;  %v2388_v27 = vpop.f32.mrf.mxu3 }
 0x218   :  { %v2567_v55 = vpop.f32.mrf.mxu0 }
 0x219   :  { %v2048_v9 = vpop.f32.mrf.mxu1  ;;  %v2588_v38 = vadd.f32 %v2567_v55, %v2406_v30  ;;  %v2218_v57 = vpop.f32.mrf.mxu2 }
 0x21a   :  { %v2067_v41 = vadd.f32 %v2048_v9, %v5252_v63 }
 0x21b   :  { %v2666_v3 = vadd.f32 %v2665_v8, %v2588_v38  ;;  %v2682_v26 = vmul.f32 %v2588_v38, %v2588_v38  ;;  %2713 = vst [vmem:[%s5342_s5 + $0x68] sm:$0xff] %v2588_v38 }
 0x21c   :  { %v2237_v35 = vadd.f32 %v2218_v57, %v2067_v41 }
 0x21d   :  { %v2689_v19 = vadd.f32 %v2688_v53, %v2682_v26 }
 0x21e   :  { %v2407_v10 = vadd.f32 %v2388_v27, %v2237_v35  ;;  %v2390_v1 = vpop.f32.mrf.mxu3 }
 0x220   :  { %v2570_v44 = vpop.f32.mrf.mxu0 }
 0x221   :  { %v2050_v34 = vpop.f32.mrf.mxu1  ;;  %v2589_v45 = vadd.f32 %v2570_v44, %v2407_v10  ;;  %v2220_v62 = vpop.f32.mrf.mxu2 }
 0x222   :  { %v2068_v31 = vadd.f32 %v2050_v34, %v5258_v18 }
 0x223   :  { %v2667_v49 = vadd.f32 %v2666_v3, %v2589_v45  ;;  %v2683_v39 = vmul.f32 %v2589_v45, %v2589_v45  ;;  %2714 = vst [vmem:[%s5342_s5 + $0x70] sm:$0xff] %v2589_v45 }
 0x224   :  { %v2238_v63 = vadd.f32 %v2220_v62, %v2068_v31 }
 0x225   :  { %v2690_v25 = vadd.f32 %v2689_v19, %v2683_v39 }
 0x226   :  { %v2408_v60 = vadd.f32 %v2390_v1, %v2238_v63 }
 0x228   :  { %v2572_v48 = vpop.f32.mrf.mxu0 }
 0x229   :  { %v2590_v24 = vadd.f32 %v2572_v48, %v2408_v60 }
 0x22b   :  { %v2668_v0 = vadd.f32 %v2667_v49, %v2590_v24  ;;  %v2684_v16 = vmul.f32 %v2590_v24, %v2590_v24  ;;  %2715 = vst [vmem:[%s5342_s5 + $0x78] sm:$0xff] %v2590_v24 }
 0x22d   :  { %v2669_v7 = vrot.slane %v2668_v0, 4  ;;  %v2691_v18 = vadd.f32 %v2690_v25, %v2684_v16 }
 0x22f   :  { %v2670_v50 = vadd.f32 %v2669_v7, %v2668_v0  ;;  %v2692_v13 = vrot.slane %v2691_v18, 4 }
 0x231   :  { %v2671_v37 = vrot.slane %v2670_v50, 2  ;;  %v2693_v5 = vadd.f32 %v2692_v13, %v2691_v18 }
 0x233   :  { %v2672_v47 = vadd.f32 %v2671_v37, %v2670_v50  ;;  %v2694_v14 = vrot.slane %v2693_v5, 2 }
 0x235   :  { %v2673_v58 = vrot.slane %v2672_v47, 1  ;;  %v2695_v46 = vadd.f32 %v2694_v14, %v2693_v5 }
 0x237   :  { %v2674_v17 = vadd.f32 %v2673_v58, %v2672_v47  ;;  %v2696_v22 = vrot.slane %v2695_v46, 1 }
 0x239   :  { %3243 = vst [vmem:[%s5343_s6 + $0x1] sm:$0x1] %v2674_v17  ;;  %v2697_v59 = vadd.f32 %v2696_v22, %v2695_v46 }
 0x23b   :  { %3244 = vst [vmem:[%s5344_s7 + $0x1] sm:$0x1] %v2697_v59 }

</bundles_post_ra>
